<compile_context>
chip_gen: v7x
topology: tpu7x:2x2x1
jax: 0.10.0
libtpu: 0.0.40
codegen_flags: <defaults>
</compile_context>

<pallas_src>
import math

import numpy as np
import jax
import jax.numpy as jnp
from jax.experimental import pallas as pl
from jax.experimental.pallas import tpu as pltpu


# ---------------------------------------------------------------------------
# Model constants (match the PyTorch spec at small shapes)
# ---------------------------------------------------------------------------
DIM_KV = 32      # dim_kv_input (MHA embed dim)
DIM_Q = 16       # dim_q_input
N_HEAD = 4       # outer head blocks (EncoderBlock.n_head)
MHA_HEADS = 4    # inner heads inside each nn.MultiheadAttention
FF_HIDDEN = 512
OUT_DIM = 4      # final LazyLinear(4)
OUT_PAD = 128    # final linear padded to a full lane register
L = 8            # query sequence length
S = 16           # key/value sequence length

DH = DIM_KV // MHA_HEADS          # 8   inner head dim
E_PACK = N_HEAD * DIM_KV          # 128 all 4 blocks packed on lanes
N_EFF = N_HEAD * MHA_HEADS        # 16  effective attention heads
SC = N_EFF * S                    # 256 score columns (head-major, key pos)


# ---------------------------------------------------------------------------
# The fused kernel
# ---------------------------------------------------------------------------
def _fused_forward_kernel(
    qflat_ref, kT_ref, v_ref,
    rep_ref, kmask_ref, qrep_ref, vmask_ref, hsum_ref, hbcast_ref, avg_ref,
    wqp_ref, bqp_ref, wqf_ref, bqf_ref,
    wkT_ref, bkT_ref, wv_ref, bv_ref,
    wo_ref, bo_ref,
    ln1_g_ref, ln1_b_ref,
    b1_ref, b2_ref,
    ln2_g_ref, ln2_b_ref,
    bo1_ref, bo2_ref,
    wo3_ref, bo3_ref,
    w1_hbm, w2_hbm, wo1_hbm, wo2_hbm,
    out_ref,
    w1_vmem, w2_vmem, wo1_vmem, wo2_vmem, dma_sem):

  f32 = jnp.float32
  bf16 = jnp.bfloat16

  def dot(a, b):
    return jnp.dot(a, b, preferred_element_type=f32)

  # ---- kick off HBM->VMEM prefetch of the big bf16 FF / W_o weights. They are
  # not needed until after the attention phase, so the DMA hides behind MXU work.
  cp_w1 = pltpu.make_async_copy(w1_hbm, w1_vmem, dma_sem.at[0]); cp_w1.start()
  cp_w2 = pltpu.make_async_copy(w2_hbm, w2_vmem, dma_sem.at[1]); cp_w2.start()
  cp_o1 = pltpu.make_async_copy(wo1_hbm, wo1_vmem, dma_sem.at[2]); cp_o1.start()
  cp_o2 = pltpu.make_async_copy(wo2_hbm, wo2_vmem, dma_sem.at[3]); cp_o2.start()

  qflat = qflat_ref[...]                                          # (L, 64)

  # residual path: shared q_projection, packed block-diagonally over 4 blocks
  qp = dot(qflat, wqp_ref[...]) + bqp_ref[...]                    # (L, 128)
  # fused (q_projection @ wq) with 1/sqrt(dh) folded in — one matmul removed
  qs = dot(qflat, wqf_ref[...]) + bqf_ref[...]                    # (L, 128)
  # transpose-free K in-projection: kkT[d, s] = (k @ wk + bk)[s, d]
  kkT = dot(wkT_ref[...], kT_ref[...]) + bkT_ref[...]             # (128, S)
  vv = dot(v_ref[...], wv_ref[...]) + bv_ref[...]                 # (S, 128)

  # ---- 16-head attention, 2-D and lane-dense, selectors precomputed ------------
  k_bd = kmask_ref[...] * dot(kkT, rep_ref[...])                  # (128, 256)
  scores = dot(qs, k_bd)                                          # (L, 256), pre-scaled
  # Per-row global max is a valid per-segment softmax shift (shift-invariant);
  # fine at these activation scales (per-segment max only needed for huge scores).
  p = jnp.exp(scores - jnp.max(scores, axis=-1, keepdims=True))
  denom = dot(dot(p, hsum_ref[...]), hbcast_ref[...])             # per-head sums
  p = p * pl.reciprocal(denom, approx=True)

  v_bd = vmask_ref[...] * dot(qrep_ref[...], vv)                  # (256, 128)
  ctx = dot(p, v_bd)                                              # (L, 128), packed like qp
  attn = dot(ctx, wo_ref[...]) + bo_ref[...]                      # MHA out_proj, all blocks

  # ---- per-32-lane-block LayerNorm with a single stats matmul -------------------
  avg = avg_ref[...]

  def block_layernorm(x, g, b):
    rows = x.shape[0]
    stats = dot(jnp.concatenate([x, x * x], axis=0), avg)         # mu & E[x^2] together
    mu = stats[:rows, :]
    var = stats[rows:, :] - mu * mu
    return (x - mu) * jax.lax.rsqrt(var + 1e-5) * g + b

  nx = block_layernorm(attn + qp, ln1_g_ref[...], ln1_b_ref[...])  # norm1(attn + q)

  # ---- FeedForward (bf16 weights, prefetched) ------------------------------------
  cp_w1.wait(); cp_w2.wait()
  h = jnp.maximum(dot(nx.astype(bf16), w1_vmem[...]) + b1_ref[...], 0.0)   # (L, 2048)
  ff = dot(h.astype(bf16), w2_vmem[...]) + b2_ref[...]                     # (L, 128)

  cat = block_layernorm(nx + ff, ln2_g_ref[...], ln2_b_ref[...])  # == torch.cat(flayer, 1)

  # ---- W_o head: 128 -> 512 -> 128 -> 4 (padded to 128 lanes) --------------------
  cp_o1.wait(); cp_o2.wait()
  y = jnp.maximum(dot(cat.astype(bf16), wo1_vmem[...]) + bo1_ref[...], 0.0)
  y = jnp.maximum(dot(y.astype(bf16), wo2_vmem[...]) + bo2_ref[...], 0.0)
  y = dot(y, wo3_ref[...]) + bo3_ref[...]
  out_ref[...] = y.astype(out_ref.dtype)


# ---------------------------------------------------------------------------
# Forward wrapper: one pallas_call for the whole model
# ---------------------------------------------------------------------------
def baseline_model_forward(packed, qlist, k, v, out_dim=OUT_DIM):
  Lq, H, Dq = qlist.shape
  qflat = qlist.reshape(Lq, H * Dq)     # block i occupies columns [i*Dq, (i+1)*Dq)
  kT = k.T                              # zero-cost outside the kernel

  vmem = lambda: pl.BlockSpec(memory_space=pltpu.MemorySpace.VMEM)
  hbm = lambda: pl.BlockSpec(memory_space=pl.ANY)

  args = (qflat, kT, v,
          packed["rep"], packed["kmask"], packed["q_rep"], packed["vmask"],
          packed["hsum"], packed["hbcast"], packed["avg"],
          packed["wqp"], packed["bqp"], packed["wq_fused"], packed["bq_fused"],
          packed["wkT"], packed["bkT"], packed["wv"], packed["bv"],
          packed["wo"], packed["bo"],
          packed["ln1_g"], packed["ln1_b"],
          packed["b1"], packed["b2"],
          packed["ln2_g"], packed["ln2_b"],
          packed["bo1"], packed["bo2"],
          packed["wo3"], packed["bo3"],
          packed["w1"], packed["w2"], packed["wo1"], packed["wo2"])
  n_any = 4   # w1, w2, wo1, wo2 stay in HBM and are async-prefetched in-kernel

  out_pad = pl.pallas_call(
      _fused_forward_kernel,
      out_shape=jax.ShapeDtypeStruct((Lq, packed["wo3"].shape[1]), jnp.float32),
      in_specs=[vmem() for _ in range(len(args) - n_any)]
               + [hbm() for _ in range(n_any)],
      out_specs=vmem(),
      scratch_shapes=[
          pltpu.VMEM(packed["w1"].shape, packed["w1"].dtype),
          pltpu.VMEM(packed["w2"].shape, packed["w2"].dtype),
          pltpu.VMEM(packed["wo1"].shape, packed["wo1"].dtype),
          pltpu.VMEM(packed["wo2"].shape, packed["wo2"].dtype),
          pltpu.SemaphoreType.DMA((4,)),
      ],
  )(*args)
  return out_pad[:, :out_dim]           # strip the lane padding of the 4-wide head


# ---------------------------------------------------------------------------
# Parameter init (per-module, like the torch model)
# ---------------------------------------------------------------------------
def _init_linear(key, in_dim, out_dim):
  kw, kb = jax.random.split(key)
  w = jax.random.normal(kw, (in_dim, out_dim), jnp.float32) * 0.02   # (in, out)
  b = jax.random.normal(kb, (1, out_dim), jnp.float32) * 0.02
  return w, b


def init_params(key, dim_kv=DIM_KV, dim_q=DIM_Q, n_head=N_HEAD,
                hidden=FF_HIDDEN, out_dim=OUT_DIM):
  keys = jax.random.split(key, 64)
  ki = iter(range(64))
  params = {}
  params["qproj_w"], params["qproj_b"] = _init_linear(keys[next(ki)], dim_q, dim_kv)
  params["heads"] = []
  for _ in range(n_head):
    hp = {}
    hp["wq"], hp["bq"] = _init_linear(keys[next(ki)], dim_kv, dim_kv)
    hp["wk"], hp["bk"] = _init_linear(keys[next(ki)], dim_kv, dim_kv)
    hp["wv"], hp["bv"] = _init_linear(keys[next(ki)], dim_kv, dim_kv)
    hp["wo"], hp["bo"] = _init_linear(keys[next(ki)], dim_kv, dim_kv)
    hp["ln1_g"] = jnp.ones((1, dim_kv), jnp.float32)
    hp["ln1_b"] = jnp.zeros((1, dim_kv), jnp.float32)
    hp["ln2_g"] = jnp.ones((1, dim_kv), jnp.float32)
    hp["ln2_b"] = jnp.zeros((1, dim_kv), jnp.float32)
    hp["ff_w1"], hp["ff_b1"] = _init_linear(keys[next(ki)], dim_kv, hidden)
    hp["ff_w2"], hp["ff_b2"] = _init_linear(keys[next(ki)], hidden, dim_kv)
    params["heads"].append(hp)
  params["wo1_w"], params["wo1_b"] = _init_linear(keys[next(ki)], n_head * dim_kv, 512)
  params["wo2_w"], params["wo2_b"] = _init_linear(keys[next(ki)], 512, 128)
  params["wo3_w"], params["wo3_b"] = _init_linear(keys[next(ki)], 128, out_dim)
  return params


# ---------------------------------------------------------------------------
# One-time packing: weights, fused projections, and all selector constants
# ---------------------------------------------------------------------------
def _block_diag(blocks):
  rows = sum(b.shape[0] for b in blocks)
  cols = sum(b.shape[1] for b in blocks)
  out = jnp.zeros((rows, cols), jnp.float32)
  r = c = 0
  for b in blocks:
    out = out.at[r:r + b.shape[0], c:c + b.shape[1]].set(b)
    r += b.shape[0]
    c += b.shape[1]
  return out


def _make_constants():
  col = np.arange(SC)
  lane = np.arange(E_PACK)
  s_idx = np.arange(S)
  consts = {
      # rep[s, c] = 1 iff c % S == s                     (replicate kkT across heads)
      "rep": (col[None, :] % S == s_idx[:, None]).astype(np.float32),
      # kmask[d, c] = 1 iff lane d belongs to head c//S  (block-diagonal K^T)
      "kmask": ((lane[:, None] // DH) == (col[None, :] // S)).astype(np.float32),
      # q_rep[c, s] = 1 iff c % S == s                   (replicate vv across heads)
      "q_rep": ((col[:, None] % S) == s_idx[None, :]).astype(np.float32),
      # vmask[c, d] = 1 iff lane d belongs to head c//S  (block-diagonal V)
      "vmask": ((col[:, None] // S) == (lane[None, :] // DH)).astype(np.float32),
      # per-head softmax denominator: sums (256,16) then broadcast (16,256)
      "hsum": ((col[:, None] // S) == np.arange(N_EFF)[None, :]).astype(np.float32),
      # per-32-lane block averaging matrix for LayerNorm stats
      "avg": (((lane[:, None] // DIM_KV) == (lane[None, :] // DIM_KV))
              .astype(np.float32) / DIM_KV),
  }
  consts["hbcast"] = consts["hsum"].T.copy()
  return {k: jnp.asarray(v) for k, v in consts.items()}


def pack_params(params, n_head=N_HEAD, mha_heads=MHA_HEADS, out_pad=OUT_PAD):
  heads = params["heads"]
  scale = 1.0 / math.sqrt(DIM_KV // mha_heads)
  qw, qb = params["qproj_w"], params["qproj_b"]

  cat1 = lambda name: jnp.concatenate([h[name] for h in heads], axis=1)
  pad_cols = lambda a: jnp.pad(a, ((0, 0), (0, out_pad - a.shape[1])))

  wk_packed = jnp.concatenate([h["wk"] for h in heads], axis=1)     # (32, 128)
  bk_packed = cat1("bk")                                            # (1, 128)

  packed = {
      # residual path: shared q_projection repeated block-diagonally
      "wqp": _block_diag([qw] * n_head),
      "bqp": jnp.tile(qb, (1, n_head)),
      # fused q_projection @ wq with 1/sqrt(dh) folded in
      "wq_fused": _block_diag([qw @ h["wq"] * scale for h in heads]),
      "bq_fused": jnp.concatenate(
          [(qb @ h["wq"] + h["bq"]) * scale for h in heads], axis=1),
      # transpose-free K projection operands
      "wkT": wk_packed.T,                                           # (128, 32)
      "bkT": jnp.tile(bk_packed.T, (1, S)),                         # (128, 16)
      "wv": jnp.concatenate([h["wv"] for h in heads], axis=1), "bv": cat1("bv"),
      "wo": _block_diag([h["wo"] for h in heads]), "bo": cat1("bo"),
      "ln1_g": cat1("ln1_g"), "ln1_b": cat1("ln1_b"),
      # large FF / W_o weights in bf16 (halved HBM->VMEM traffic; MXU bf16-native)
      "w1": _block_diag([h["ff_w1"] for h in heads]).astype(jnp.bfloat16),
      "b1": cat1("ff_b1"),
      "w2": _block_diag([h["ff_w2"] for h in heads]).astype(jnp.bfloat16),
      "b2": cat1("ff_b2"),
      "ln2_g": cat1("ln2_g"), "ln2_b": cat1("ln2_b"),
      "wo1": params["wo1_w"].astype(jnp.bfloat16), "bo1": params["wo1_b"],
      "wo2": params["wo2_w"].astype(jnp.bfloat16), "bo2": params["wo2_b"],
      # final linear padded to 128 output lanes for a lane-dense store
      "wo3": pad_cols(params["wo3_w"]), "bo3": pad_cols(params["wo3_b"]),
  }
  packed.update(_make_constants())
  return packed


# ---------------------------------------------------------------------------
# Pure-JAX reference (mirrors the PyTorch module) for a correctness check
# ---------------------------------------------------------------------------
def reference_forward(params, qlist, k, v, n_head=N_HEAD, mha_heads=MHA_HEADS):
  hi = jax.lax.Precision.HIGHEST
  dot = lambda a, b: jnp.dot(a, b, precision=hi)

  def ln(x, g, b):
    mu = jnp.mean(x, axis=-1, keepdims=True)
    var = jnp.mean((x - mu) ** 2, axis=-1, keepdims=True)
    return (x - mu) * jax.lax.rsqrt(var + 1e-5) * g + b

  qproj = jnp.einsum("lhq,qe->lhe", qlist, params["qproj_w"],
                     precision=hi) + params["qproj_b"]
  outs = []
  for i in range(n_head):
    hp = params["heads"][i]
    qi = qproj[:, i, :]
    q = dot(qi, hp["wq"]) + hp["bq"]
    kk = dot(k, hp["wk"]) + hp["bk"]
    vv = dot(v, hp["wv"]) + hp["bv"]
    emb = q.shape[1]
    dh = emb // mha_heads
    heads_out = []
    for hh in range(mha_heads):
      qh = q[:, hh * dh:(hh + 1) * dh]
      kh = kk[:, hh * dh:(hh + 1) * dh]
      vh = vv[:, hh * dh:(hh + 1) * dh]
      s = dot(qh, kh.T) / math.sqrt(dh)
      s = s - jnp.max(s, axis=-1, keepdims=True)
      pw = jnp.exp(s)
      pw = pw / jnp.sum(pw, axis=-1, keepdims=True)
      heads_out.append(dot(pw, vh))
    ctx = jnp.concatenate(heads_out, axis=-1)
    attn = dot(ctx, hp["wo"]) + hp["bo"]
    nx = ln(attn + qi, hp["ln1_g"], hp["ln1_b"])
    ff = jnp.maximum(dot(nx, hp["ff_w1"]) + hp["ff_b1"], 0.0)
    ff = dot(ff, hp["ff_w2"]) + hp["ff_b2"]
    outs.append(ln(nx + ff, hp["ln2_g"], hp["ln2_b"]))
  catd = jnp.concatenate(outs, axis=1)
  y = jnp.maximum(dot(catd, params["wo1_w"]) + params["wo1_b"], 0.0)
  y = jnp.maximum(dot(y, params["wo2_w"]) + params["wo2_b"], 0.0)
  return dot(y, params["wo3_w"]) + params["wo3_b"]


# ---------------------------------------------------------------------------
# Main
# ---------------------------------------------------------------------------
if __name__ == "__main__":
  key = jax.random.PRNGKey(0)
  k_params, k_q, k_k, k_v = jax.random.split(key, 4)

  params = init_params(k_params)
  packed = pack_params(params)          # one-time packing (outside the kernel)

  qlist = jax.random.normal(k_q, (L, N_HEAD, DIM_Q), jnp.float32)
  k_in = jax.random.normal(k_k, (S, DIM_KV), jnp.float32)
  v_in = jax.random.normal(k_v, (S, DIM_KV), jnp.float32)

  fwd = jax.jit(baseline_model_forward)
  out = jax.block_until_ready(fwd(packed, qlist, k_in, v_in))
  assert out.shape == (L, OUT_DIM), out.shape

  ref = jax.block_until_ready(reference_forward(params, qlist, k_in, v_in))
  max_err = float(jnp.max(jnp.abs(out - ref)))
  # tolerance budget covers the bf16 FF / W_o weights + approx reciprocal softmax
  assert jnp.allclose(out, ref, atol=5e-3, rtol=2e-2), max_err

  print("KERNEL_OK")
</pallas_src>

<mosaic_0001>
module attributes {stable_mosaic.version = 11 : i64} {
  func.func @_fused_forward_kernel(%arg0: memref<8x64xf32, #tpu.memory_space<vmem>>, %arg1: memref<32x16xf32, #tpu.memory_space<vmem>>, %arg2: memref<16x32xf32, #tpu.memory_space<vmem>>, %arg3: memref<16x256xf32, #tpu.memory_space<vmem>>, %arg4: memref<128x256xf32, #tpu.memory_space<vmem>>, %arg5: memref<256x16xf32, #tpu.memory_space<vmem>>, %arg6: memref<256x128xf32, #tpu.memory_space<vmem>>, %arg7: memref<256x16xf32, #tpu.memory_space<vmem>>, %arg8: memref<16x256xf32, #tpu.memory_space<vmem>>, %arg9: memref<128x128xf32, #tpu.memory_space<vmem>>, %arg10: memref<64x128xf32, #tpu.memory_space<vmem>>, %arg11: memref<1x128xf32, #tpu.memory_space<vmem>>, %arg12: memref<64x128xf32, #tpu.memory_space<vmem>>, %arg13: memref<1x128xf32, #tpu.memory_space<vmem>>, %arg14: memref<128x32xf32, #tpu.memory_space<vmem>>, %arg15: memref<128x16xf32, #tpu.memory_space<vmem>>, %arg16: memref<32x128xf32, #tpu.memory_space<vmem>>, %arg17: memref<1x128xf32, #tpu.memory_space<vmem>>, %arg18: memref<128x128xf32, #tpu.memory_space<vmem>>, %arg19: memref<1x128xf32, #tpu.memory_space<vmem>>, %arg20: memref<1x128xf32, #tpu.memory_space<vmem>>, %arg21: memref<1x128xf32, #tpu.memory_space<vmem>>, %arg22: memref<1x2048xf32, #tpu.memory_space<vmem>>, %arg23: memref<1x128xf32, #tpu.memory_space<vmem>>, %arg24: memref<1x128xf32, #tpu.memory_space<vmem>>, %arg25: memref<1x128xf32, #tpu.memory_space<vmem>>, %arg26: memref<1x512xf32, #tpu.memory_space<vmem>>, %arg27: memref<1x128xf32, #tpu.memory_space<vmem>>, %arg28: memref<128x128xf32, #tpu.memory_space<vmem>>, %arg29: memref<1x128xf32, #tpu.memory_space<vmem>>, %arg30: memref<128x2048xbf16, #tpu.memory_space<any>>, %arg31: memref<2048x128xbf16, #tpu.memory_space<any>>, %arg32: memref<128x512xbf16, #tpu.memory_space<any>>, %arg33: memref<512x128xbf16, #tpu.memory_space<any>>, %arg34: memref<8x128xf32, #tpu.memory_space<vmem>>, %arg35: memref<128x2048xbf16, #tpu.memory_space<vmem>>, %arg36: memref<2048x128xbf16, #tpu.memory_space<vmem>>, %arg37: memref<128x512xbf16, #tpu.memory_space<vmem>>, %arg38: memref<512x128xbf16, #tpu.memory_space<vmem>>, %arg39: memref<4x!tpu.dma_semaphore, #tpu.memory_space<semaphore_mem>>) attributes {dimension_semantics = [], scalar_prefetch = 0 : i64, scratch_operands = 5 : i64, tpu.core_type = #tpu.core_type<tc>} {
    %c0_i32 = arith.constant 0 : i32
    %0 = tpu.memref_slice %arg39[%c0_i32] : memref<4x!tpu.dma_semaphore, #tpu.memory_space<semaphore_mem>> -> memref<1x!tpu.dma_semaphore, #tpu.memory_space<semaphore_mem>>
    %1 = tpu.memref_squeeze %0 : memref<1x!tpu.dma_semaphore, #tpu.memory_space<semaphore_mem>> -> memref<!tpu.dma_semaphore, #tpu.memory_space<semaphore_mem>>
    tpu.enqueue_dma source(%arg30 : memref<128x2048xbf16, #tpu.memory_space<any>>) target(%arg35 : memref<128x2048xbf16, #tpu.memory_space<vmem>>) target_semaphore(%1 : memref<!tpu.dma_semaphore, #tpu.memory_space<semaphore_mem>>)
    %c1_i32 = arith.constant 1 : i32
    %2 = tpu.memref_slice %arg39[%c1_i32] : memref<4x!tpu.dma_semaphore, #tpu.memory_space<semaphore_mem>> -> memref<1x!tpu.dma_semaphore, #tpu.memory_space<semaphore_mem>>
    %3 = tpu.memref_squeeze %2 : memref<1x!tpu.dma_semaphore, #tpu.memory_space<semaphore_mem>> -> memref<!tpu.dma_semaphore, #tpu.memory_space<semaphore_mem>>
    tpu.enqueue_dma source(%arg31 : memref<2048x128xbf16, #tpu.memory_space<any>>) target(%arg36 : memref<2048x128xbf16, #tpu.memory_space<vmem>>) target_semaphore(%3 : memref<!tpu.dma_semaphore, #tpu.memory_space<semaphore_mem>>)
    %c2_i32 = arith.constant 2 : i32
    %4 = tpu.memref_slice %arg39[%c2_i32] : memref<4x!tpu.dma_semaphore, #tpu.memory_space<semaphore_mem>> -> memref<1x!tpu.dma_semaphore, #tpu.memory_space<semaphore_mem>>
    %5 = tpu.memref_squeeze %4 : memref<1x!tpu.dma_semaphore, #tpu.memory_space<semaphore_mem>> -> memref<!tpu.dma_semaphore, #tpu.memory_space<semaphore_mem>>
    tpu.enqueue_dma source(%arg32 : memref<128x512xbf16, #tpu.memory_space<any>>) target(%arg37 : memref<128x512xbf16, #tpu.memory_space<vmem>>) target_semaphore(%5 : memref<!tpu.dma_semaphore, #tpu.memory_space<semaphore_mem>>)
    %c3_i32 = arith.constant 3 : i32
    %6 = tpu.memref_slice %arg39[%c3_i32] : memref<4x!tpu.dma_semaphore, #tpu.memory_space<semaphore_mem>> -> memref<1x!tpu.dma_semaphore, #tpu.memory_space<semaphore_mem>>
    %7 = tpu.memref_squeeze %6 : memref<1x!tpu.dma_semaphore, #tpu.memory_space<semaphore_mem>> -> memref<!tpu.dma_semaphore, #tpu.memory_space<semaphore_mem>>
    tpu.enqueue_dma source(%arg33 : memref<512x128xbf16, #tpu.memory_space<any>>) target(%arg38 : memref<512x128xbf16, #tpu.memory_space<vmem>>) target_semaphore(%7 : memref<!tpu.dma_semaphore, #tpu.memory_space<semaphore_mem>>)
    %c0 = arith.constant 0 : index
    %c0_0 = arith.constant 0 : index
    %8 = vector.load %arg0[%c0, %c0_0] : memref<8x64xf32, #tpu.memory_space<vmem>>, vector<8x64xf32>
    %c0_1 = arith.constant 0 : index
    %c0_2 = arith.constant 0 : index
    %9 = vector.load %arg10[%c0_1, %c0_2] : memref<64x128xf32, #tpu.memory_space<vmem>>, vector<64x128xf32>
    %cst = arith.constant dense<0.000000e+00> : vector<8x128xf32>
    %10 = tpu.matmul %8, %9, %cst {dimension_numbers = #tpu.dot_dimension_numbers<[1], [0], [0], [1], [0, 0, 1, 1], [], []>} : vector<8x64xf32>, vector<64x128xf32>, vector<8x128xf32> -> vector<8x128xf32>
    %c0_3 = arith.constant 0 : index
    %c0_4 = arith.constant 0 : index
    %11 = vector.load %arg11[%c0_3, %c0_4] : memref<1x128xf32, #tpu.memory_space<vmem>>, vector<1x128xf32>
    %12 = vector.broadcast %11 : vector<1x128xf32> to vector<8x128xf32>
    %13 = arith.addf %10, %12 : vector<8x128xf32>
    %c0_5 = arith.constant 0 : index
    %c0_6 = arith.constant 0 : index
    %14 = vector.load %arg12[%c0_5, %c0_6] : memref<64x128xf32, #tpu.memory_space<vmem>>, vector<64x128xf32>
    %cst_7 = arith.constant dense<0.000000e+00> : vector<8x128xf32>
    %15 = tpu.matmul %8, %14, %cst_7 {dimension_numbers = #tpu.dot_dimension_numbers<[1], [0], [0], [1], [0, 0, 1, 1], [], []>} : vector<8x64xf32>, vector<64x128xf32>, vector<8x128xf32> -> vector<8x128xf32>
    %c0_8 = arith.constant 0 : index
    %c0_9 = arith.constant 0 : index
    %16 = vector.load %arg13[%c0_8, %c0_9] : memref<1x128xf32, #tpu.memory_space<vmem>>, vector<1x128xf32>
    %17 = vector.broadcast %16 : vector<1x128xf32> to vector<8x128xf32>
    %18 = arith.addf %15, %17 : vector<8x128xf32>
    %c0_10 = arith.constant 0 : index
    %c0_11 = arith.constant 0 : index
    %19 = vector.load %arg14[%c0_10, %c0_11] : memref<128x32xf32, #tpu.memory_space<vmem>>, vector<128x32xf32>
    %c0_12 = arith.constant 0 : index
    %c0_13 = arith.constant 0 : index
    %20 = vector.load %arg1[%c0_12, %c0_13] : memref<32x16xf32, #tpu.memory_space<vmem>>, vector<32x16xf32>
    %cst_14 = arith.constant dense<0.000000e+00> : vector<128x16xf32>
    %21 = tpu.matmul %19, %20, %cst_14 {dimension_numbers = #tpu.dot_dimension_numbers<[1], [0], [0], [1], [0, 0, 1, 1], [], []>} : vector<128x32xf32>, vector<32x16xf32>, vector<128x16xf32> -> vector<128x16xf32>
    %c0_15 = arith.constant 0 : index
    %c0_16 = arith.constant 0 : index
    %22 = vector.load %arg15[%c0_15, %c0_16] : memref<128x16xf32, #tpu.memory_space<vmem>>, vector<128x16xf32>
    %23 = arith.addf %21, %22 : vector<128x16xf32>
    %c0_17 = arith.constant 0 : index
    %c0_18 = arith.constant 0 : index
    %24 = vector.load %arg2[%c0_17, %c0_18] : memref<16x32xf32, #tpu.memory_space<vmem>>, vector<16x32xf32>
    %c0_19 = arith.constant 0 : index
    %c0_20 = arith.constant 0 : index
    %25 = vector.load %arg16[%c0_19, %c0_20] : memref<32x128xf32, #tpu.memory_space<vmem>>, vector<32x128xf32>
    %cst_21 = arith.constant dense<0.000000e+00> : vector<16x128xf32>
    %26 = tpu.matmul %24, %25, %cst_21 {dimension_numbers = #tpu.dot_dimension_numbers<[1], [0], [0], [1], [0, 0, 1, 1], [], []>} : vector<16x32xf32>, vector<32x128xf32>, vector<16x128xf32> -> vector<16x128xf32>
    %c0_22 = arith.constant 0 : index
    %c0_23 = arith.constant 0 : index
    %27 = vector.load %arg17[%c0_22, %c0_23] : memref<1x128xf32, #tpu.memory_space<vmem>>, vector<1x128xf32>
    %28 = vector.broadcast %27 : vector<1x128xf32> to vector<16x128xf32>
    %29 = arith.addf %26, %28 : vector<16x128xf32>
    %c0_24 = arith.constant 0 : index
    %c0_25 = arith.constant 0 : index
    %30 = vector.load %arg4[%c0_24, %c0_25] : memref<128x256xf32, #tpu.memory_space<vmem>>, vector<128x256xf32>
    %c0_26 = arith.constant 0 : index
    %c0_27 = arith.constant 0 : index
    %31 = vector.load %arg3[%c0_26, %c0_27] : memref<16x256xf32, #tpu.memory_space<vmem>>, vector<16x256xf32>
    %cst_28 = arith.constant dense<0.000000e+00> : vector<128x256xf32>
    %32 = tpu.matmul %23, %31, %cst_28 {dimension_numbers = #tpu.dot_dimension_numbers<[1], [0], [0], [1], [0, 0, 1, 1], [], []>} : vector<128x16xf32>, vector<16x256xf32>, vector<128x256xf32> -> vector<128x256xf32>
    %33 = arith.mulf %30, %32 : vector<128x256xf32>
    %cst_29 = arith.constant dense<0.000000e+00> : vector<8x256xf32>
    %34 = tpu.matmul %18, %33, %cst_29 {dimension_numbers = #tpu.dot_dimension_numbers<[1], [0], [0], [1], [0, 0, 1, 1], [], []>} : vector<8x128xf32>, vector<128x256xf32>, vector<8x256xf32> -> vector<8x256xf32>
    %cst_30 = arith.constant dense<0xFF800000> : vector<8xf32>
    %35 = vector.multi_reduction <maximumf>, %34, %cst_30 [1] : vector<8x256xf32> to vector<8xf32>
    %36 = vector.shape_cast %35 : vector<8xf32> to vector<8x1xf32>
    %37 = vector.broadcast %36 : vector<8x1xf32> to vector<8x256xf32>
    %38 = arith.subf %34, %37 : vector<8x256xf32>
    %39 = math.exp %38 : vector<8x256xf32>
    %c0_31 = arith.constant 0 : index
    %c0_32 = arith.constant 0 : index
    %40 = vector.load %arg7[%c0_31, %c0_32] : memref<256x16xf32, #tpu.memory_space<vmem>>, vector<256x16xf32>
    %cst_33 = arith.constant dense<0.000000e+00> : vector<8x16xf32>
    %41 = tpu.matmul %39, %40, %cst_33 {dimension_numbers = #tpu.dot_dimension_numbers<[1], [0], [0], [1], [0, 0, 1, 1], [], []>} : vector<8x256xf32>, vector<256x16xf32>, vector<8x16xf32> -> vector<8x16xf32>
    %c0_34 = arith.constant 0 : index
    %c0_35 = arith.constant 0 : index
    %42 = vector.load %arg8[%c0_34, %c0_35] : memref<16x256xf32, #tpu.memory_space<vmem>>, vector<16x256xf32>
    %cst_36 = arith.constant dense<0.000000e+00> : vector<8x256xf32>
    %43 = tpu.matmul %41, %42, %cst_36 {dimension_numbers = #tpu.dot_dimension_numbers<[1], [0], [0], [1], [0, 0, 1, 1], [], []>} : vector<8x16xf32>, vector<16x256xf32>, vector<8x256xf32> -> vector<8x256xf32>
    %44 = tpu.reciprocal %43 {approx = true} : vector<8x256xf32> -> vector<8x256xf32>
    %45 = arith.mulf %39, %44 : vector<8x256xf32>
    %c0_37 = arith.constant 0 : index
    %c0_38 = arith.constant 0 : index
    %46 = vector.load %arg6[%c0_37, %c0_38] : memref<256x128xf32, #tpu.memory_space<vmem>>, vector<256x128xf32>
    %c0_39 = arith.constant 0 : index
    %c0_40 = arith.constant 0 : index
    %47 = vector.load %arg5[%c0_39, %c0_40] : memref<256x16xf32, #tpu.memory_space<vmem>>, vector<256x16xf32>
    %cst_41 = arith.constant dense<0.000000e+00> : vector<256x128xf32>
    %48 = tpu.matmul %47, %29, %cst_41 {dimension_numbers = #tpu.dot_dimension_numbers<[1], [0], [0], [1], [0, 0, 1, 1], [], []>} : vector<256x16xf32>, vector<16x128xf32>, vector<256x128xf32> -> vector<256x128xf32>
    %49 = arith.mulf %46, %48 : vector<256x128xf32>
    %cst_42 = arith.constant dense<0.000000e+00> : vector<8x128xf32>
    %50 = tpu.matmul %45, %49, %cst_42 {dimension_numbers = #tpu.dot_dimension_numbers<[1], [0], [0], [1], [0, 0, 1, 1], [], []>} : vector<8x256xf32>, vector<256x128xf32>, vector<8x128xf32> -> vector<8x128xf32>
    %c0_43 = arith.constant 0 : index
    %c0_44 = arith.constant 0 : index
    %51 = vector.load %arg18[%c0_43, %c0_44] : memref<128x128xf32, #tpu.memory_space<vmem>>, vector<128x128xf32>
    %cst_45 = arith.constant dense<0.000000e+00> : vector<8x128xf32>
    %52 = tpu.matmul %50, %51, %cst_45 {dimension_numbers = #tpu.dot_dimension_numbers<[1], [0], [0], [1], [0, 0, 1, 1], [], []>} : vector<8x128xf32>, vector<128x128xf32>, vector<8x128xf32> -> vector<8x128xf32>
    %c0_46 = arith.constant 0 : index
    %c0_47 = arith.constant 0 : index
    %53 = vector.load %arg19[%c0_46, %c0_47] : memref<1x128xf32, #tpu.memory_space<vmem>>, vector<1x128xf32>
    %54 = vector.broadcast %53 : vector<1x128xf32> to vector<8x128xf32>
    %55 = arith.addf %52, %54 : vector<8x128xf32>
    %c0_48 = arith.constant 0 : index
    %c0_49 = arith.constant 0 : index
    %56 = vector.load %arg9[%c0_48, %c0_49] : memref<128x128xf32, #tpu.memory_space<vmem>>, vector<128x128xf32>
    %57 = arith.addf %55, %13 : vector<8x128xf32>
    %c0_50 = arith.constant 0 : index
    %c0_51 = arith.constant 0 : index
    %58 = vector.load %arg20[%c0_50, %c0_51] : memref<1x128xf32, #tpu.memory_space<vmem>>, vector<1x128xf32>
    %c0_52 = arith.constant 0 : index
    %c0_53 = arith.constant 0 : index
    %59 = vector.load %arg21[%c0_52, %c0_53] : memref<1x128xf32, #tpu.memory_space<vmem>>, vector<1x128xf32>
    %60 = arith.mulf %57, %57 : vector<8x128xf32>
    %61 = tpu.concatenate %57, %60 in 0 : vector<8x128xf32>, vector<8x128xf32> -> vector<16x128xf32>
    %cst_54 = arith.constant dense<0.000000e+00> : vector<16x128xf32>
    %62 = tpu.matmul %61, %56, %cst_54 {dimension_numbers = #tpu.dot_dimension_numbers<[1], [0], [0], [1], [0, 0, 1, 1], [], []>} : vector<16x128xf32>, vector<128x128xf32>, vector<16x128xf32> -> vector<16x128xf32>
    %63 = vector.extract_strided_slice %62 {offsets = [0, 0], sizes = [8, 128], strides = [1, 1]} : vector<16x128xf32> to vector<8x128xf32>
    %64 = vector.extract_strided_slice %62 {offsets = [8, 0], sizes = [8, 128], strides = [1, 1]} : vector<16x128xf32> to vector<8x128xf32>
    %65 = arith.mulf %63, %63 : vector<8x128xf32>
    %66 = arith.subf %64, %65 : vector<8x128xf32>
    %67 = arith.subf %57, %63 : vector<8x128xf32>
    %cst_55 = arith.constant 9.99999974E-6 : f32
    %68 = vector.broadcast %cst_55 : f32 to vector<8x128xf32>
    %69 = arith.addf %66, %68 : vector<8x128xf32>
    %70 = math.rsqrt %69 : vector<8x128xf32>
    %71 = arith.mulf %67, %70 : vector<8x128xf32>
    %72 = vector.broadcast %58 : vector<1x128xf32> to vector<8x128xf32>
    %73 = arith.mulf %71, %72 : vector<8x128xf32>
    %74 = vector.broadcast %59 : vector<1x128xf32> to vector<8x128xf32>
    %75 = arith.addf %73, %74 : vector<8x128xf32>
    %c0_i32_56 = arith.constant 0 : i32
    %76 = tpu.memref_slice %arg39[%c0_i32_56] : memref<4x!tpu.dma_semaphore, #tpu.memory_space<semaphore_mem>> -> memref<1x!tpu.dma_semaphore, #tpu.memory_space<semaphore_mem>>
    %77 = tpu.memref_squeeze %76 : memref<1x!tpu.dma_semaphore, #tpu.memory_space<semaphore_mem>> -> memref<!tpu.dma_semaphore, #tpu.memory_space<semaphore_mem>>
    tpu.wait_dma2 semaphore(%77 : memref<!tpu.dma_semaphore, #tpu.memory_space<semaphore_mem>>) src(%arg30 : memref<128x2048xbf16, #tpu.memory_space<any>>) dst(%arg35 : memref<128x2048xbf16, #tpu.memory_space<vmem>>)
    %c1_i32_57 = arith.constant 1 : i32
    %78 = tpu.memref_slice %arg39[%c1_i32_57] : memref<4x!tpu.dma_semaphore, #tpu.memory_space<semaphore_mem>> -> memref<1x!tpu.dma_semaphore, #tpu.memory_space<semaphore_mem>>
    %79 = tpu.memref_squeeze %78 : memref<1x!tpu.dma_semaphore, #tpu.memory_space<semaphore_mem>> -> memref<!tpu.dma_semaphore, #tpu.memory_space<semaphore_mem>>
    tpu.wait_dma2 semaphore(%79 : memref<!tpu.dma_semaphore, #tpu.memory_space<semaphore_mem>>) src(%arg31 : memref<2048x128xbf16, #tpu.memory_space<any>>) dst(%arg36 : memref<2048x128xbf16, #tpu.memory_space<vmem>>)
    %80 = arith.truncf %75 : vector<8x128xf32> to vector<8x128xbf16>
    %c0_58 = arith.constant 0 : index
    %c0_59 = arith.constant 0 : index
    %81 = vector.load %arg35[%c0_58, %c0_59] : memref<128x2048xbf16, #tpu.memory_space<vmem>>, vector<128x2048xbf16>
    %cst_60 = arith.constant dense<0.000000e+00> : vector<8x2048xf32>
    %82 = tpu.matmul %80, %81, %cst_60 {dimension_numbers = #tpu.dot_dimension_numbers<[1], [0], [0], [1], [0, 0, 1, 1], [], []>} : vector<8x128xbf16>, vector<128x2048xbf16>, vector<8x2048xf32> -> vector<8x2048xf32>
    %c0_61 = arith.constant 0 : index
    %c0_62 = arith.constant 0 : index
    %83 = vector.load %arg22[%c0_61, %c0_62] : memref<1x2048xf32, #tpu.memory_space<vmem>>, vector<1x2048xf32>
    %84 = vector.broadcast %83 : vector<1x2048xf32> to vector<8x2048xf32>
    %85 = arith.addf %82, %84 : vector<8x2048xf32>
    %cst_63 = arith.constant 0.000000e+00 : f32
    %86 = vector.broadcast %cst_63 : f32 to vector<8x2048xf32>
    %87 = arith.maximumf %85, %86 : vector<8x2048xf32>
    %88 = arith.truncf %87 : vector<8x2048xf32> to vector<8x2048xbf16>
    %c0_64 = arith.constant 0 : index
    %c0_65 = arith.constant 0 : index
    %89 = vector.load %arg36[%c0_64, %c0_65] : memref<2048x128xbf16, #tpu.memory_space<vmem>>, vector<2048x128xbf16>
    %cst_66 = arith.constant dense<0.000000e+00> : vector<8x128xf32>
    %90 = tpu.matmul %88, %89, %cst_66 {dimension_numbers = #tpu.dot_dimension_numbers<[1], [0], [0], [1], [0, 0, 1, 1], [], []>} : vector<8x2048xbf16>, vector<2048x128xbf16>, vector<8x128xf32> -> vector<8x128xf32>
    %c0_67 = arith.constant 0 : index
    %c0_68 = arith.constant 0 : index
    %91 = vector.load %arg23[%c0_67, %c0_68] : memref<1x128xf32, #tpu.memory_space<vmem>>, vector<1x128xf32>
    %92 = vector.broadcast %91 : vector<1x128xf32> to vector<8x128xf32>
    %93 = arith.addf %90, %92 : vector<8x128xf32>
    %94 = arith.addf %75, %93 : vector<8x128xf32>
    %c0_69 = arith.constant 0 : index
    %c0_70 = arith.constant 0 : index
    %95 = vector.load %arg24[%c0_69, %c0_70] : memref<1x128xf32, #tpu.memory_space<vmem>>, vector<1x128xf32>
    %c0_71 = arith.constant 0 : index
    %c0_72 = arith.constant 0 : index
    %96 = vector.load %arg25[%c0_71, %c0_72] : memref<1x128xf32, #tpu.memory_space<vmem>>, vector<1x128xf32>
    %97 = arith.mulf %94, %94 : vector<8x128xf32>
    %98 = tpu.concatenate %94, %97 in 0 : vector<8x128xf32>, vector<8x128xf32> -> vector<16x128xf32>
    %cst_73 = arith.constant dense<0.000000e+00> : vector<16x128xf32>
    %99 = tpu.matmul %98, %56, %cst_73 {dimension_numbers = #tpu.dot_dimension_numbers<[1], [0], [0], [1], [0, 0, 1, 1], [], []>} : vector<16x128xf32>, vector<128x128xf32>, vector<16x128xf32> -> vector<16x128xf32>
    %100 = vector.extract_strided_slice %99 {offsets = [0, 0], sizes = [8, 128], strides = [1, 1]} : vector<16x128xf32> to vector<8x128xf32>
    %101 = vector.extract_strided_slice %99 {offsets = [8, 0], sizes = [8, 128], strides = [1, 1]} : vector<16x128xf32> to vector<8x128xf32>
    %102 = arith.mulf %100, %100 : vector<8x128xf32>
    %103 = arith.subf %101, %102 : vector<8x128xf32>
    %104 = arith.subf %94, %100 : vector<8x128xf32>
    %cst_74 = arith.constant 9.99999974E-6 : f32
    %105 = vector.broadcast %cst_74 : f32 to vector<8x128xf32>
    %106 = arith.addf %103, %105 : vector<8x128xf32>
    %107 = math.rsqrt %106 : vector<8x128xf32>
    %108 = arith.mulf %104, %107 : vector<8x128xf32>
    %109 = vector.broadcast %95 : vector<1x128xf32> to vector<8x128xf32>
    %110 = arith.mulf %108, %109 : vector<8x128xf32>
    %111 = vector.broadcast %96 : vector<1x128xf32> to vector<8x128xf32>
    %112 = arith.addf %110, %111 : vector<8x128xf32>
    %c2_i32_75 = arith.constant 2 : i32
    %113 = tpu.memref_slice %arg39[%c2_i32_75] : memref<4x!tpu.dma_semaphore, #tpu.memory_space<semaphore_mem>> -> memref<1x!tpu.dma_semaphore, #tpu.memory_space<semaphore_mem>>
    %114 = tpu.memref_squeeze %113 : memref<1x!tpu.dma_semaphore, #tpu.memory_space<semaphore_mem>> -> memref<!tpu.dma_semaphore, #tpu.memory_space<semaphore_mem>>
    tpu.wait_dma2 semaphore(%114 : memref<!tpu.dma_semaphore, #tpu.memory_space<semaphore_mem>>) src(%arg32 : memref<128x512xbf16, #tpu.memory_space<any>>) dst(%arg37 : memref<128x512xbf16, #tpu.memory_space<vmem>>)
    %c3_i32_76 = arith.constant 3 : i32
    %115 = tpu.memref_slice %arg39[%c3_i32_76] : memref<4x!tpu.dma_semaphore, #tpu.memory_space<semaphore_mem>> -> memref<1x!tpu.dma_semaphore, #tpu.memory_space<semaphore_mem>>
    %116 = tpu.memref_squeeze %115 : memref<1x!tpu.dma_semaphore, #tpu.memory_space<semaphore_mem>> -> memref<!tpu.dma_semaphore, #tpu.memory_space<semaphore_mem>>
    tpu.wait_dma2 semaphore(%116 : memref<!tpu.dma_semaphore, #tpu.memory_space<semaphore_mem>>) src(%arg33 : memref<512x128xbf16, #tpu.memory_space<any>>) dst(%arg38 : memref<512x128xbf16, #tpu.memory_space<vmem>>)
    %117 = arith.truncf %112 : vector<8x128xf32> to vector<8x128xbf16>
    %c0_77 = arith.constant 0 : index
    %c0_78 = arith.constant 0 : index
    %118 = vector.load %arg37[%c0_77, %c0_78] : memref<128x512xbf16, #tpu.memory_space<vmem>>, vector<128x512xbf16>
    %cst_79 = arith.constant dense<0.000000e+00> : vector<8x512xf32>
    %119 = tpu.matmul %117, %118, %cst_79 {dimension_numbers = #tpu.dot_dimension_numbers<[1], [0], [0], [1], [0, 0, 1, 1], [], []>} : vector<8x128xbf16>, vector<128x512xbf16>, vector<8x512xf32> -> vector<8x512xf32>
    %c0_80 = arith.constant 0 : index
    %c0_81 = arith.constant 0 : index
    %120 = vector.load %arg26[%c0_80, %c0_81] : memref<1x512xf32, #tpu.memory_space<vmem>>, vector<1x512xf32>
    %121 = vector.broadcast %120 : vector<1x512xf32> to vector<8x512xf32>
    %122 = arith.addf %119, %121 : vector<8x512xf32>
    %cst_82 = arith.constant 0.000000e+00 : f32
    %123 = vector.broadcast %cst_82 : f32 to vector<8x512xf32>
    %124 = arith.maximumf %122, %123 : vector<8x512xf32>
    %125 = arith.truncf %124 : vector<8x512xf32> to vector<8x512xbf16>
    %c0_83 = arith.constant 0 : index
    %c0_84 = arith.constant 0 : index
    %126 = vector.load %arg38[%c0_83, %c0_84] : memref<512x128xbf16, #tpu.memory_space<vmem>>, vector<512x128xbf16>
    %cst_85 = arith.constant dense<0.000000e+00> : vector<8x128xf32>
    %127 = tpu.matmul %125, %126, %cst_85 {dimension_numbers = #tpu.dot_dimension_numbers<[1], [0], [0], [1], [0, 0, 1, 1], [], []>} : vector<8x512xbf16>, vector<512x128xbf16>, vector<8x128xf32> -> vector<8x128xf32>
    %c0_86 = arith.constant 0 : index
    %c0_87 = arith.constant 0 : index
    %128 = vector.load %arg27[%c0_86, %c0_87] : memref<1x128xf32, #tpu.memory_space<vmem>>, vector<1x128xf32>
    %129 = vector.broadcast %128 : vector<1x128xf32> to vector<8x128xf32>
    %130 = arith.addf %127, %129 : vector<8x128xf32>
    %cst_88 = arith.constant 0.000000e+00 : f32
    %131 = vector.broadcast %cst_88 : f32 to vector<8x128xf32>
    %132 = arith.maximumf %130, %131 : vector<8x128xf32>
    %c0_89 = arith.constant 0 : index
    %c0_90 = arith.constant 0 : index
    %133 = vector.load %arg28[%c0_89, %c0_90] : memref<128x128xf32, #tpu.memory_space<vmem>>, vector<128x128xf32>
    %cst_91 = arith.constant dense<0.000000e+00> : vector<8x128xf32>
    %134 = tpu.matmul %132, %133, %cst_91 {dimension_numbers = #tpu.dot_dimension_numbers<[1], [0], [0], [1], [0, 0, 1, 1], [], []>} : vector<8x128xf32>, vector<128x128xf32>, vector<8x128xf32> -> vector<8x128xf32>
    %c0_92 = arith.constant 0 : index
    %c0_93 = arith.constant 0 : index
    %135 = vector.load %arg29[%c0_92, %c0_93] : memref<1x128xf32, #tpu.memory_space<vmem>>, vector<1x128xf32>
    %136 = vector.broadcast %135 : vector<1x128xf32> to vector<8x128xf32>
    %137 = arith.addf %134, %136 : vector<8x128xf32>
    %c0_94 = arith.constant 0 : index
    %c0_95 = arith.constant 0 : index
    %138 = vector.load %arg34[%c0_94, %c0_95] : memref<8x128xf32, #tpu.memory_space<vmem>>, vector<8x128xf32>
    tpu.vector_store %arg34[%c0_94, %c0_95], %137 {strides = array<i32>} : memref<8x128xf32, #tpu.memory_space<vmem>>, vector<8x128xf32>,
    return
  }
}

</mosaic_0001>

<bundles_post_ra>
// kernel: baseline_model_forward.1
= control target key start
LH: loop header
LB: loop body
LE: loop exit
PB: predicated region body
PF: predicated region fallthrough
CT: control target
= control target key end

     0   :  { %s6575_s6 = smov 1   ;;  %s6576_s10 = smov 2   ;;  %s7679_s0 = inlined_call_operand.smem [shape: u32[35], index: -1, kind: input, shape index: {}] }
   0x1   :  { %s6656_s5 = sld [smem:[%s7679_s0]]   ;;  %s6577_s14 = smov 3  }
   0x2   :  { %s6661_s9 = sld [smem:[%s7679_s0 + %s6575_s6]]   ;;  %s6578_s18 = smov 4  }
   0x3   :  { %s6666_s13 = sld [smem:[%s7679_s0 + %s6576_s10]]   ;;  %s6579_s22 = smov 5  }
   0x4   :  { %s6671_s17 = sld [smem:[%s7679_s0 + %s6577_s14]]   ;;  %s6580_s26 = smov 6  }
   0x5   :  { %s6676_s21 = sld [smem:[%s7679_s0 + %s6578_s18]]   ;;  %s6581_s30 = smov 7  }
   0x6   :  { %s6681_s25 = sld [smem:[%s7679_s0 + %s6579_s22]]   ;;  %s6582_s4 = smov 8  }
   0x7   :  { %7695 = sst [smem:[#allocation66_spill]] %s6656_s5  ;;  %s6583_s10 = smov 9  }
   0x8   :  { %7696 = sst [smem:[#allocation67_spill]] %s6661_s9  ;;  %s6584_s15 = smov 10  }
   0x9   :  { %s6686_s29 = sld [smem:[%s7679_s0 + %s6580_s26]]   ;;  %s6585_s20 = smov 11  }
   0xa   :  { %s6691_s3 = sld [smem:[%s7679_s0 + %s6581_s30]]   ;;  %s6586_s26 = smov 12  }
   0xb   :  { %s6696_s8 = sld [smem:[%s7679_s0 + %s6582_s4]]   ;;  %s6587_s1 = smov 13  }
   0xc   :  { %7697 = sst [smem:[#allocation68_spill]] %s6681_s25  ;;  %s6588_s7 = smov 14  }
   0xd   :  { %s6701_s14 = sld [smem:[%s7679_s0 + %s6583_s10]]   ;;  %s6590_s22 = smov 16  }
   0xe   :  { %s6706_s19 = sld [smem:[%s7679_s0 + %s6584_s15]]   ;;  %s6589_s15 = smov 15  }
   0xf   :  { %s6711_s24 = sld [smem:[%s7679_s0 + %s6585_s20]]   ;;  %s6591_s28 = smov 17  }
  0x10   :  { %7698 = sst [smem:[#allocation69_spill]] %s6691_s3 }
  0x11   :  { %s6716_s30 = sld [smem:[%s7679_s0 + %s6586_s26]]  }
  0x12   :  { %s6721_s6 = sld [smem:[%s7679_s0 + %s6587_s1]]  }
  0x13   :  { %s6726_s12 = sld [smem:[%s7679_s0 + %s6588_s7]]   ;;  %s6592_s7 = smov 18  }
  0x14   :  { %s6731_s20 = sld [smem:[%s7679_s0 + %s6589_s15]]   ;;  %s6593_s15 = smov 19  }
  0x15   :  { %7699 = sst [smem:[#allocation70_spill]] %s6711_s24 }
  0x16   :  { %s6736_s27 = sld [smem:[%s7679_s0 + %s6590_s22]]   ;;  %s6594_s22 = smov 20  }
  0x17   :  { %s6741_s4 = sld [smem:[%s7679_s0 + %s6591_s28]]   ;;  %s6595_s28 = smov 21  }
  0x18   :  { %7700 = sst [smem:[#allocation71_spill]] %s6721_s6 }
  0x19   :  { %7701 = sst [smem:[#allocation72_spill]] %s6726_s12 }
  0x1a   :  { %7702 = sst [smem:[#allocation73_spill]] %s6731_s20 }
  0x1b   :  { %s6746_s24 = sld [smem:[%s7679_s0 + %s6592_s7]]   ;;  %s6596_s7 = smov 22  }
  0x1c   :  { %7703 = sst [smem:[#allocation74_spill]] %s6736_s27 }
  0x1d   :  { %s6751_s25 = sld [smem:[%s7679_s0 + %s6593_s15]]   ;;  %s6597_s15 = smov 23  }
  0x1e   :  { %s6756_s3 = sld [smem:[%s7679_s0 + %s6594_s22]]   ;;  %s6598_s22 = smov 24  }
  0x1f   :  { %s6761_s20 = sld [smem:[%s7679_s0 + %s6595_s28]]   ;;  %s6599_s28 = smov 25  }
  0x20   :  { %s6766_s27 = sld [smem:[%s7679_s0 + %s6596_s7]]   ;;  %s6600_s7 = smov 26  }
  0x21   :  { %7704 = sst [smem:[#allocation75_spill]] %s6746_s24 }
  0x22   :  { %s6771_s12 = sld [smem:[%s7679_s0 + %s6597_s15]]   ;;  %s6601_s15 = smov 27  }
  0x23   :  { %s6776_s5 = sld [smem:[%s7679_s0 + %s6598_s22]]   ;;  %s6602_s22 = smov 28  }
  0x24   :  { %7705 = sst [smem:[#allocation76_spill]] %s6756_s3 }
  0x25   :  { %s6781_s9 = sld [smem:[%s7679_s0 + %s6599_s28]]   ;;  %s6603_s28 = smov 29  }
  0x26   :  { %7706 = sst [smem:[#allocation77_spill]] %s6766_s27 }
  0x27   :  { %s6786_s27 = sld [smem:[%s7679_s0 + %s6600_s7]]   ;;  %s6604_s7 = smov 30  }
  0x28   :  { %s6791_s3 = sld [smem:[%s7679_s0 + %s6601_s15]]   ;;  %s6605_s15 = smov 31  }
  0x29   :  { %7707 = sst [smem:[#allocation78_spill]] %s6776_s5 }
  0x2a   :  { %s6796_s5 = sld [smem:[%s7679_s0 + %s6602_s22]]   ;;  %s6606_s22 = smov 32  }
  0x2b   :  { %s6801_s24 = sld [smem:[%s7679_s0 + %s6603_s28]]   ;;  %s6607_s28 = smov 33  }
  0x2c   :  { %s6811_s6 = sld [smem:[%s7679_s0 + %s6605_s15]]  }
  0x2d   :  { %7708 = sst [smem:[#allocation79_spill]] %s6786_s27 }
  0x2e   :  { %s6806_s27 = sld [smem:[%s7679_s0 + %s6604_s7]]   ;;  %s6608_s7 = smov 34  }
  0x30   :  { %7709 = sst [smem:[#allocation80_spill]] %s6796_s5 }
  0x31   :  { %7710 = sst [smem:[#allocation81_spill]] %s6801_s24 }
  0x32   :  { %s6816_s5 = sld [smem:[%s7679_s0 + %s6606_s22]]  }
  0x33   :  { %s6821_s24 = sld [smem:[%s7679_s0 + %s6607_s28]]  }
  0x34   :  { %7711 = sst [smem:[#allocation82_spill]] %s6806_s27 }
  0x35   :  { %s6826_s27 = sld [smem:[%s7679_s0 + %s6608_s7]]  }
  0x36   :  { %74 = vsyncpa [#allocation8], 0 }
  0x37   :  { %75 = vsyncpa [#allocation10], 0 }
  0x38   :  { %76 = vsyncpa [#allocation13], 0 }
  0x39   :  { %77 = vsyncpa [#allocation16], 0 }
  0x3a   :  { %78 = vsyncpa [#allocation19], 0 }
  0x3b   :  { %79 = vsyncpa [#allocation22], 0 }
  0x3c   :  { %80 = vsyncpa [#allocation25], 0 }
  0x3d   :  { %81 = vsyncpa [#allocation28], 0 }
  0x3e   :  { %82 = vsyncpa [#allocation31], 0 }
  0x3f   :  { %83 = vsyncpa [#allocation34], 0 }
  0x40   :  { %84 = vsyncpa [#allocation37], 0 }
  0x41   :  { %85 = vsyncpa [#allocation40], 0  ;;  %s6609_s15 = smov [#allocation9]   ;;  %s6015_s0 = scalar_lea.hbm %s6671_s17, 512 }
  0x42   :  { %s107_s16 = sshll.u32 %s6609_s15, 4  ;;  %p6016_p0 = scmp.ne.s32.totalorder %s6671_s17, %s6015_s0  ;;  %s108_s16 = int_to_ptr.vmem [resolvable:$true] %s107_s16 }
  0x43   :  { %p6019_p1 = scmp.lt.u32.totalorder %s6015_s0, %s6671_s17 }
  0x45   :  { %p6021_p2 = pnand %p6019_p1, %p6016_p0 }
  0x47   :  { %6024 = shalt.err (!%p6021_p2)
}
  0x48   :  { %s6025_s18 = scalar_lea.vmem %s108_s16, 512  ;;  %p6030_p4 = scmp.lt.s32.totalorder %s108_s16, %s108_s16 }
  0x49   :  { %p6026_p3 = scmp.ne.s32.totalorder %s108_s16, %s6025_s18  ;;  %p6031_p5 = scmp.lt.s32.totalorder %s6025_s18, %s6025_s18 }
  0x4b   :  { %p6032_p6 = por %p6031_p5, %p6030_p4 }
  0x4d   :  { %p6033_p7 = pnand %p6032_p6, %p6026_p3 }
  0x4f   :  { %6036 = shalt.err (!%p6033_p7)
}
  0x50   :  { %s6610_s22 = smov 256   ;;  %s6611_s23 = smov 16  }
  0x51   :  { %113 = dma.hbm_to_vmem [thread:$0]  %s6671_s17, 512, %s108_s16, [#allocation10], %s6610_s22, %s6610_s22, %s6611_s23  }
  0x52   :  { %s6612_s26 = smov [#allocation12]   ;;  %s6613_s1 = smov [#allocation15]  }
  0x53   :  { %s133_s28 = sshll.u32 %s6612_s26, 4  ;;  %s159_s2 = sshll.u32 %s6613_s1, 4  ;;  %s134_s28 = int_to_ptr.vmem [resolvable:$true] %s133_s28  ;;  %s160_s2 = int_to_ptr.vmem [resolvable:$true] %s159_s2 }
  0x54   :  { %s6037_s7 = scalar_lea.hbm %s6686_s29, 4096 }
  0x55   :  { %p6038_p8 = scmp.ne.s32.totalorder %s6686_s29, %s6037_s7  ;;  %p6041_p9 = scmp.lt.u32.totalorder %s6037_s7, %s6686_s29 }
  0x57   :  { %p6043_p10 = pnand %p6041_p9, %p6038_p8 }
  0x59   :  { %6046 = shalt.err (!%p6043_p10)
}
  0x5a   :  { %s6047_s10 = scalar_lea.vmem %s134_s28, 4096  ;;  %p6052_p12 = scmp.lt.s32.totalorder %s134_s28, %s134_s28 }
  0x5b   :  { %p6048_p11 = scmp.ne.s32.totalorder %s134_s28, %s6047_s10  ;;  %p6053_p13 = scmp.lt.s32.totalorder %s6047_s10, %s6047_s10 }
  0x5d   :  { %p6054_p0 = por %p6053_p13, %p6052_p12 }
  0x5f   :  { %p6055_p1 = pnand %p6054_p0, %p6048_p11 }
  0x61   :  { %6058 = shalt.err (!%p6055_p1)
}
  0x62   :  { %s6614_s11 = smov 128   ;;  %s6615_s17 = smov 8  }
  0x63   :  { %139 = dma.hbm_to_vmem [thread:$0]  %s6686_s29, 4096, %s134_s28, [#allocation13], %s6614_s11, %s6614_s11, %s6615_s17  }
  0x64   :  { %s6059_s15 = scalar_lea.hbm %s6701_s14, 2048 }
  0x65   :  { %p6060_p2 = scmp.ne.s32.totalorder %s6701_s14, %s6059_s15  ;;  %p6063_p3 = scmp.lt.u32.totalorder %s6059_s15, %s6701_s14 }
  0x67   :  { %p6065_p4 = pnand %p6063_p3, %p6060_p2 }
  0x69   :  { %6068 = shalt.err (!%p6065_p4)
}
  0x6a   :  { %s6069_s16 = scalar_lea.vmem %s160_s2, 2048  ;;  %p6074_p6 = scmp.lt.s32.totalorder %s160_s2, %s160_s2 }
  0x6b   :  { %p6070_p5 = scmp.ne.s32.totalorder %s160_s2, %s6069_s16  ;;  %p6075_p7 = scmp.lt.s32.totalorder %s6069_s16, %s6069_s16 }
  0x6d   :  { %p6076_p8 = por %p6075_p7, %p6074_p6 }
  0x6f   :  { %p6077_p9 = pnand %p6076_p8, %p6070_p5 }
  0x71   :  { %6080 = shalt.err (!%p6077_p9)
}
  0x72   :  { %165 = dma.hbm_to_vmem [thread:$0]  %s6701_s14, 2048, %s160_s2, [#allocation16], %s6614_s11, %s6614_s11, %s6615_s17  }
  0x73   :  { %s6616_s29 = smov [#allocation18]   ;;  %s6617_s18 = smov [#allocation21]  }
  0x74   :  { %s185_s0 = sshll.u32 %s6616_s29, 4  ;;  %s214_s26 = sshll.u32 %s6617_s18, 4  ;;  %s186_s0 = int_to_ptr.vmem [resolvable:$true] %s185_s0  ;;  %s215_s26 = int_to_ptr.vmem [resolvable:$true] %s214_s26 }
  0x75   :  { %s6081_s28 = scalar_lea.hbm %s6716_s30, 1024 }
  0x76   :  { %p6082_p10 = scmp.ne.s32.totalorder %s6716_s30, %s6081_s28  ;;  %p6085_p11 = scmp.lt.u32.totalorder %s6081_s28, %s6716_s30 }
  0x78   :  { %p6087_p12 = pnand %p6085_p11, %p6082_p10 }
  0x7a   :  { %6090 = shalt.err (!%p6087_p12)
}
  0x7b   :  { %s6091_s1 = scalar_lea.vmem %s186_s0, 1024  ;;  %p6096_p0 = scmp.lt.s32.totalorder %s186_s0, %s186_s0 }
  0x7c   :  { %p6092_p13 = scmp.ne.s32.totalorder %s186_s0, %s6091_s1  ;;  %p6097_p1 = scmp.lt.s32.totalorder %s6091_s1, %s6091_s1 }
  0x7e   :  { %p6098_p2 = por %p6097_p1, %p6096_p0 }
  0x80   :  { %p6099_p3 = pnand %p6098_p2, %p6092_p13 }
  0x82   :  { %6102 = shalt.err (!%p6099_p3)
}
  0x83   :  { %191 = dma.hbm_to_vmem [thread:$0]  %s6716_s30, 1024, %s186_s0, [#allocation19], %s6614_s11, %s6614_s11, %s6615_s17  }
  0x84   :  { %s6103_s14 = scalar_lea.hbm %s6741_s4, 16 }
  0x85   :  { %p6104_p4 = scmp.ne.s32.totalorder %s6741_s4, %s6103_s14  ;;  %p6107_p5 = scmp.lt.u32.totalorder %s6103_s14, %s6741_s4 }
  0x87   :  { %p6109_p6 = pnand %p6107_p5, %p6104_p4 }
  0x89   :  { %6112 = shalt.err (!%p6109_p6)
}
  0x8a   :  { %s6113_s2 = scalar_lea.vmem %s215_s26, 16  ;;  %s6117_s7 = scalar_lea.vmem %s215_s26, 32 }
  0x8b   :  { %p6114_p7 = scmp.ne.s32.totalorder %s215_s26, %s6113_s2  ;;  %p6118_p8 = scmp.lt.s32.totalorder %s215_s26, %s215_s26 }
  0x8c   :  { %p6119_p9 = scmp.lt.s32.totalorder %s6117_s7, %s6113_s2 }
  0x8e   :  { %p6120_p10 = por %p6119_p9, %p6118_p8 }
  0x90   :  { %p6121_p11 = pnand %p6120_p10, %p6114_p7 }
  0x92   :  { %6124 = shalt.err (!%p6121_p11)
}
  0x93   :  { %217 = dma.hbm_to_vmem [thread:$0]  %s6741_s4, 16, %s215_s26, [#allocation22]  }
  0x94   :  { %s6618_s30 = smov [#allocation24]   ;;  %s6619_s15 = smov [#allocation27]  }
  0x95   :  { %s236_s10 = sshll.u32 %s6618_s30, 4  ;;  %s256_s16 = sshll.u32 %s6619_s15, 4  ;;  %s237_s10 = int_to_ptr.vmem [resolvable:$true] %s236_s10  ;;  %s257_s16 = int_to_ptr.vmem [resolvable:$true] %s256_s16 }
  0x96   :  { %s6125_s29 = scalar_lea.hbm %s6751_s25, 16 }
  0x97   :  { %p6126_p12 = scmp.ne.s32.totalorder %s6751_s25, %s6125_s29  ;;  %p6129_p13 = scmp.lt.u32.totalorder %s6125_s29, %s6751_s25 }
  0x99   :  { %p6131_p0 = pnand %p6129_p13, %p6126_p12 }
  0x9b   :  { %6134 = shalt.err (!%p6131_p0)
}
  0x9c   :  { %s6135_s0 = scalar_lea.vmem %s237_s10, 16  ;;  %s6139_s18 = scalar_lea.vmem %s237_s10, 32 }
  0x9d   :  { %p6136_p1 = scmp.ne.s32.totalorder %s237_s10, %s6135_s0  ;;  %p6140_p2 = scmp.lt.s32.totalorder %s237_s10, %s237_s10 }
  0x9e   :  { %p6141_p3 = scmp.lt.s32.totalorder %s6139_s18, %s6135_s0 }
  0xa0   :  { %p6142_p4 = por %p6141_p3, %p6140_p2 }
  0xa2   :  { %p6143_p5 = pnand %p6142_p4, %p6136_p1 }
  0xa4   :  { %6146 = shalt.err (!%p6143_p5)
}
  0xa5   :  { %239 = dma.hbm_to_vmem [thread:$0]  %s6751_s25, 16, %s237_s10, [#allocation25]  }
  0xa6   :  { %s6147_s4 = scalar_lea.hbm %s6761_s20, 16 }
  0xa7   :  { %p6148_p6 = scmp.ne.s32.totalorder %s6761_s20, %s6147_s4  ;;  %p6151_p7 = scmp.lt.u32.totalorder %s6147_s4, %s6761_s20 }
  0xa9   :  { %p6153_p8 = pnand %p6151_p7, %p6148_p6 }
  0xab   :  { %6156 = shalt.err (!%p6153_p8)
}
  0xac   :  { %s6157_s26 = scalar_lea.vmem %s257_s16, 16  ;;  %s6161_s28 = scalar_lea.vmem %s257_s16, 32 }
  0xad   :  { %p6158_p9 = scmp.ne.s32.totalorder %s257_s16, %s6157_s26  ;;  %p6162_p10 = scmp.lt.s32.totalorder %s257_s16, %s257_s16 }
  0xae   :  { %p6163_p11 = scmp.lt.s32.totalorder %s6161_s28, %s6157_s26 }
  0xb0   :  { %p6164_p12 = por %p6163_p11, %p6162_p10 }
  0xb2   :  { %p6165_p13 = pnand %p6164_p12, %p6158_p9 }
  0xb4   :  { %6168 = shalt.err (!%p6165_p13)
}
  0xb5   :  { %259 = dma.hbm_to_vmem [thread:$0]  %s6761_s20, 16, %s257_s16, [#allocation28]  }
  0xb6   :  { %s6620_s25 = smov [#allocation30]   ;;  %s6621_s14 = smov [#allocation33]  }
  0xb7   :  { %s276_s1 = sshll.u32 %s6620_s25, 4  ;;  %s296_s2 = sshll.u32 %s6621_s14, 4  ;;  %s277_s1 = int_to_ptr.vmem [resolvable:$true] %s276_s1  ;;  %s297_s2 = int_to_ptr.vmem [resolvable:$true] %s296_s2 }
  0xb8   :  { %s6169_s7 = scalar_lea.hbm %s6771_s12, 16 }
  0xb9   :  { %p6170_p0 = scmp.ne.s32.totalorder %s6771_s12, %s6169_s7  ;;  %p6173_p1 = scmp.lt.u32.totalorder %s6169_s7, %s6771_s12 }
  0xbb   :  { %p6175_p2 = pnand %p6173_p1, %p6170_p0 }
  0xbd   :  { %6178 = shalt.err (!%p6175_p2)
}
  0xbe   :  { %s6179_s30 = scalar_lea.vmem %s277_s1, 16  ;;  %s6183_s10 = scalar_lea.vmem %s277_s1, 32 }
  0xbf   :  { %p6180_p3 = scmp.ne.s32.totalorder %s277_s1, %s6179_s30  ;;  %p6184_p4 = scmp.lt.s32.totalorder %s277_s1, %s277_s1 }
  0xc0   :  { %p6185_p5 = scmp.lt.s32.totalorder %s6183_s10, %s6179_s30 }
  0xc2   :  { %p6186_p6 = por %p6185_p5, %p6184_p4 }
  0xc4   :  { %p6187_p7 = pnand %p6186_p6, %p6180_p3 }
  0xc6   :  { %6190 = shalt.err (!%p6187_p7)
}
  0xc7   :  { %279 = dma.hbm_to_vmem [thread:$0]  %s6771_s12, 16, %s277_s1, [#allocation31]  }
  0xc8   :  { %s6191_s20 = scalar_lea.hbm %s6781_s9, 16 }
  0xc9   :  { %p6192_p8 = scmp.ne.s32.totalorder %s6781_s9, %s6191_s20  ;;  %p6195_p9 = scmp.lt.u32.totalorder %s6191_s20, %s6781_s9 }
  0xcb   :  { %p6197_p10 = pnand %p6195_p9, %p6192_p8 }
  0xcd   :  { %6200 = shalt.err (!%p6197_p10)
}
  0xce   :  { %s6201_s15 = scalar_lea.vmem %s297_s2, 16  ;;  %s6205_s16 = scalar_lea.vmem %s297_s2, 32 }
  0xcf   :  { %p6202_p11 = scmp.ne.s32.totalorder %s297_s2, %s6201_s15  ;;  %p6206_p12 = scmp.lt.s32.totalorder %s297_s2, %s297_s2 }
  0xd0   :  { %p6207_p13 = scmp.lt.s32.totalorder %s6205_s16, %s6201_s15 }
  0xd2   :  { %p6208_p0 = por %p6207_p13, %p6206_p12 }
  0xd4   :  { %p6209_p1 = pnand %p6208_p0, %p6202_p11 }
  0xd6   :  { %6212 = shalt.err (!%p6209_p1)
}
  0xd7   :  { %299 = dma.hbm_to_vmem [thread:$0]  %s6781_s9, 16, %s297_s2, [#allocation34]  }
  0xd8   :  { %s6622_s12 = smov [#allocation36]   ;;  %s6623_s0 = smov [#allocation7]  }
  0xd9   :  { %s316_s29 = sshll.u32 %s6622_s12, 4  ;;  %s95_s18 = sshll.u32 %s6623_s0, 4  ;;  %s317_s29 = int_to_ptr.vmem [resolvable:$true] %s316_s29  ;;  %s96_s18 = int_to_ptr.vmem [resolvable:$true] %s95_s18 }
  0xda   :  { %s6213_s4 = scalar_lea.hbm %s6791_s3, 16 }
  0xdb   :  { %p6214_p2 = scmp.ne.s32.totalorder %s6791_s3, %s6213_s4  ;;  %p6217_p3 = scmp.lt.u32.totalorder %s6213_s4, %s6791_s3 }
  0xdd   :  { %p6219_p4 = pnand %p6217_p3, %p6214_p2 }
  0xdf   :  { %6222 = shalt.err (!%p6219_p4)
}
  0xe0   :  { %s6223_s26 = scalar_lea.vmem %s317_s29, 16  ;;  %s6227_s28 = scalar_lea.vmem %s317_s29, 32 }
  0xe1   :  { %p6224_p5 = scmp.ne.s32.totalorder %s317_s29, %s6223_s26  ;;  %p6228_p6 = scmp.lt.s32.totalorder %s317_s29, %s317_s29 }
  0xe2   :  { %p6229_p7 = scmp.lt.s32.totalorder %s6227_s28, %s6223_s26 }
  0xe4   :  { %p6230_p8 = por %p6229_p7, %p6228_p6 }
  0xe6   :  { %p6231_p9 = pnand %p6230_p8, %p6224_p5 }
  0xe8   :  { %6234 = shalt.err (!%p6231_p9)
}
  0xe9   :  { %319 = dma.hbm_to_vmem [thread:$0]  %s6791_s3, 16, %s317_s29, [#allocation37]  }
  0xea   :  { %s6235_s9 = scalar_lea.hbm %s6666_s13, 256 }
  0xeb   :  { %p6236_p10 = scmp.ne.s32.totalorder %s6666_s13, %s6235_s9  ;;  %p6239_p11 = scmp.lt.u32.totalorder %s6235_s9, %s6666_s13 }
  0xed   :  { %p6241_p12 = pnand %p6239_p11, %p6236_p10 }
  0xef   :  { %6244 = shalt.err (!%p6241_p12)
}
  0xf0   :  { %s6245_s25 = scalar_lea.vmem %s96_s18, 256  ;;  %p6250_p0 = scmp.lt.s32.totalorder %s96_s18, %s96_s18 }
  0xf1   :  { %p6246_p13 = scmp.ne.s32.totalorder %s96_s18, %s6245_s25  ;;  %p6251_p1 = scmp.lt.s32.totalorder %s6245_s25, %s6245_s25 }
  0xf3   :  { %p6252_p2 = por %p6251_p1, %p6250_p0 }
  0xf5   :  { %p6253_p3 = pnand %p6252_p2, %p6246_p13 }
  0xf7   :  { %6256 = shalt.err (!%p6253_p3)
}
  0xf8   :  { %101 = dma.hbm_to_vmem [thread:$0]  %s6666_s13, 256, %s96_s18, [#allocation8], %s6614_s11, %s6614_s11, %s6615_s17  }
  0xf9   :  { %s6624_s3 = smov [#allocation11]   ;;  %s6625_s14 = smov [#allocation14]  }
  0xfa   :  { %s119_s1 = sshll.u32 %s6624_s3, 4  ;;  %s147_s2 = sshll.u32 %s6625_s14, 4  ;;  %s120_s1 = int_to_ptr.vmem [resolvable:$true] %s119_s1  ;;  %s148_s2 = int_to_ptr.vmem [resolvable:$true] %s147_s2 }
  0xfb   :  { %s6257_s7 = scalar_lea.hbm %s6676_s21, 4096 }
  0xfc   :  { %p6258_p4 = scmp.ne.s32.totalorder %s6676_s21, %s6257_s7  ;;  %p6261_p5 = scmp.lt.u32.totalorder %s6257_s7, %s6676_s21 }
  0xfe   :  { %p6263_p6 = pnand %p6261_p5, %p6258_p4 }
 0x100   :  { %6266 = shalt.err (!%p6263_p6)
}
 0x101   :  { %s6267_s30 = scalar_lea.vmem %s120_s1, 4096  ;;  %p6272_p8 = scmp.lt.s32.totalorder %s120_s1, %s120_s1 }
 0x102   :  { %p6268_p7 = scmp.ne.s32.totalorder %s120_s1, %s6267_s30  ;;  %p6273_p9 = scmp.lt.s32.totalorder %s6267_s30, %s6267_s30 }
 0x104   :  { %p6274_p10 = por %p6273_p9, %p6272_p8 }
 0x106   :  { %p6275_p11 = pnand %p6274_p10, %p6268_p7 }
 0x108   :  { %6278 = shalt.err (!%p6275_p11)
}
 0x109   :  { %125 = dma.hbm_to_vmem [thread:$0]  %s6676_s21, 4096, %s120_s1, [#allocation10], %s6610_s22, %s6610_s22, %s6611_s23  }
 0x10a   :  { %s6279_s13 = scalar_lea.hbm %s6696_s8, 512 }
 0x10b   :  { %p6280_p12 = scmp.ne.s32.totalorder %s6696_s8, %s6279_s13  ;;  %p6283_p13 = scmp.lt.u32.totalorder %s6279_s13, %s6696_s8 }
 0x10d   :  { %p6285_p0 = pnand %p6283_p13, %p6280_p12 }
 0x10f   :  { %6288 = shalt.err (!%p6285_p0)
}
 0x110   :  { %s6289_s10 = scalar_lea.vmem %s148_s2, 512  ;;  %p6294_p2 = scmp.lt.s32.totalorder %s148_s2, %s148_s2 }
 0x111   :  { %p6290_p1 = scmp.ne.s32.totalorder %s148_s2, %s6289_s10  ;;  %p6295_p3 = scmp.lt.s32.totalorder %s6289_s10, %s6289_s10 }
 0x113   :  { %p6296_p4 = por %p6295_p3, %p6294_p2 }
 0x115   :  { %p6297_p5 = pnand %p6296_p4, %p6290_p1 }
 0x117   :  { %6300 = shalt.err (!%p6297_p5)
}
 0x118   :  { %153 = dma.hbm_to_vmem [thread:$0]  %s6696_s8, 512, %s148_s2, [#allocation13], %s6610_s22, %s6610_s22, %s6611_s23  }
 0x119   :  { %s6626_s21 = smov [#allocation17]   ;;  %s6627_s15 = smov [#allocation20]  }
 0x11a   :  { %s171_s20 = sshll.u32 %s6626_s21, 4  ;;  %s198_s16 = sshll.u32 %s6627_s15, 4  ;;  %s172_s20 = int_to_ptr.vmem [resolvable:$true] %s171_s20  ;;  %s199_s16 = int_to_ptr.vmem [resolvable:$true] %s198_s16 }
 0x11b   :  { %s6301_s12 = scalar_lea.hbm %s6706_s19, 1024 }
 0x11c   :  { %p6302_p6 = scmp.ne.s32.totalorder %s6706_s19, %s6301_s12  ;;  %p6305_p7 = scmp.lt.u32.totalorder %s6301_s12, %s6706_s19 }
 0x11e   :  { %p6307_p8 = pnand %p6305_p7, %p6302_p6 }
 0x120   :  { %6310 = shalt.err (!%p6307_p8)
}
 0x121   :  { %s6311_s29 = scalar_lea.vmem %s172_s20, 1024  ;;  %p6316_p10 = scmp.lt.s32.totalorder %s172_s20, %s172_s20 }
 0x122   :  { %p6312_p9 = scmp.ne.s32.totalorder %s172_s20, %s6311_s29  ;;  %p6317_p11 = scmp.lt.s32.totalorder %s6311_s29, %s6311_s29 }
 0x124   :  { %p6318_p12 = por %p6317_p11, %p6316_p10 }
 0x126   :  { %p6319_p13 = pnand %p6318_p12, %p6312_p9 }
 0x128   :  { %6322 = shalt.err (!%p6319_p13)
}
 0x129   :  { %s7712_s8 = sld [smem:[#allocation71_spill]] }
 0x12a   :  { %177 = dma.hbm_to_vmem [thread:$0]  %s6706_s19, 1024, %s172_s20, [#allocation16], %s6614_s11, %s6614_s11, %s6615_s17  }
 0x12f   :  { %s6323_s23 = scalar_lea.hbm %s7712_s8, 16 }
 0x130   :  { %p6324_p0 = scmp.ne.s32.totalorder %s7712_s8, %s6323_s23  ;;  %p6327_p1 = scmp.lt.u32.totalorder %s6323_s23, %s7712_s8 }
 0x132   :  { %p6329_p2 = pnand %p6327_p1, %p6324_p0 }
 0x134   :  { %6332 = shalt.err (!%p6329_p2)
}
 0x135   :  { %s6333_s0 = scalar_lea.vmem %s199_s16, 16  ;;  %s6337_s18 = scalar_lea.vmem %s199_s16, 32 }
 0x136   :  { %p6334_p3 = scmp.ne.s32.totalorder %s199_s16, %s6333_s0  ;;  %p6338_p4 = scmp.lt.s32.totalorder %s199_s16, %s199_s16 }
 0x137   :  { %p6339_p5 = scmp.lt.s32.totalorder %s6337_s18, %s6333_s0 }
 0x139   :  { %p6340_p6 = por %p6339_p5, %p6338_p4 }
 0x13b   :  { %p6341_p7 = pnand %p6340_p6, %p6334_p3 }
 0x13d   :  { %6344 = shalt.err (!%p6341_p7)
}
 0x13e   :  { %s7713_s4 = sld [smem:[#allocation75_spill]]  ;;  %s6628_s19 = smov [#allocation23]  }
 0x13f   :  { %201 = dma.hbm_to_vmem [thread:$0]  %s7712_s8, 16, %s199_s16, [#allocation19]  }
 0x140   :  { %s223_s26 = sshll.u32 %s6628_s19, 4  ;;  %s6629_s28 = smov [#allocation26]   ;;  %s224_s26 = int_to_ptr.vmem [resolvable:$true] %s223_s26 }
 0x141   :  { %s246_s9 = sshll.u32 %s6629_s28, 4  ;;  %s247_s9 = int_to_ptr.vmem [resolvable:$true] %s246_s9 }
 0x144   :  { %s6345_s25 = scalar_lea.hbm %s7713_s4, 2048 }
 0x145   :  { %p6346_p8 = scmp.ne.s32.totalorder %s7713_s4, %s6345_s25  ;;  %p6349_p9 = scmp.lt.u32.totalorder %s6345_s25, %s7713_s4 }
 0x147   :  { %p6351_p10 = pnand %p6349_p9, %p6346_p8 }
 0x149   :  { %6354 = shalt.err (!%p6351_p10)
}
 0x14a   :  { %s6355_s3 = scalar_lea.vmem %s224_s26, 2048  ;;  %p6360_p12 = scmp.lt.s32.totalorder %s224_s26, %s224_s26 }
 0x14b   :  { %p6356_p11 = scmp.ne.s32.totalorder %s224_s26, %s6355_s3  ;;  %p6361_p13 = scmp.lt.s32.totalorder %s6355_s3, %s6355_s3 }
 0x14d   :  { %p6362_p0 = por %p6361_p13, %p6360_p12 }
 0x14f   :  { %p6363_p1 = pnand %p6362_p0, %p6356_p11 }
 0x151   :  { %6366 = shalt.err (!%p6363_p1)
}
 0x152   :  { %s7714_s1 = sld [smem:[#allocation76_spill]] }
 0x153   :  { %229 = dma.hbm_to_vmem [thread:$0]  %s7713_s4, 2048, %s224_s26, [#allocation22], %s6614_s11, %s6614_s11, %s6615_s17  }
 0x158   :  { %s6367_s14 = scalar_lea.hbm %s7714_s1, 16 }
 0x159   :  { %p6368_p2 = scmp.ne.s32.totalorder %s7714_s1, %s6367_s14  ;;  %p6371_p3 = scmp.lt.u32.totalorder %s6367_s14, %s7714_s1 }
 0x15b   :  { %p6373_p4 = pnand %p6371_p3, %p6368_p2 }
 0x15d   :  { %6376 = shalt.err (!%p6373_p4)
}
 0x15e   :  { %s6377_s2 = scalar_lea.vmem %s247_s9, 16  ;;  %s6381_s7 = scalar_lea.vmem %s247_s9, 32 }
 0x15f   :  { %p6378_p5 = scmp.ne.s32.totalorder %s247_s9, %s6377_s2  ;;  %p6382_p6 = scmp.lt.s32.totalorder %s247_s9, %s247_s9 }
 0x160   :  { %p6383_p7 = scmp.lt.s32.totalorder %s6381_s7, %s6377_s2 }
 0x162   :  { %p6384_p8 = por %p6383_p7, %p6382_p6 }
 0x164   :  { %p6385_p9 = pnand %p6384_p8, %p6378_p5 }
 0x166   :  { %6388 = shalt.err (!%p6385_p9)
}
 0x167   :  { %s7715_s30 = sld [smem:[#allocation77_spill]]  ;;  %s6630_s13 = smov [#allocation29]  }
 0x168   :  { %249 = dma.hbm_to_vmem [thread:$0]  %s7714_s1, 16, %s247_s9, [#allocation25]  }
 0x169   :  { %s266_s10 = sshll.u32 %s6630_s13, 4  ;;  %s6631_s21 = smov [#allocation32]   ;;  %s267_s10 = int_to_ptr.vmem [resolvable:$true] %s266_s10 }
 0x16a   :  { %s286_s20 = sshll.u32 %s6631_s21, 4  ;;  %s287_s20 = int_to_ptr.vmem [resolvable:$true] %s286_s20 }
 0x16d   :  { %s6389_s15 = scalar_lea.hbm %s7715_s30, 256 }
 0x16e   :  { %p6390_p10 = scmp.ne.s32.totalorder %s7715_s30, %s6389_s15  ;;  %p6393_p11 = scmp.lt.u32.totalorder %s6389_s15, %s7715_s30 }
 0x170   :  { %p6395_p12 = pnand %p6393_p11, %p6390_p10 }
 0x172   :  { %6398 = shalt.err (!%p6395_p12)
}
 0x173   :  { %s6399_s16 = scalar_lea.vmem %s267_s10, 256  ;;  %p6404_p0 = scmp.lt.s32.totalorder %s267_s10, %s267_s10 }
 0x174   :  { %p6400_p13 = scmp.ne.s32.totalorder %s267_s10, %s6399_s16  ;;  %p6405_p1 = scmp.lt.s32.totalorder %s6399_s16, %s6399_s16 }
 0x176   :  { %p6406_p2 = por %p6405_p1, %p6404_p0 }
 0x178   :  { %p6407_p3 = pnand %p6406_p2, %p6400_p13 }
 0x17a   :  { %6410 = shalt.err (!%p6407_p3)
}
 0x17b   :  { %s7716_s12 = sld [smem:[#allocation78_spill]] }
 0x17c   :  { %269 = dma.hbm_to_vmem [thread:$0]  %s7715_s30, 256, %s267_s10, [#allocation28]  }
 0x181   :  { %s6411_s29 = scalar_lea.hbm %s7716_s12, 16 }
 0x182   :  { %p6412_p4 = scmp.ne.s32.totalorder %s7716_s12, %s6411_s29  ;;  %p6415_p5 = scmp.lt.u32.totalorder %s6411_s29, %s7716_s12 }
 0x184   :  { %p6417_p6 = pnand %p6415_p5, %p6412_p4 }
 0x186   :  { %6420 = shalt.err (!%p6417_p6)
}
 0x187   :  { %s6421_s8 = scalar_lea.vmem %s287_s20, 16  ;;  %s6425_s23 = scalar_lea.vmem %s287_s20, 32 }
 0x188   :  { %p6422_p7 = scmp.ne.s32.totalorder %s287_s20, %s6421_s8  ;;  %p6426_p8 = scmp.lt.s32.totalorder %s287_s20, %s287_s20 }
 0x189   :  { %p6427_p9 = scmp.lt.s32.totalorder %s6425_s23, %s6421_s8 }
 0x18b   :  { %p6428_p10 = por %p6427_p9, %p6426_p8 }
 0x18d   :  { %p6429_p11 = pnand %p6428_p10, %p6422_p7 }
 0x18f   :  { %6432 = shalt.err (!%p6429_p11)
}
 0x190   :  { %s7717_s0 = sld [smem:[#allocation79_spill]]  ;;  %s6632_s18 = smov [#allocation35]  }
 0x191   :  { %289 = dma.hbm_to_vmem [thread:$0]  %s7716_s12, 16, %s287_s20, [#allocation31]  }
 0x192   :  { %s306_s4 = sshll.u32 %s6632_s18, 4  ;;  %s6633_s19 = smov [#allocation38]   ;;  %s307_s4 = int_to_ptr.vmem [resolvable:$true] %s306_s4 }
 0x193   :  { %s325_s26 = sshll.u32 %s6633_s19, 4  ;;  %s326_s26 = int_to_ptr.vmem [resolvable:$true] %s325_s26 }
 0x196   :  { %s6433_s28 = scalar_lea.hbm %s7717_s0, 64 }
 0x197   :  { %p6434_p12 = scmp.ne.s32.totalorder %s7717_s0, %s6433_s28  ;;  %p6437_p13 = scmp.lt.u32.totalorder %s6433_s28, %s7717_s0 }
 0x199   :  { %p6439_p0 = pnand %p6437_p13, %p6434_p12 }
 0x19b   :  { %6442 = shalt.err (!%p6439_p0)
}
 0x19c   :  { %s6443_s9 = scalar_lea.vmem %s307_s4, 64  ;;  %p6448_p2 = scmp.lt.s32.totalorder %s307_s4, %s307_s4 }
 0x19d   :  { %p6444_p1 = scmp.ne.s32.totalorder %s307_s4, %s6443_s9  ;;  %p6449_p3 = scmp.lt.s32.totalorder %s6443_s9, %s6443_s9 }
 0x19f   :  { %p6450_p4 = por %p6449_p3, %p6448_p2 }
 0x1a1   :  { %p6451_p5 = pnand %p6450_p4, %p6444_p1 }
 0x1a3   :  { %6454 = shalt.err (!%p6451_p5)
}
 0x1a4   :  { %s7718_s25 = sld [smem:[#allocation80_spill]] }
 0x1a5   :  { %309 = dma.hbm_to_vmem [thread:$0]  %s7717_s0, 64, %s307_s4, [#allocation34]  }
 0x1aa   :  { %s6455_s3 = scalar_lea.hbm %s7718_s25, 2048 }
 0x1ab   :  { %p6456_p6 = scmp.ne.s32.totalorder %s7718_s25, %s6455_s3  ;;  %p6459_p7 = scmp.lt.u32.totalorder %s6455_s3, %s7718_s25 }
 0x1ad   :  { %p6461_p8 = pnand %p6459_p7, %p6456_p6 }
 0x1af   :  { %6464 = shalt.err (!%p6461_p8)
}
 0x1b0   :  { %s6465_s1 = scalar_lea.vmem %s326_s26, 2048  ;;  %p6470_p10 = scmp.lt.s32.totalorder %s326_s26, %s326_s26 }
 0x1b1   :  { %p6466_p9 = scmp.ne.s32.totalorder %s326_s26, %s6465_s1  ;;  %p6471_p11 = scmp.lt.s32.totalorder %s6465_s1, %s6465_s1 }
 0x1b3   :  { %p6472_p12 = por %p6471_p11, %p6470_p10 }
 0x1b5   :  { %p6473_p13 = pnand %p6472_p12, %p6466_p9 }
 0x1b7   :  { %6476 = shalt.err (!%p6473_p13)
}
 0x1b8   :  { %s7719_s14 = sld [smem:[#allocation81_spill]]  ;;  %s6634_s2 = smov [#allocation39]  }
 0x1b9   :  { %331 = dma.hbm_to_vmem [thread:$0]  %s7718_s25, 2048, %s326_s26, [#allocation37], %s6614_s11, %s6614_s11, %s6615_s17  }
 0x1ba   :  { %s338_s7 = sshll.u32 %s6634_s2, 4  ;;  %s339_s7 = int_to_ptr.vmem [resolvable:$true] %s338_s7 }
 0x1be   :  { %s6477_s30 = scalar_lea.hbm %s7719_s14, 16 }
 0x1bf   :  { %p6478_p0 = scmp.ne.s32.totalorder %s7719_s14, %s6477_s30  ;;  %p6481_p1 = scmp.lt.u32.totalorder %s6477_s30, %s7719_s14 }
 0x1c1   :  { %p6483_p2 = pnand %p6481_p1, %p6478_p0 }
 0x1c3   :  { %6486 = shalt.err (!%p6483_p2)
}
 0x1c4   :  { %s6487_s13 = scalar_lea.vmem %s339_s7, 16  ;;  %s6491_s10 = scalar_lea.vmem %s339_s7, 32 }
 0x1c5   :  { %p6488_p3 = scmp.ne.s32.totalorder %s339_s7, %s6487_s13  ;;  %p6492_p4 = scmp.lt.s32.totalorder %s339_s7, %s339_s7 }
 0x1c6   :  { %p6493_p5 = scmp.lt.s32.totalorder %s6491_s10, %s6487_s13 }
 0x1c8   :  { %p6494_p6 = por %p6493_p5, %p6492_p4 }
 0x1ca   :  { %p6495_p7 = pnand %p6494_p6, %p6488_p3 }
 0x1cc   :  { %6498 = shalt.err (!%p6495_p7)
}
 0x1cd   :  { %341 = dma.hbm_to_vmem [thread:$0]  %s7719_s14, 16, %s339_s7, [#allocation40]  }
 0x1ce   :  { %6543 = dma.done.wait [#allocation8], 256  }
 0x1cf   :  { %6544 = vsyncadd [#allocation8], 4294967040 }
 0x1d0   :  { %6545 = dma.done.wait [#allocation10], 4608  }
 0x1d1   :  { %6546 = vsyncadd [#allocation10], 4294962688 }
 0x1d2   :  { %6547 = dma.done.wait [#allocation13], 4608  }
 0x1d3   :  { %6548 = vsyncadd [#allocation13], 4294962688 }
 0x1d4   :  { %6549 = dma.done.wait [#allocation16], 3072  }
 0x1d5   :  { %6550 = vsyncadd [#allocation16], 4294964224 }
 0x1d6   :  { %6551 = dma.done.wait [#allocation19], 1040  }
 0x1d7   :  { %6552 = vsyncadd [#allocation19], 4294966256 }
 0x1d8   :  { %6553 = dma.done.wait [#allocation22], 2064  }
 0x1d9   :  { %6554 = vsyncadd [#allocation22], 4294965232 }
 0x1da   :  { %6555 = dma.done.wait [#allocation25], 32  }
 0x1db   :  { %6556 = vsyncadd [#allocation25], 4294967264 }
 0x1dc   :  { %6557 = dma.done.wait [#allocation28], 272  }
 0x1dd   :  { %6558 = vsyncadd [#allocation28], 4294967024 }
 0x1de   :  { %6559 = dma.done.wait [#allocation31], 32  }
 0x1df   :  { %6560 = vsyncadd [#allocation31], 4294967264 }
 0x1e0   :  { %6561 = dma.done.wait [#allocation34], 80  }
 0x1e1   :  { %6562 = vsyncadd [#allocation34], 4294967216 }
 0x1e2   :  { %6563 = dma.done.wait [#allocation37], 2064  }
 0x1e3   :  { %6564 = vsyncadd [#allocation37], 4294965232 }
 0x1e4   :  { %6565 = dma.done.wait [#allocation40], 16  }
 0x1e5   :  { %6566 = vsyncadd [#allocation40], 4294967280  ;;  %s7720_s17 = sld [smem:[#allocation82_spill]] }
 0x1eb   :  { %v426_v0 = vld [vmem:[%s7720_s17] sm:$0xf]  ;;  %v430_v2 = vld [vmem:[%s7720_s17 + $0x4] sm:$0xf]  ;;  %v434_v4 = vld [vmem:[%s7720_s17 + $0x8] sm:$0xf] }
 0x1ec   :  { %v428_v1 = vld [vmem:[%s7720_s17 + $0x40] sm:$0xf]  ;;  %427 = vst [vmem:[#allocation2] sm:$0xf] %v426_v0  ;;  %431 = vst [vmem:[#allocation2 + $0x8] sm:$0xf] %v430_v2 }
 0x1ed   :  { %429 = vst [vmem:[#allocation2 + $0x4] sm:$0xf] %v428_v1  ;;  %v432_v3 = vld [vmem:[%s7720_s17 + $0x44] sm:$0xf]  ;;  %v436_v5 = vld [vmem:[%s7720_s17 + $0x48] sm:$0xf] }
 0x1ee   :  { %433 = vst [vmem:[#allocation2 + $0xc] sm:$0xf] %v432_v3  ;;  %435 = vst [vmem:[#allocation2 + $0x10] sm:$0xf] %v434_v4  ;;  %v438_v6 = vld [vmem:[%s7720_s17 + $0xc] sm:$0xf] }
 0x1ef   :  { %437 = vst [vmem:[#allocation2 + $0x14] sm:$0xf] %v436_v5  ;;  %v440_v7 = vld [vmem:[%s7720_s17 + $0x4c] sm:$0xf]  ;;  %v442_v8 = vld [vmem:[%s7720_s17 + $0x10] sm:$0xf] }
 0x1f0   :  { %439 = vst [vmem:[#allocation2 + $0x18] sm:$0xf] %v438_v6  ;;  %441 = vst [vmem:[#allocation2 + $0x1c] sm:$0xf] %v440_v7  ;;  %v444_v9 = vld [vmem:[%s7720_s17 + $0x50] sm:$0xf] }
 0x1f1   :  { %443 = vst [vmem:[#allocation2 + $0x20] sm:$0xf] %v442_v8  ;;  %v446_v10 = vld [vmem:[%s7720_s17 + $0x14] sm:$0xf]  ;;  %445 = vst [vmem:[#allocation2 + $0x24] sm:$0xf] %v444_v9 }
 0x1f2   :  { %v448_v11 = vld [vmem:[%s7720_s17 + $0x54] sm:$0xf]  ;;  %447 = vst [vmem:[#allocation2 + $0x28] sm:$0xf] %v446_v10  ;;  %v450_v12 = vld [vmem:[%s7720_s17 + $0x18] sm:$0xf] }
 0x1f3   :  { %449 = vst [vmem:[#allocation2 + $0x2c] sm:$0xf] %v448_v11  ;;  %v452_v13 = vld [vmem:[%s7720_s17 + $0x58] sm:$0xf]  ;;  %v454_v14 = vld [vmem:[%s7720_s17 + $0x1c] sm:$0xf] }
 0x1f4   :  { %451 = vst [vmem:[#allocation2 + $0x30] sm:$0xf] %v450_v12  ;;  %453 = vst [vmem:[#allocation2 + $0x34] sm:$0xf] %v452_v13  ;;  %v456_v15 = vld [vmem:[%s7720_s17 + $0x5c] sm:$0xf] }
 0x1f5   :  { %455 = vst [vmem:[#allocation2 + $0x38] sm:$0xf] %v454_v14  ;;  %v458_v16 = vld [vmem:[%s7720_s17 + $0x20] sm:$0xf]  ;;  %457 = vst [vmem:[#allocation2 + $0x3c] sm:$0xf] %v456_v15 }
 0x1f6   :  { %v460_v17 = vld [vmem:[%s7720_s17 + $0x60] sm:$0xf]  ;;  %459 = vst [vmem:[#allocation2 + $0x40] sm:$0xf] %v458_v16  ;;  %v462_v18 = vld [vmem:[%s7720_s17 + $0x24] sm:$0xf] }
 0x1f7   :  { %461 = vst [vmem:[#allocation2 + $0x44] sm:$0xf] %v460_v17  ;;  %v464_v19 = vld [vmem:[%s7720_s17 + $0x64] sm:$0xf]  ;;  %v466_v20 = vld [vmem:[%s7720_s17 + $0x28] sm:$0xf] }
 0x1f8   :  { %463 = vst [vmem:[#allocation2 + $0x48] sm:$0xf] %v462_v18  ;;  %465 = vst [vmem:[#allocation2 + $0x4c] sm:$0xf] %v464_v19  ;;  %v468_v21 = vld [vmem:[%s7720_s17 + $0x68] sm:$0xf] }
 0x1f9   :  { %467 = vst [vmem:[#allocation2 + $0x50] sm:$0xf] %v466_v20  ;;  %v470_v22 = vld [vmem:[%s7720_s17 + $0x2c] sm:$0xf]  ;;  %469 = vst [vmem:[#allocation2 + $0x54] sm:$0xf] %v468_v21 }
 0x1fa   :  { %v472_v23 = vld [vmem:[%s7720_s17 + $0x6c] sm:$0xf]  ;;  %471 = vst [vmem:[#allocation2 + $0x58] sm:$0xf] %v470_v22  ;;  %v474_v24 = vld [vmem:[%s7720_s17 + $0x30] sm:$0xf] }
 0x1fb   :  { %473 = vst [vmem:[#allocation2 + $0x5c] sm:$0xf] %v472_v23  ;;  %v476_v25 = vld [vmem:[%s7720_s17 + $0x70] sm:$0xf]  ;;  %v478_v26 = vld [vmem:[%s7720_s17 + $0x34] sm:$0xf] }
 0x1fc   :  { %475 = vst [vmem:[#allocation2 + $0x60] sm:$0xf] %v474_v24  ;;  %477 = vst [vmem:[#allocation2 + $0x64] sm:$0xf] %v476_v25  ;;  %v480_v27 = vld [vmem:[%s7720_s17 + $0x74] sm:$0xf] }
 0x1fd   :  { %479 = vst [vmem:[#allocation2 + $0x68] sm:$0xf] %v478_v26  ;;  %v482_v28 = vld [vmem:[%s7720_s17 + $0x38] sm:$0xf]  ;;  %481 = vst [vmem:[#allocation2 + $0x6c] sm:$0xf] %v480_v27 }
 0x1fe   :  { %v484_v29 = vld [vmem:[%s7720_s17 + $0x78] sm:$0xf]  ;;  %483 = vst [vmem:[#allocation2 + $0x70] sm:$0xf] %v482_v28  ;;  %v486_v30 = vld [vmem:[%s7720_s17 + $0x3c] sm:$0xf] }
 0x1ff   :  { %485 = vst [vmem:[#allocation2 + $0x74] sm:$0xf] %v484_v29  ;;  %v488_v31 = vld [vmem:[%s7720_s17 + $0x7c] sm:$0xf]  ;;  %v490_v32 = vld [vmem:[%s7720_s17 + $0x80] sm:$0xf] }
 0x200   :  { %487 = vst [vmem:[#allocation2 + $0x78] sm:$0xf] %v486_v30  ;;  %489 = vst [vmem:[#allocation2 + $0x7c] sm:$0xf] %v488_v31  ;;  %v492_v33 = vld [vmem:[%s7720_s17 + $0xc0] sm:$0xf] }
 0x201   :  { %491 = vst [vmem:[#allocation2 + $0x80] sm:$0xf] %v490_v32  ;;  %v494_v34 = vld [vmem:[%s7720_s17 + $0x84] sm:$0xf]  ;;  %493 = vst [vmem:[#allocation2 + $0x84] sm:$0xf] %v492_v33 }
 0x202   :  { %v496_v35 = vld [vmem:[%s7720_s17 + $0xc4] sm:$0xf]  ;;  %495 = vst [vmem:[#allocation2 + $0x88] sm:$0xf] %v494_v34  ;;  %v498_v36 = vld [vmem:[%s7720_s17 + $0x88] sm:$0xf] }
 0x203   :  { %497 = vst [vmem:[#allocation2 + $0x8c] sm:$0xf] %v496_v35  ;;  %v500_v37 = vld [vmem:[%s7720_s17 + $0xc8] sm:$0xf]  ;;  %v502_v38 = vld [vmem:[%s7720_s17 + $0x8c] sm:$0xf] }
 0x204   :  { %499 = vst [vmem:[#allocation2 + $0x90] sm:$0xf] %v498_v36  ;;  %501 = vst [vmem:[#allocation2 + $0x94] sm:$0xf] %v500_v37  ;;  %v504_v39 = vld [vmem:[%s7720_s17 + $0xcc] sm:$0xf] }
 0x205   :  { %503 = vst [vmem:[#allocation2 + $0x98] sm:$0xf] %v502_v38  ;;  %v506_v40 = vld [vmem:[%s7720_s17 + $0x90] sm:$0xf]  ;;  %505 = vst [vmem:[#allocation2 + $0x9c] sm:$0xf] %v504_v39 }
 0x206   :  { %v508_v41 = vld [vmem:[%s7720_s17 + $0xd0] sm:$0xf]  ;;  %507 = vst [vmem:[#allocation2 + $0xa0] sm:$0xf] %v506_v40  ;;  %v510_v42 = vld [vmem:[%s7720_s17 + $0x94] sm:$0xf] }
 0x207   :  { %509 = vst [vmem:[#allocation2 + $0xa4] sm:$0xf] %v508_v41  ;;  %v512_v43 = vld [vmem:[%s7720_s17 + $0xd4] sm:$0xf]  ;;  %v514_v44 = vld [vmem:[%s7720_s17 + $0x98] sm:$0xf] }
 0x208   :  { %511 = vst [vmem:[#allocation2 + $0xa8] sm:$0xf] %v510_v42  ;;  %513 = vst [vmem:[#allocation2 + $0xac] sm:$0xf] %v512_v43  ;;  %v516_v45 = vld [vmem:[%s7720_s17 + $0xd8] sm:$0xf] }
 0x209   :  { %515 = vst [vmem:[#allocation2 + $0xb0] sm:$0xf] %v514_v44  ;;  %v518_v46 = vld [vmem:[%s7720_s17 + $0x9c] sm:$0xf]  ;;  %517 = vst [vmem:[#allocation2 + $0xb4] sm:$0xf] %v516_v45 }
 0x20a   :  { %v520_v47 = vld [vmem:[%s7720_s17 + $0xdc] sm:$0xf]  ;;  %519 = vst [vmem:[#allocation2 + $0xb8] sm:$0xf] %v518_v46  ;;  %v522_v48 = vld [vmem:[%s7720_s17 + $0xa0] sm:$0xf] }
 0x20b   :  { %521 = vst [vmem:[#allocation2 + $0xbc] sm:$0xf] %v520_v47  ;;  %v524_v49 = vld [vmem:[%s7720_s17 + $0xe0] sm:$0xf]  ;;  %v526_v50 = vld [vmem:[%s7720_s17 + $0xa4] sm:$0xf] }
 0x20c   :  { %523 = vst [vmem:[#allocation2 + $0xc0] sm:$0xf] %v522_v48  ;;  %525 = vst [vmem:[#allocation2 + $0xc4] sm:$0xf] %v524_v49  ;;  %v528_v51 = vld [vmem:[%s7720_s17 + $0xe4] sm:$0xf] }
 0x20d   :  { %527 = vst [vmem:[#allocation2 + $0xc8] sm:$0xf] %v526_v50  ;;  %v530_v52 = vld [vmem:[%s7720_s17 + $0xa8] sm:$0xf]  ;;  %529 = vst [vmem:[#allocation2 + $0xcc] sm:$0xf] %v528_v51 }
 0x20e   :  { %v532_v53 = vld [vmem:[%s7720_s17 + $0xe8] sm:$0xf]  ;;  %531 = vst [vmem:[#allocation2 + $0xd0] sm:$0xf] %v530_v52  ;;  %v534_v54 = vld [vmem:[%s7720_s17 + $0xac] sm:$0xf] }
 0x20f   :  { %533 = vst [vmem:[#allocation2 + $0xd4] sm:$0xf] %v532_v53  ;;  %v536_v55 = vld [vmem:[%s7720_s17 + $0xec] sm:$0xf]  ;;  %v538_v56 = vld [vmem:[%s7720_s17 + $0xb0] sm:$0xf] }
 0x210   :  { %535 = vst [vmem:[#allocation2 + $0xd8] sm:$0xf] %v534_v54  ;;  %537 = vst [vmem:[#allocation2 + $0xdc] sm:$0xf] %v536_v55  ;;  %v540_v57 = vld [vmem:[%s7720_s17 + $0xf0] sm:$0xf] }
 0x211   :  { %539 = vst [vmem:[#allocation2 + $0xe0] sm:$0xf] %v538_v56  ;;  %v542_v58 = vld [vmem:[%s7720_s17 + $0xb4] sm:$0xf]  ;;  %541 = vst [vmem:[#allocation2 + $0xe4] sm:$0xf] %v540_v57 }
 0x212   :  { %v544_v59 = vld [vmem:[%s7720_s17 + $0xf4] sm:$0xf]  ;;  %543 = vst [vmem:[#allocation2 + $0xe8] sm:$0xf] %v542_v58  ;;  %v546_v60 = vld [vmem:[%s7720_s17 + $0xb8] sm:$0xf] }
 0x213   :  { %545 = vst [vmem:[#allocation2 + $0xec] sm:$0xf] %v544_v59  ;;  %v548_v61 = vld [vmem:[%s7720_s17 + $0xf8] sm:$0xf]  ;;  %v550_v62 = vld [vmem:[%s7720_s17 + $0xbc] sm:$0xf] }
 0x214   :  { %547 = vst [vmem:[#allocation2 + $0xf0] sm:$0xf] %v546_v60  ;;  %549 = vst [vmem:[#allocation2 + $0xf4] sm:$0xf] %v548_v61  ;;  %v552_v63 = vld [vmem:[%s7720_s17 + $0xfc] sm:$0xf] }
 0x215   :  { %551 = vst [vmem:[#allocation2 + $0xf8] sm:$0xf] %v550_v62  ;;  %v554_v0 = vld [vmem:[%s7720_s17 + $0x100] sm:$0xf]  ;;  %553 = vst [vmem:[#allocation2 + $0xfc] sm:$0xf] %v552_v63 }
 0x216   :  { %v556_v1 = vld [vmem:[%s7720_s17 + $0x140] sm:$0xf]  ;;  %555 = vst [vmem:[#allocation2 + $0x100] sm:$0xf] %v554_v0  ;;  %v558_v2 = vld [vmem:[%s7720_s17 + $0x104] sm:$0xf] }
 0x217   :  { %557 = vst [vmem:[#allocation2 + $0x104] sm:$0xf] %v556_v1  ;;  %v560_v3 = vld [vmem:[%s7720_s17 + $0x144] sm:$0xf]  ;;  %v562_v4 = vld [vmem:[%s7720_s17 + $0x108] sm:$0xf] }
 0x218   :  { %559 = vst [vmem:[#allocation2 + $0x108] sm:$0xf] %v558_v2  ;;  %561 = vst [vmem:[#allocation2 + $0x10c] sm:$0xf] %v560_v3  ;;  %v564_v5 = vld [vmem:[%s7720_s17 + $0x148] sm:$0xf] }
 0x219   :  { %563 = vst [vmem:[#allocation2 + $0x110] sm:$0xf] %v562_v4  ;;  %v566_v6 = vld [vmem:[%s7720_s17 + $0x10c] sm:$0xf]  ;;  %565 = vst [vmem:[#allocation2 + $0x114] sm:$0xf] %v564_v5 }
 0x21a   :  { %v568_v7 = vld [vmem:[%s7720_s17 + $0x14c] sm:$0xf]  ;;  %567 = vst [vmem:[#allocation2 + $0x118] sm:$0xf] %v566_v6  ;;  %v570_v8 = vld [vmem:[%s7720_s17 + $0x110] sm:$0xf] }
 0x21b   :  { %569 = vst [vmem:[#allocation2 + $0x11c] sm:$0xf] %v568_v7  ;;  %v572_v9 = vld [vmem:[%s7720_s17 + $0x150] sm:$0xf]  ;;  %v574_v10 = vld [vmem:[%s7720_s17 + $0x114] sm:$0xf] }
 0x21c   :  { %571 = vst [vmem:[#allocation2 + $0x120] sm:$0xf] %v570_v8  ;;  %573 = vst [vmem:[#allocation2 + $0x124] sm:$0xf] %v572_v9  ;;  %v576_v11 = vld [vmem:[%s7720_s17 + $0x154] sm:$0xf] }
 0x21d   :  { %575 = vst [vmem:[#allocation2 + $0x128] sm:$0xf] %v574_v10  ;;  %v578_v12 = vld [vmem:[%s7720_s17 + $0x118] sm:$0xf]  ;;  %577 = vst [vmem:[#allocation2 + $0x12c] sm:$0xf] %v576_v11 }
 0x21e   :  { %v580_v13 = vld [vmem:[%s7720_s17 + $0x158] sm:$0xf]  ;;  %579 = vst [vmem:[#allocation2 + $0x130] sm:$0xf] %v578_v12  ;;  %v582_v14 = vld [vmem:[%s7720_s17 + $0x11c] sm:$0xf] }
 0x21f   :  { %581 = vst [vmem:[#allocation2 + $0x134] sm:$0xf] %v580_v13  ;;  %v584_v15 = vld [vmem:[%s7720_s17 + $0x15c] sm:$0xf]  ;;  %v586_v16 = vld [vmem:[%s7720_s17 + $0x120] sm:$0xf] }
 0x220   :  { %583 = vst [vmem:[#allocation2 + $0x138] sm:$0xf] %v582_v14  ;;  %585 = vst [vmem:[#allocation2 + $0x13c] sm:$0xf] %v584_v15  ;;  %v588_v17 = vld [vmem:[%s7720_s17 + $0x160] sm:$0xf] }
 0x221   :  { %587 = vst [vmem:[#allocation2 + $0x140] sm:$0xf] %v586_v16  ;;  %v590_v18 = vld [vmem:[%s7720_s17 + $0x124] sm:$0xf]  ;;  %589 = vst [vmem:[#allocation2 + $0x144] sm:$0xf] %v588_v17 }
 0x222   :  { %v592_v19 = vld [vmem:[%s7720_s17 + $0x164] sm:$0xf]  ;;  %591 = vst [vmem:[#allocation2 + $0x148] sm:$0xf] %v590_v18  ;;  %v594_v20 = vld [vmem:[%s7720_s17 + $0x128] sm:$0xf] }
 0x223   :  { %593 = vst [vmem:[#allocation2 + $0x14c] sm:$0xf] %v592_v19  ;;  %v596_v21 = vld [vmem:[%s7720_s17 + $0x168] sm:$0xf]  ;;  %v598_v22 = vld [vmem:[%s7720_s17 + $0x12c] sm:$0xf] }
 0x224   :  { %595 = vst [vmem:[#allocation2 + $0x150] sm:$0xf] %v594_v20  ;;  %597 = vst [vmem:[#allocation2 + $0x154] sm:$0xf] %v596_v21  ;;  %v600_v23 = vld [vmem:[%s7720_s17 + $0x16c] sm:$0xf] }
 0x225   :  { %599 = vst [vmem:[#allocation2 + $0x158] sm:$0xf] %v598_v22  ;;  %v602_v24 = vld [vmem:[%s7720_s17 + $0x130] sm:$0xf]  ;;  %601 = vst [vmem:[#allocation2 + $0x15c] sm:$0xf] %v600_v23 }
 0x226   :  { %v604_v25 = vld [vmem:[%s7720_s17 + $0x170] sm:$0xf]  ;;  %603 = vst [vmem:[#allocation2 + $0x160] sm:$0xf] %v602_v24  ;;  %v606_v26 = vld [vmem:[%s7720_s17 + $0x134] sm:$0xf] }
 0x227   :  { %605 = vst [vmem:[#allocation2 + $0x164] sm:$0xf] %v604_v25  ;;  %v608_v27 = vld [vmem:[%s7720_s17 + $0x174] sm:$0xf]  ;;  %v610_v28 = vld [vmem:[%s7720_s17 + $0x138] sm:$0xf] }
 0x228   :  { %607 = vst [vmem:[#allocation2 + $0x168] sm:$0xf] %v606_v26  ;;  %609 = vst [vmem:[#allocation2 + $0x16c] sm:$0xf] %v608_v27  ;;  %v612_v29 = vld [vmem:[%s7720_s17 + $0x178] sm:$0xf] }
 0x229   :  { %611 = vst [vmem:[#allocation2 + $0x170] sm:$0xf] %v610_v28  ;;  %v614_v30 = vld [vmem:[%s7720_s17 + $0x13c] sm:$0xf]  ;;  %613 = vst [vmem:[#allocation2 + $0x174] sm:$0xf] %v612_v29 }
 0x22a   :  { %v616_v31 = vld [vmem:[%s7720_s17 + $0x17c] sm:$0xf]  ;;  %615 = vst [vmem:[#allocation2 + $0x178] sm:$0xf] %v614_v30  ;;  %v618_v32 = vld [vmem:[%s7720_s17 + $0x180] sm:$0xf] }
 0x22b   :  { %617 = vst [vmem:[#allocation2 + $0x17c] sm:$0xf] %v616_v31  ;;  %v620_v33 = vld [vmem:[%s7720_s17 + $0x1c0] sm:$0xf]  ;;  %v622_v34 = vld [vmem:[%s7720_s17 + $0x184] sm:$0xf] }
 0x22c   :  { %619 = vst [vmem:[#allocation2 + $0x180] sm:$0xf] %v618_v32  ;;  %621 = vst [vmem:[#allocation2 + $0x184] sm:$0xf] %v620_v33  ;;  %v624_v35 = vld [vmem:[%s7720_s17 + $0x1c4] sm:$0xf] }
 0x22d   :  { %623 = vst [vmem:[#allocation2 + $0x188] sm:$0xf] %v622_v34  ;;  %v626_v36 = vld [vmem:[%s7720_s17 + $0x188] sm:$0xf]  ;;  %625 = vst [vmem:[#allocation2 + $0x18c] sm:$0xf] %v624_v35 }
 0x22e   :  { %v628_v37 = vld [vmem:[%s7720_s17 + $0x1c8] sm:$0xf]  ;;  %627 = vst [vmem:[#allocation2 + $0x190] sm:$0xf] %v626_v36  ;;  %v630_v38 = vld [vmem:[%s7720_s17 + $0x18c] sm:$0xf] }
 0x22f   :  { %629 = vst [vmem:[#allocation2 + $0x194] sm:$0xf] %v628_v37  ;;  %v632_v39 = vld [vmem:[%s7720_s17 + $0x1cc] sm:$0xf]  ;;  %v634_v40 = vld [vmem:[%s7720_s17 + $0x190] sm:$0xf] }
 0x230   :  { %631 = vst [vmem:[#allocation2 + $0x198] sm:$0xf] %v630_v38  ;;  %633 = vst [vmem:[#allocation2 + $0x19c] sm:$0xf] %v632_v39  ;;  %v636_v41 = vld [vmem:[%s7720_s17 + $0x1d0] sm:$0xf] }
 0x231   :  { %635 = vst [vmem:[#allocation2 + $0x1a0] sm:$0xf] %v634_v40  ;;  %v638_v42 = vld [vmem:[%s7720_s17 + $0x194] sm:$0xf]  ;;  %637 = vst [vmem:[#allocation2 + $0x1a4] sm:$0xf] %v636_v41 }
 0x232   :  { %v640_v43 = vld [vmem:[%s7720_s17 + $0x1d4] sm:$0xf]  ;;  %639 = vst [vmem:[#allocation2 + $0x1a8] sm:$0xf] %v638_v42  ;;  %v642_v44 = vld [vmem:[%s7720_s17 + $0x198] sm:$0xf] }
 0x233   :  { %641 = vst [vmem:[#allocation2 + $0x1ac] sm:$0xf] %v640_v43  ;;  %v644_v45 = vld [vmem:[%s7720_s17 + $0x1d8] sm:$0xf]  ;;  %v646_v46 = vld [vmem:[%s7720_s17 + $0x19c] sm:$0xf] }
 0x234   :  { %643 = vst [vmem:[#allocation2 + $0x1b0] sm:$0xf] %v642_v44  ;;  %645 = vst [vmem:[#allocation2 + $0x1b4] sm:$0xf] %v644_v45  ;;  %v648_v47 = vld [vmem:[%s7720_s17 + $0x1dc] sm:$0xf] }
 0x235   :  { %647 = vst [vmem:[#allocation2 + $0x1b8] sm:$0xf] %v646_v46  ;;  %v650_v48 = vld [vmem:[%s7720_s17 + $0x1a0] sm:$0xf]  ;;  %649 = vst [vmem:[#allocation2 + $0x1bc] sm:$0xf] %v648_v47 }
 0x236   :  { %v652_v49 = vld [vmem:[%s7720_s17 + $0x1e0] sm:$0xf]  ;;  %651 = vst [vmem:[#allocation2 + $0x1c0] sm:$0xf] %v650_v48  ;;  %v654_v50 = vld [vmem:[%s7720_s17 + $0x1a4] sm:$0xf] }
 0x237   :  { %653 = vst [vmem:[#allocation2 + $0x1c4] sm:$0xf] %v652_v49  ;;  %v656_v51 = vld [vmem:[%s7720_s17 + $0x1e4] sm:$0xf]  ;;  %v658_v52 = vld [vmem:[%s7720_s17 + $0x1a8] sm:$0xf] }
 0x238   :  { %655 = vst [vmem:[#allocation2 + $0x1c8] sm:$0xf] %v654_v50  ;;  %657 = vst [vmem:[#allocation2 + $0x1cc] sm:$0xf] %v656_v51  ;;  %v660_v53 = vld [vmem:[%s7720_s17 + $0x1e8] sm:$0xf] }
 0x239   :  { %659 = vst [vmem:[#allocation2 + $0x1d0] sm:$0xf] %v658_v52  ;;  %v662_v54 = vld [vmem:[%s7720_s17 + $0x1ac] sm:$0xf]  ;;  %661 = vst [vmem:[#allocation2 + $0x1d4] sm:$0xf] %v660_v53 }
 0x23a   :  { %v664_v55 = vld [vmem:[%s7720_s17 + $0x1ec] sm:$0xf]  ;;  %663 = vst [vmem:[#allocation2 + $0x1d8] sm:$0xf] %v662_v54  ;;  %v666_v56 = vld [vmem:[%s7720_s17 + $0x1b0] sm:$0xf] }
 0x23b   :  { %665 = vst [vmem:[#allocation2 + $0x1dc] sm:$0xf] %v664_v55  ;;  %v668_v57 = vld [vmem:[%s7720_s17 + $0x1f0] sm:$0xf]  ;;  %v670_v58 = vld [vmem:[%s7720_s17 + $0x1b4] sm:$0xf] }
 0x23c   :  { %667 = vst [vmem:[#allocation2 + $0x1e0] sm:$0xf] %v666_v56  ;;  %669 = vst [vmem:[#allocation2 + $0x1e4] sm:$0xf] %v668_v57  ;;  %v672_v59 = vld [vmem:[%s7720_s17 + $0x1f4] sm:$0xf] }
 0x23d   :  { %671 = vst [vmem:[#allocation2 + $0x1e8] sm:$0xf] %v670_v58  ;;  %v674_v60 = vld [vmem:[%s7720_s17 + $0x1b8] sm:$0xf]  ;;  %673 = vst [vmem:[#allocation2 + $0x1ec] sm:$0xf] %v672_v59 }
 0x23e   :  { %v676_v61 = vld [vmem:[%s7720_s17 + $0x1f8] sm:$0xf]  ;;  %675 = vst [vmem:[#allocation2 + $0x1f0] sm:$0xf] %v674_v60  ;;  %v678_v62 = vld [vmem:[%s7720_s17 + $0x1bc] sm:$0xf] }
 0x23f   :  { %677 = vst [vmem:[#allocation2 + $0x1f4] sm:$0xf] %v676_v61  ;;  %v680_v63 = vld [vmem:[%s7720_s17 + $0x1fc] sm:$0xf]  ;;  %v682_v0 = vld [vmem:[%s7720_s17 + $0x200] sm:$0xf] }
 0x240   :  { %679 = vst [vmem:[#allocation2 + $0x1f8] sm:$0xf] %v678_v62  ;;  %681 = vst [vmem:[#allocation2 + $0x1fc] sm:$0xf] %v680_v63  ;;  %v684_v1 = vld [vmem:[%s7720_s17 + $0x240] sm:$0xf] }
 0x241   :  { %683 = vst [vmem:[#allocation2 + $0x200] sm:$0xf] %v682_v0  ;;  %v686_v2 = vld [vmem:[%s7720_s17 + $0x204] sm:$0xf]  ;;  %685 = vst [vmem:[#allocation2 + $0x204] sm:$0xf] %v684_v1 }
 0x242   :  { %v688_v3 = vld [vmem:[%s7720_s17 + $0x244] sm:$0xf]  ;;  %687 = vst [vmem:[#allocation2 + $0x208] sm:$0xf] %v686_v2  ;;  %v690_v4 = vld [vmem:[%s7720_s17 + $0x208] sm:$0xf] }
 0x243   :  { %689 = vst [vmem:[#allocation2 + $0x20c] sm:$0xf] %v688_v3  ;;  %v692_v5 = vld [vmem:[%s7720_s17 + $0x248] sm:$0xf]  ;;  %v694_v6 = vld [vmem:[%s7720_s17 + $0x20c] sm:$0xf] }
 0x244   :  { %691 = vst [vmem:[#allocation2 + $0x210] sm:$0xf] %v690_v4  ;;  %693 = vst [vmem:[#allocation2 + $0x214] sm:$0xf] %v692_v5  ;;  %v696_v7 = vld [vmem:[%s7720_s17 + $0x24c] sm:$0xf] }
 0x245   :  { %695 = vst [vmem:[#allocation2 + $0x218] sm:$0xf] %v694_v6  ;;  %v698_v8 = vld [vmem:[%s7720_s17 + $0x210] sm:$0xf]  ;;  %697 = vst [vmem:[#allocation2 + $0x21c] sm:$0xf] %v696_v7 }
 0x246   :  { %v700_v9 = vld [vmem:[%s7720_s17 + $0x250] sm:$0xf]  ;;  %699 = vst [vmem:[#allocation2 + $0x220] sm:$0xf] %v698_v8  ;;  %v702_v10 = vld [vmem:[%s7720_s17 + $0x214] sm:$0xf] }
 0x247   :  { %701 = vst [vmem:[#allocation2 + $0x224] sm:$0xf] %v700_v9  ;;  %v704_v11 = vld [vmem:[%s7720_s17 + $0x254] sm:$0xf]  ;;  %v706_v12 = vld [vmem:[%s7720_s17 + $0x218] sm:$0xf] }
 0x248   :  { %703 = vst [vmem:[#allocation2 + $0x228] sm:$0xf] %v702_v10  ;;  %705 = vst [vmem:[#allocation2 + $0x22c] sm:$0xf] %v704_v11  ;;  %v708_v13 = vld [vmem:[%s7720_s17 + $0x258] sm:$0xf] }
 0x249   :  { %707 = vst [vmem:[#allocation2 + $0x230] sm:$0xf] %v706_v12  ;;  %v710_v14 = vld [vmem:[%s7720_s17 + $0x21c] sm:$0xf]  ;;  %709 = vst [vmem:[#allocation2 + $0x234] sm:$0xf] %v708_v13 }
 0x24a   :  { %v712_v15 = vld [vmem:[%s7720_s17 + $0x25c] sm:$0xf]  ;;  %711 = vst [vmem:[#allocation2 + $0x238] sm:$0xf] %v710_v14  ;;  %v714_v16 = vld [vmem:[%s7720_s17 + $0x220] sm:$0xf] }
 0x24b   :  { %713 = vst [vmem:[#allocation2 + $0x23c] sm:$0xf] %v712_v15  ;;  %v716_v17 = vld [vmem:[%s7720_s17 + $0x260] sm:$0xf]  ;;  %v718_v18 = vld [vmem:[%s7720_s17 + $0x224] sm:$0xf] }
 0x24c   :  { %715 = vst [vmem:[#allocation2 + $0x240] sm:$0xf] %v714_v16  ;;  %717 = vst [vmem:[#allocation2 + $0x244] sm:$0xf] %v716_v17  ;;  %v720_v19 = vld [vmem:[%s7720_s17 + $0x264] sm:$0xf] }
 0x24d   :  { %719 = vst [vmem:[#allocation2 + $0x248] sm:$0xf] %v718_v18  ;;  %v722_v20 = vld [vmem:[%s7720_s17 + $0x228] sm:$0xf]  ;;  %721 = vst [vmem:[#allocation2 + $0x24c] sm:$0xf] %v720_v19 }
 0x24e   :  { %v724_v21 = vld [vmem:[%s7720_s17 + $0x268] sm:$0xf]  ;;  %723 = vst [vmem:[#allocation2 + $0x250] sm:$0xf] %v722_v20  ;;  %v726_v22 = vld [vmem:[%s7720_s17 + $0x22c] sm:$0xf] }
 0x24f   :  { %725 = vst [vmem:[#allocation2 + $0x254] sm:$0xf] %v724_v21  ;;  %v728_v23 = vld [vmem:[%s7720_s17 + $0x26c] sm:$0xf]  ;;  %v730_v24 = vld [vmem:[%s7720_s17 + $0x230] sm:$0xf] }
 0x250   :  { %727 = vst [vmem:[#allocation2 + $0x258] sm:$0xf] %v726_v22  ;;  %729 = vst [vmem:[#allocation2 + $0x25c] sm:$0xf] %v728_v23  ;;  %v732_v25 = vld [vmem:[%s7720_s17 + $0x270] sm:$0xf] }
 0x251   :  { %731 = vst [vmem:[#allocation2 + $0x260] sm:$0xf] %v730_v24  ;;  %v734_v26 = vld [vmem:[%s7720_s17 + $0x234] sm:$0xf]  ;;  %733 = vst [vmem:[#allocation2 + $0x264] sm:$0xf] %v732_v25 }
 0x252   :  { %v736_v27 = vld [vmem:[%s7720_s17 + $0x274] sm:$0xf]  ;;  %735 = vst [vmem:[#allocation2 + $0x268] sm:$0xf] %v734_v26  ;;  %v738_v28 = vld [vmem:[%s7720_s17 + $0x238] sm:$0xf] }
 0x253   :  { %737 = vst [vmem:[#allocation2 + $0x26c] sm:$0xf] %v736_v27  ;;  %v740_v29 = vld [vmem:[%s7720_s17 + $0x278] sm:$0xf]  ;;  %v742_v30 = vld [vmem:[%s7720_s17 + $0x23c] sm:$0xf] }
 0x254   :  { %739 = vst [vmem:[#allocation2 + $0x270] sm:$0xf] %v738_v28  ;;  %741 = vst [vmem:[#allocation2 + $0x274] sm:$0xf] %v740_v29  ;;  %v744_v31 = vld [vmem:[%s7720_s17 + $0x27c] sm:$0xf] }
 0x255   :  { %743 = vst [vmem:[#allocation2 + $0x278] sm:$0xf] %v742_v30  ;;  %v746_v32 = vld [vmem:[%s7720_s17 + $0x280] sm:$0xf]  ;;  %745 = vst [vmem:[#allocation2 + $0x27c] sm:$0xf] %v744_v31 }
 0x256   :  { %v748_v33 = vld [vmem:[%s7720_s17 + $0x2c0] sm:$0xf]  ;;  %747 = vst [vmem:[#allocation2 + $0x280] sm:$0xf] %v746_v32  ;;  %v750_v34 = vld [vmem:[%s7720_s17 + $0x284] sm:$0xf] }
 0x257   :  { %749 = vst [vmem:[#allocation2 + $0x284] sm:$0xf] %v748_v33  ;;  %v752_v35 = vld [vmem:[%s7720_s17 + $0x2c4] sm:$0xf]  ;;  %v754_v36 = vld [vmem:[%s7720_s17 + $0x288] sm:$0xf] }
 0x258   :  { %751 = vst [vmem:[#allocation2 + $0x288] sm:$0xf] %v750_v34  ;;  %753 = vst [vmem:[#allocation2 + $0x28c] sm:$0xf] %v752_v35  ;;  %v756_v37 = vld [vmem:[%s7720_s17 + $0x2c8] sm:$0xf] }
 0x259   :  { %755 = vst [vmem:[#allocation2 + $0x290] sm:$0xf] %v754_v36  ;;  %v758_v38 = vld [vmem:[%s7720_s17 + $0x28c] sm:$0xf]  ;;  %757 = vst [vmem:[#allocation2 + $0x294] sm:$0xf] %v756_v37 }
 0x25a   :  { %v760_v39 = vld [vmem:[%s7720_s17 + $0x2cc] sm:$0xf]  ;;  %759 = vst [vmem:[#allocation2 + $0x298] sm:$0xf] %v758_v38  ;;  %v762_v40 = vld [vmem:[%s7720_s17 + $0x290] sm:$0xf] }
 0x25b   :  { %761 = vst [vmem:[#allocation2 + $0x29c] sm:$0xf] %v760_v39  ;;  %v764_v41 = vld [vmem:[%s7720_s17 + $0x2d0] sm:$0xf]  ;;  %v766_v42 = vld [vmem:[%s7720_s17 + $0x294] sm:$0xf] }
 0x25c   :  { %763 = vst [vmem:[#allocation2 + $0x2a0] sm:$0xf] %v762_v40  ;;  %765 = vst [vmem:[#allocation2 + $0x2a4] sm:$0xf] %v764_v41  ;;  %v768_v43 = vld [vmem:[%s7720_s17 + $0x2d4] sm:$0xf] }
 0x25d   :  { %767 = vst [vmem:[#allocation2 + $0x2a8] sm:$0xf] %v766_v42  ;;  %v770_v44 = vld [vmem:[%s7720_s17 + $0x298] sm:$0xf]  ;;  %769 = vst [vmem:[#allocation2 + $0x2ac] sm:$0xf] %v768_v43 }
 0x25e   :  { %v772_v45 = vld [vmem:[%s7720_s17 + $0x2d8] sm:$0xf]  ;;  %771 = vst [vmem:[#allocation2 + $0x2b0] sm:$0xf] %v770_v44  ;;  %v774_v46 = vld [vmem:[%s7720_s17 + $0x29c] sm:$0xf] }
 0x25f   :  { %773 = vst [vmem:[#allocation2 + $0x2b4] sm:$0xf] %v772_v45  ;;  %v776_v47 = vld [vmem:[%s7720_s17 + $0x2dc] sm:$0xf]  ;;  %v778_v48 = vld [vmem:[%s7720_s17 + $0x2a0] sm:$0xf] }
 0x260   :  { %775 = vst [vmem:[#allocation2 + $0x2b8] sm:$0xf] %v774_v46  ;;  %777 = vst [vmem:[#allocation2 + $0x2bc] sm:$0xf] %v776_v47  ;;  %v780_v49 = vld [vmem:[%s7720_s17 + $0x2e0] sm:$0xf] }
 0x261   :  { %779 = vst [vmem:[#allocation2 + $0x2c0] sm:$0xf] %v778_v48  ;;  %v782_v50 = vld [vmem:[%s7720_s17 + $0x2a4] sm:$0xf]  ;;  %781 = vst [vmem:[#allocation2 + $0x2c4] sm:$0xf] %v780_v49 }
 0x262   :  { %v784_v51 = vld [vmem:[%s7720_s17 + $0x2e4] sm:$0xf]  ;;  %783 = vst [vmem:[#allocation2 + $0x2c8] sm:$0xf] %v782_v50  ;;  %v786_v52 = vld [vmem:[%s7720_s17 + $0x2a8] sm:$0xf] }
 0x263   :  { %785 = vst [vmem:[#allocation2 + $0x2cc] sm:$0xf] %v784_v51  ;;  %v788_v53 = vld [vmem:[%s7720_s17 + $0x2e8] sm:$0xf]  ;;  %v790_v54 = vld [vmem:[%s7720_s17 + $0x2ac] sm:$0xf] }
 0x264   :  { %787 = vst [vmem:[#allocation2 + $0x2d0] sm:$0xf] %v786_v52  ;;  %789 = vst [vmem:[#allocation2 + $0x2d4] sm:$0xf] %v788_v53  ;;  %v792_v55 = vld [vmem:[%s7720_s17 + $0x2ec] sm:$0xf] }
 0x265   :  { %791 = vst [vmem:[#allocation2 + $0x2d8] sm:$0xf] %v790_v54  ;;  %v794_v56 = vld [vmem:[%s7720_s17 + $0x2b0] sm:$0xf]  ;;  %793 = vst [vmem:[#allocation2 + $0x2dc] sm:$0xf] %v792_v55 }
 0x266   :  { %v796_v57 = vld [vmem:[%s7720_s17 + $0x2f0] sm:$0xf]  ;;  %795 = vst [vmem:[#allocation2 + $0x2e0] sm:$0xf] %v794_v56  ;;  %v798_v58 = vld [vmem:[%s7720_s17 + $0x2b4] sm:$0xf] }
 0x267   :  { %797 = vst [vmem:[#allocation2 + $0x2e4] sm:$0xf] %v796_v57  ;;  %v800_v59 = vld [vmem:[%s7720_s17 + $0x2f4] sm:$0xf]  ;;  %v802_v60 = vld [vmem:[%s7720_s17 + $0x2b8] sm:$0xf] }
 0x268   :  { %799 = vst [vmem:[#allocation2 + $0x2e8] sm:$0xf] %v798_v58  ;;  %801 = vst [vmem:[#allocation2 + $0x2ec] sm:$0xf] %v800_v59  ;;  %v804_v61 = vld [vmem:[%s7720_s17 + $0x2f8] sm:$0xf] }
 0x269   :  { %803 = vst [vmem:[#allocation2 + $0x2f0] sm:$0xf] %v802_v60  ;;  %v806_v62 = vld [vmem:[%s7720_s17 + $0x2bc] sm:$0xf]  ;;  %805 = vst [vmem:[#allocation2 + $0x2f4] sm:$0xf] %v804_v61 }
 0x26a   :  { %v808_v63 = vld [vmem:[%s7720_s17 + $0x2fc] sm:$0xf]  ;;  %807 = vst [vmem:[#allocation2 + $0x2f8] sm:$0xf] %v806_v62  ;;  %v810_v0 = vld [vmem:[%s7720_s17 + $0x300] sm:$0xf] }
 0x26b   :  { %809 = vst [vmem:[#allocation2 + $0x2fc] sm:$0xf] %v808_v63  ;;  %v812_v1 = vld [vmem:[%s7720_s17 + $0x340] sm:$0xf]  ;;  %v814_v2 = vld [vmem:[%s7720_s17 + $0x304] sm:$0xf] }
 0x26c   :  { %811 = vst [vmem:[#allocation2 + $0x300] sm:$0xf] %v810_v0  ;;  %813 = vst [vmem:[#allocation2 + $0x304] sm:$0xf] %v812_v1  ;;  %v816_v3 = vld [vmem:[%s7720_s17 + $0x344] sm:$0xf] }
 0x26d   :  { %815 = vst [vmem:[#allocation2 + $0x308] sm:$0xf] %v814_v2  ;;  %v818_v4 = vld [vmem:[%s7720_s17 + $0x308] sm:$0xf]  ;;  %817 = vst [vmem:[#allocation2 + $0x30c] sm:$0xf] %v816_v3 }
 0x26e   :  { %v820_v5 = vld [vmem:[%s7720_s17 + $0x348] sm:$0xf]  ;;  %819 = vst [vmem:[#allocation2 + $0x310] sm:$0xf] %v818_v4  ;;  %v822_v6 = vld [vmem:[%s7720_s17 + $0x30c] sm:$0xf] }
 0x26f   :  { %821 = vst [vmem:[#allocation2 + $0x314] sm:$0xf] %v820_v5  ;;  %v824_v7 = vld [vmem:[%s7720_s17 + $0x34c] sm:$0xf]  ;;  %v826_v8 = vld [vmem:[%s7720_s17 + $0x310] sm:$0xf] }
 0x270   :  { %823 = vst [vmem:[#allocation2 + $0x318] sm:$0xf] %v822_v6  ;;  %825 = vst [vmem:[#allocation2 + $0x31c] sm:$0xf] %v824_v7  ;;  %v828_v9 = vld [vmem:[%s7720_s17 + $0x350] sm:$0xf] }
 0x271   :  { %827 = vst [vmem:[#allocation2 + $0x320] sm:$0xf] %v826_v8  ;;  %v830_v10 = vld [vmem:[%s7720_s17 + $0x314] sm:$0xf]  ;;  %829 = vst [vmem:[#allocation2 + $0x324] sm:$0xf] %v828_v9 }
 0x272   :  { %v832_v11 = vld [vmem:[%s7720_s17 + $0x354] sm:$0xf]  ;;  %831 = vst [vmem:[#allocation2 + $0x328] sm:$0xf] %v830_v10  ;;  %v834_v12 = vld [vmem:[%s7720_s17 + $0x318] sm:$0xf] }
 0x273   :  { %833 = vst [vmem:[#allocation2 + $0x32c] sm:$0xf] %v832_v11  ;;  %v836_v13 = vld [vmem:[%s7720_s17 + $0x358] sm:$0xf]  ;;  %v838_v14 = vld [vmem:[%s7720_s17 + $0x31c] sm:$0xf] }
 0x274   :  { %835 = vst [vmem:[#allocation2 + $0x330] sm:$0xf] %v834_v12  ;;  %837 = vst [vmem:[#allocation2 + $0x334] sm:$0xf] %v836_v13  ;;  %v840_v15 = vld [vmem:[%s7720_s17 + $0x35c] sm:$0xf] }
 0x275   :  { %839 = vst [vmem:[#allocation2 + $0x338] sm:$0xf] %v838_v14  ;;  %v842_v16 = vld [vmem:[%s7720_s17 + $0x320] sm:$0xf]  ;;  %841 = vst [vmem:[#allocation2 + $0x33c] sm:$0xf] %v840_v15 }
 0x276   :  { %v844_v17 = vld [vmem:[%s7720_s17 + $0x360] sm:$0xf]  ;;  %843 = vst [vmem:[#allocation2 + $0x340] sm:$0xf] %v842_v16  ;;  %v846_v18 = vld [vmem:[%s7720_s17 + $0x324] sm:$0xf] }
 0x277   :  { %845 = vst [vmem:[#allocation2 + $0x344] sm:$0xf] %v844_v17  ;;  %v848_v19 = vld [vmem:[%s7720_s17 + $0x364] sm:$0xf]  ;;  %v850_v20 = vld [vmem:[%s7720_s17 + $0x328] sm:$0xf] }
 0x278   :  { %847 = vst [vmem:[#allocation2 + $0x348] sm:$0xf] %v846_v18  ;;  %849 = vst [vmem:[#allocation2 + $0x34c] sm:$0xf] %v848_v19  ;;  %v852_v21 = vld [vmem:[%s7720_s17 + $0x368] sm:$0xf] }
 0x279   :  { %851 = vst [vmem:[#allocation2 + $0x350] sm:$0xf] %v850_v20  ;;  %v854_v22 = vld [vmem:[%s7720_s17 + $0x32c] sm:$0xf]  ;;  %853 = vst [vmem:[#allocation2 + $0x354] sm:$0xf] %v852_v21 }
 0x27a   :  { %v856_v23 = vld [vmem:[%s7720_s17 + $0x36c] sm:$0xf]  ;;  %855 = vst [vmem:[#allocation2 + $0x358] sm:$0xf] %v854_v22  ;;  %v858_v24 = vld [vmem:[%s7720_s17 + $0x330] sm:$0xf] }
 0x27b   :  { %857 = vst [vmem:[#allocation2 + $0x35c] sm:$0xf] %v856_v23  ;;  %v860_v25 = vld [vmem:[%s7720_s17 + $0x370] sm:$0xf]  ;;  %v862_v26 = vld [vmem:[%s7720_s17 + $0x334] sm:$0xf] }
 0x27c   :  { %859 = vst [vmem:[#allocation2 + $0x360] sm:$0xf] %v858_v24  ;;  %861 = vst [vmem:[#allocation2 + $0x364] sm:$0xf] %v860_v25  ;;  %v864_v27 = vld [vmem:[%s7720_s17 + $0x374] sm:$0xf] }
 0x27d   :  { %863 = vst [vmem:[#allocation2 + $0x368] sm:$0xf] %v862_v26  ;;  %v866_v28 = vld [vmem:[%s7720_s17 + $0x338] sm:$0xf]  ;;  %865 = vst [vmem:[#allocation2 + $0x36c] sm:$0xf] %v864_v27 }
 0x27e   :  { %v868_v29 = vld [vmem:[%s7720_s17 + $0x378] sm:$0xf]  ;;  %867 = vst [vmem:[#allocation2 + $0x370] sm:$0xf] %v866_v28  ;;  %v870_v30 = vld [vmem:[%s7720_s17 + $0x33c] sm:$0xf] }
 0x27f   :  { %869 = vst [vmem:[#allocation2 + $0x374] sm:$0xf] %v868_v29  ;;  %v872_v31 = vld [vmem:[%s7720_s17 + $0x37c] sm:$0xf]  ;;  %v874_v32 = vld [vmem:[%s7720_s17 + $0x380] sm:$0xf] }
 0x280   :  { %871 = vst [vmem:[#allocation2 + $0x378] sm:$0xf] %v870_v30  ;;  %873 = vst [vmem:[#allocation2 + $0x37c] sm:$0xf] %v872_v31  ;;  %v876_v33 = vld [vmem:[%s7720_s17 + $0x3c0] sm:$0xf] }
 0x281   :  { %875 = vst [vmem:[#allocation2 + $0x380] sm:$0xf] %v874_v32  ;;  %v878_v34 = vld [vmem:[%s7720_s17 + $0x384] sm:$0xf]  ;;  %877 = vst [vmem:[#allocation2 + $0x384] sm:$0xf] %v876_v33 }
 0x282   :  { %v880_v35 = vld [vmem:[%s7720_s17 + $0x3c4] sm:$0xf]  ;;  %879 = vst [vmem:[#allocation2 + $0x388] sm:$0xf] %v878_v34  ;;  %v882_v36 = vld [vmem:[%s7720_s17 + $0x388] sm:$0xf] }
 0x283   :  { %881 = vst [vmem:[#allocation2 + $0x38c] sm:$0xf] %v880_v35  ;;  %v884_v37 = vld [vmem:[%s7720_s17 + $0x3c8] sm:$0xf]  ;;  %v886_v38 = vld [vmem:[%s7720_s17 + $0x38c] sm:$0xf] }
 0x284   :  { %883 = vst [vmem:[#allocation2 + $0x390] sm:$0xf] %v882_v36  ;;  %885 = vst [vmem:[#allocation2 + $0x394] sm:$0xf] %v884_v37  ;;  %v888_v39 = vld [vmem:[%s7720_s17 + $0x3cc] sm:$0xf] }
 0x285   :  { %887 = vst [vmem:[#allocation2 + $0x398] sm:$0xf] %v886_v38  ;;  %v890_v40 = vld [vmem:[%s7720_s17 + $0x390] sm:$0xf]  ;;  %889 = vst [vmem:[#allocation2 + $0x39c] sm:$0xf] %v888_v39 }
 0x286   :  { %v892_v41 = vld [vmem:[%s7720_s17 + $0x3d0] sm:$0xf]  ;;  %891 = vst [vmem:[#allocation2 + $0x3a0] sm:$0xf] %v890_v40  ;;  %v894_v42 = vld [vmem:[%s7720_s17 + $0x394] sm:$0xf] }
 0x287   :  { %893 = vst [vmem:[#allocation2 + $0x3a4] sm:$0xf] %v892_v41  ;;  %v896_v43 = vld [vmem:[%s7720_s17 + $0x3d4] sm:$0xf]  ;;  %v898_v44 = vld [vmem:[%s7720_s17 + $0x398] sm:$0xf] }
 0x288   :  { %895 = vst [vmem:[#allocation2 + $0x3a8] sm:$0xf] %v894_v42  ;;  %897 = vst [vmem:[#allocation2 + $0x3ac] sm:$0xf] %v896_v43  ;;  %v900_v45 = vld [vmem:[%s7720_s17 + $0x3d8] sm:$0xf] }
 0x289   :  { %899 = vst [vmem:[#allocation2 + $0x3b0] sm:$0xf] %v898_v44  ;;  %v902_v46 = vld [vmem:[%s7720_s17 + $0x39c] sm:$0xf]  ;;  %901 = vst [vmem:[#allocation2 + $0x3b4] sm:$0xf] %v900_v45 }
 0x28a   :  { %v904_v47 = vld [vmem:[%s7720_s17 + $0x3dc] sm:$0xf]  ;;  %903 = vst [vmem:[#allocation2 + $0x3b8] sm:$0xf] %v902_v46  ;;  %v906_v48 = vld [vmem:[%s7720_s17 + $0x3a0] sm:$0xf] }
 0x28b   :  { %905 = vst [vmem:[#allocation2 + $0x3bc] sm:$0xf] %v904_v47  ;;  %v908_v49 = vld [vmem:[%s7720_s17 + $0x3e0] sm:$0xf]  ;;  %v910_v50 = vld [vmem:[%s7720_s17 + $0x3a4] sm:$0xf] }
 0x28c   :  { %907 = vst [vmem:[#allocation2 + $0x3c0] sm:$0xf] %v906_v48  ;;  %909 = vst [vmem:[#allocation2 + $0x3c4] sm:$0xf] %v908_v49  ;;  %v912_v51 = vld [vmem:[%s7720_s17 + $0x3e4] sm:$0xf] }
 0x28d   :  { %911 = vst [vmem:[#allocation2 + $0x3c8] sm:$0xf] %v910_v50  ;;  %v914_v52 = vld [vmem:[%s7720_s17 + $0x3a8] sm:$0xf]  ;;  %913 = vst [vmem:[#allocation2 + $0x3cc] sm:$0xf] %v912_v51 }
 0x28e   :  { %v916_v53 = vld [vmem:[%s7720_s17 + $0x3e8] sm:$0xf]  ;;  %915 = vst [vmem:[#allocation2 + $0x3d0] sm:$0xf] %v914_v52  ;;  %v918_v54 = vld [vmem:[%s7720_s17 + $0x3ac] sm:$0xf] }
 0x28f   :  { %917 = vst [vmem:[#allocation2 + $0x3d4] sm:$0xf] %v916_v53  ;;  %v920_v55 = vld [vmem:[%s7720_s17 + $0x3ec] sm:$0xf]  ;;  %v922_v56 = vld [vmem:[%s7720_s17 + $0x3b0] sm:$0xf] }
 0x290   :  { %919 = vst [vmem:[#allocation2 + $0x3d8] sm:$0xf] %v918_v54  ;;  %921 = vst [vmem:[#allocation2 + $0x3dc] sm:$0xf] %v920_v55  ;;  %v924_v57 = vld [vmem:[%s7720_s17 + $0x3f0] sm:$0xf] }
 0x291   :  { %923 = vst [vmem:[#allocation2 + $0x3e0] sm:$0xf] %v922_v56  ;;  %v926_v58 = vld [vmem:[%s7720_s17 + $0x3b4] sm:$0xf]  ;;  %925 = vst [vmem:[#allocation2 + $0x3e4] sm:$0xf] %v924_v57 }
 0x292   :  { %v928_v59 = vld [vmem:[%s7720_s17 + $0x3f4] sm:$0xf]  ;;  %927 = vst [vmem:[#allocation2 + $0x3e8] sm:$0xf] %v926_v58  ;;  %v930_v60 = vld [vmem:[%s7720_s17 + $0x3b8] sm:$0xf] }
 0x293   :  { %929 = vst [vmem:[#allocation2 + $0x3ec] sm:$0xf] %v928_v59  ;;  %v932_v61 = vld [vmem:[%s7720_s17 + $0x3f8] sm:$0xf]  ;;  %v934_v62 = vld [vmem:[%s7720_s17 + $0x3bc] sm:$0xf] }
 0x294   :  { %931 = vst [vmem:[#allocation2 + $0x3f0] sm:$0xf] %v930_v60  ;;  %933 = vst [vmem:[#allocation2 + $0x3f4] sm:$0xf] %v932_v61  ;;  %v936_v63 = vld [vmem:[%s7720_s17 + $0x3fc] sm:$0xf] }
 0x295   :  { %935 = vst [vmem:[#allocation2 + $0x3f8] sm:$0xf] %v934_v62  ;;  %937 = vst [vmem:[#allocation2 + $0x3fc] sm:$0xf] %v936_v63 }
 0x296   :  { %1480 = vsyncadd [#allocation6], 16384  ;;  %s7202_s21 = sld [smem:[#allocation0]]   ;;  %s6635_s20 = smov [#allocation3]   ;;  %v6636_v0 = vmov 0.0|0.0   ;;  %vm6638_vm0 = vmmov 0  }
 0x297   :  { %s1489_s15 = sshll.u32 %s6635_s20, 4  ;;  %5666 = vmatprep.subr.bf16.mxu0 %v6636_v0  ;;  %5678 = vmatprep.subr.bf16.mxu1 %v6636_v0  ;;  %s6637_s16 = smov [#allocation4]   ;;  %v6639_v1 = vmov 0.0   ;;  %s1490_s15 = int_to_ptr.vmem [resolvable:$true] %s1489_s15 }
 0x298   :  { %s7206_s12 = sshll.u32 %s6637_s16, 4  ;;  %5409 = vmatprep.mubr.msk.f32.mxu0 %vm6638_vm0, %v6639_v1  ;;  %5428 = vmatprep.mubr.msk.f32.mxu1 %vm6638_vm0, %v6639_v1  ;;  %s6499_s29 = scalar_lea.hbm %s6811_s6, 16384  ;;  %s1507_s12 = int_to_ptr.vmem [resolvable:$true] %s7206_s12 }
 0x299   :  { %p6500_p8 = scmp.ne.s32.totalorder %s6811_s6, %s6499_s29  ;;  %p6503_p9 = scmp.lt.u32.totalorder %s6499_s29, %s6811_s6 }
 0x29b   :  { %p6505_p10 = pnand %p6503_p9, %p6500_p8 }
 0x29d   :  { %6508 = shalt.err (!%p6505_p10)  }
 0x29e   :  { %s6509_s8 = scalar_lea.vmem %s1490_s15, 16384  ;;  %p6514_p12 = scmp.lt.s32.totalorder %s1490_s15, %s1490_s15 }
 0x29f   :  { %p6510_p11 = scmp.ne.s32.totalorder %s1490_s15, %s6509_s8  ;;  %p6515_p13 = scmp.lt.s32.totalorder %s6509_s8, %s6509_s8 }
 0x2a1   :  { %p6516_p0 = por %p6515_p13, %p6514_p12 }
 0x2a3   :  { %p6517_p1 = pnand %p6516_p0, %p6510_p11 }
 0x2a5   :  { %6520 = shalt.err (!%p6517_p1)  }
 0x2a6   :  { %1492 = dma.hbm_to_vmem [thread:$0]  %s6811_s6, 16384, %s1490_s15, [#allocation6 + $0x1]  ;;  %vm1557_vm1 = vcmask 523264   ;;  %vm1752_vm2 = vcmask 261120   ;;  %vm2076_vm3 = vcmask 130048  }
 0x2a7   :  { %s6640_s23 = smov 512   ;;  %s4869_s0 = sshll.u32 %s7202_s21, 26 }
 0x2a8   :  { %1510 = sst [smem:[#allocation47]] %s6640_s23  ;;  %s4870_s18 = sadd.s32 134217728, %s4869_s0 }
 0x2a9   :  { %1512 = sst [smem:[#allocation47 + $0x1]] %s6640_s23  ;;  %s6641_s4 = smov 4  }
 0x2aa   :  { %1514 = sst [smem:[#allocation47 + $0x2]] %s6641_s4  ;;  %s6642_s19 = smov 64  }
 0x2ab   :  { %1518 = sst [smem:[#allocation47 + $0x4]] %s6614_s11  ;;  %s6643_s26 = smov 2  }
 0x2ac   :  { %1516 = sst [smem:[#allocation47 + $0x3]] %s6642_s19  ;;  %s6644_s6 = smov [#allocation6 + $0x2]  }
 0x2ad   :  { %1520 = sst [smem:[#allocation47 + $0x5]] %s6643_s26  ;;  %s6645_s28 = smov [#allocation46]  }
 0x2ae   :  { %1522 = sst [smem:[#allocation47 + $0x6]] %s6610_s22  ;;  %s6646_s2 = smov [#allocation5]  }
 0x2af   :  { %1524 = sst [smem:[#allocation47 + $0x7]] %s6642_s19  ;;  %s1537_s7 = sshll.u32 %s6646_s2, 4  ;;  %s1538_s7 = int_to_ptr.vmem [resolvable:$true] %s1537_s7 }
 0x2b0   :  { %1526 = sst [smem:[#allocation47 + $0x8]] %s6641_s4  ;;  %s6521_s30 = scalar_lea.hbm %s6821_s24, 4096 }
 0x2b1   :  { %1528 = dma.general %s6816_s5, 4096, %s1507_s12, %s6644_s6, %s6645_s28, [#allocation47], %s4870_s18, 0  }
 0x2b2   :  { %s7721_s9 = sld [smem:[#allocation67_spill]]  ;;  %v1542_v2 = vld [vmem:[#allocation17] sm:$0xff]  ;;  %v1543_v3 = vld [vmem:[#allocation17 + $0x8] sm:$0xff]  ;;  %v1544_v4 = vld [vmem:[#allocation17 + $0x10] sm:$0xff]  ;;  %s7722_s5 = sld [smem:[#allocation66_spill]] }
 0x2b3   :  { %v5667_v5 = vpack.c.bf16 %v1543_v3, %v1542_v2  ;;  %v1545_v6 = vld [vmem:[#allocation17 + $0x18] sm:$0xff]  ;;  %v1546_v8 = vld [vmem:[#allocation17 + $0x20] sm:$0xff]  ;;  %v1547_v9 = vld [vmem:[#allocation17 + $0x28] sm:$0xff]  ;;  %s7723_s22 = sld [smem:[#allocation72_spill]]  ;;  %s7724_s11 = sld [smem:[#allocation74_spill]] }
 0x2b4   :  { %v5670_v7 = vpack.c.bf16 %v1545_v6, %v1544_v4  ;;  %v5673_v10 = vpack.c.bf16 %v1547_v9, %v1546_v8  ;;  %v1548_v11 = vld [vmem:[#allocation17 + $0x30] sm:$0xff]  ;;  %v1549_v12 = vld [vmem:[#allocation17 + $0x38] sm:$0xff]  ;;  %v1631_v15 = vld [vmem:[#allocation18] sm:$0xff]  ;;  %s7725_s25 = sld [smem:[#allocation73_spill]]  ;;  %s7726_s3 = sld [smem:[#allocation69_spill]] }
 0x2b5   :  { %5668 = vmatpush3.bf16.msra.mxu0 %v5667_v5  ;;  %v1632_v16 = vld [vmem:[#allocation18 + $0x8] sm:$0xff]  ;;  %v1633_v17 = vld [vmem:[#allocation18 + $0x10] sm:$0xff]  ;;  %v1634_v18 = vld [vmem:[#allocation18 + $0x18] sm:$0xff]  ;;  %v5676_v19 = vpack.c.bf16 %v1549_v12, %v1548_v11  ;;  %s7727_s1 = sld [smem:[#allocation68_spill]]  ;;  %s7728_s14 = sld [smem:[#allocation70_spill]] }
 0x2b6   :  { %5669 = vmatprep.subr.bf16.mxu0 %v6636_v0  ;;  %v5679_v20 = vpack.c.bf16 %v1632_v16, %v1631_v15  ;;  %v5682_v24 = vpack.c.bf16 %v1634_v18, %v1633_v17  ;;  %v1635_v25 = vld [vmem:[#allocation18 + $0x20] sm:$0xff]  ;;  %v1636_v26 = vld [vmem:[#allocation18 + $0x28] sm:$0xff]  ;;  %v1637_v31 = vld [vmem:[#allocation18 + $0x30] sm:$0xff]  ;;  %p6522_p2 = scmp.ne.s32.totalorder %s6821_s24, %s6521_s30  ;;  %p6525_p3 = scmp.lt.u32.totalorder %s6521_s30, %s6821_s24 }
 0x2b7   :  { %v5685_v30 = vpack.c.bf16 %v1636_v26, %v1635_v25  ;;  %v1638_v32 = vld [vmem:[#allocation18 + $0x38] sm:$0xff]  ;;  %v1946_v42 = vld [vmem:[#allocation7] sm:$0xff]  ;;  %v2073_v57 = vld [vmem:[#allocation9 + $0x8] sm:$0xff] }
 0x2b8   :  { %v1732_v13 = vld [vmem:[%s7721_s9] sm:$0xff]  ;;  %v1733_v14 = vld [vmem:[%s7721_s9 + $0x8] sm:$0xff]  ;;  %v1734_v22 = vld [vmem:[%s7721_s9 + $0x10] sm:$0xff]  ;;  %5680 = vmatpush3.bf16.msra.mxu1 %v5679_v20  ;;  %v5688_v35 = vpack.c.bf16 %v1638_v32, %v1637_v31  ;;  %p6527_p4 = pnand %p6525_p3, %p6522_p2 }
 0x2b9   :  { %5671 = vmatpush3.bf16.msra.mxu0 %v5670_v7  ;;  %v5690_v21 = vpack.c.bf16 %v1733_v14, %v1732_v13  ;;  %v1735_v23 = vld [vmem:[%s7721_s9 + $0x18] sm:$0xff]  ;;  %5681 = vmatprep.subr.bf16.mxu1 %v6636_v0  ;;  %v1541_v27 = vld [vmem:[%s7722_s5] sm:$0xff]  ;;  %v1949_v34 = vld [vmem:[%s7724_s11 + $0x8] sm:$0xff] }
 0x2ba   :  { %5672 = vmatprep.subr.bf16.mxu0 %v6636_v0  ;;  %v5694_v28 = vpack.c.bf16 %v1735_v23, %v1734_v22  ;;  %v1716_v29 = vld [vmem:[%s7723_s22] sm:$0xff]  ;;  %v1717_v37 = vld [vmem:[%s7723_s22 + $0x8] sm:$0xff]  ;;  %v1950_v38 = vld [vmem:[%s7724_s11 + $0x10] sm:$0xff] }
 0x2bb   :  { %v1948_v33 = vld [vmem:[%s7724_s11] sm:$0xff]  ;;  %v1951_v39 = vld [vmem:[%s7724_s11 + $0x18] sm:$0xff]  ;;  %v1718_v40 = vld [vmem:[%s7723_s22 + $0x10] sm:$0xff] }
 0x2bc   :  { %5683 = vmatpush3.bf16.msra.mxu1 %v5682_v24  ;;  %v5698_v36 = vpack.c.bf16 %v1949_v34, %v1948_v33  ;;  %v5702_v41 = vpack.c.bf16 %v1951_v39, %v1950_v38  ;;  %v1719_v43 = vld [vmem:[%s7723_s22 + $0x18] sm:$0xff]  ;;  %v1720_v44 = vld [vmem:[%s7723_s22 + $0x20] sm:$0xff]  ;;  %v1721_v45 = vld [vmem:[%s7723_s22 + $0x28] sm:$0xff] }
 0x2bd   :  { %5674 = vmatpush3.bf16.msra.mxu0 %v5673_v10  ;;  %5684 = vmatprep.subr.bf16.mxu1 %v6636_v0  ;;  %v1722_v46 = vld [vmem:[%s7723_s22 + $0x30] sm:$0xff]  ;;  %v1947_v47 = vld [vmem:[#allocation7 + $0x8] sm:$0xff]  ;;  %v1723_v48 = vld [vmem:[%s7723_s22 + $0x38] sm:$0xff] }
 0x2be   :  { %5675 = vmatprep.subr.bf16.mxu0 %v6636_v0  ;;  %v1724_v49 = vld [vmem:[%s7723_s22 + $0x40] sm:$0xff]  ;;  %v1725_v50 = vld [vmem:[%s7723_s22 + $0x48] sm:$0xff]  ;;  %v1726_v51 = vld [vmem:[%s7723_s22 + $0x50] sm:$0xff] }
 0x2bf   :  { %v1727_v52 = vld [vmem:[%s7723_s22 + $0x58] sm:$0xff]  ;;  %v1728_v53 = vld [vmem:[%s7723_s22 + $0x60] sm:$0xff]  ;;  %v1729_v54 = vld [vmem:[%s7723_s22 + $0x68] sm:$0xff] }
 0x2c0   :  { %5686 = vmatpush3.bf16.msra.mxu1 %v5685_v30  ;;  %v1730_v55 = vld [vmem:[%s7723_s22 + $0x70] sm:$0xff]  ;;  %v1731_v56 = vld [vmem:[%s7723_s22 + $0x78] sm:$0xff]  ;;  %v2075_v58 = vld [vmem:[#allocation9 + $0x18] sm:$0xff] }
 0x2c1   :  { %5677 = vmatpush3.bf16.msra.mxu0 %v5676_v19  ;;  %5687 = vmatprep.subr.bf16.mxu1 %v6636_v0  ;;  %v5706_v59 = vpack.c.bf16 %v2075_v58, %v2073_v57  ;;  %v2072_v60 = vld [vmem:[#allocation9] sm:$0xff]  ;;  %v2074_v61 = vld [vmem:[#allocation9 + $0x10] sm:$0xff]  ;;  %v1737_v6 = vld [vmem:[%s7725_s25 + $0x8] sm:$0xff] }
 0x2c2   :  { %5691 = vmatprep.subr.bf16.mxu0 %v5690_v21  ;;  %v5708_v62 = vpack.c.bf16 %v2074_v61, %v2072_v60  ;;  %v1736_v63 = vld [vmem:[%s7725_s25] sm:$0xff]  ;;  %v1738_v10 = vld [vmem:[%s7725_s25 + $0x10] sm:$0xff]  ;;  %v1739_v17 = vld [vmem:[%s7725_s25 + $0x18] sm:$0xff] }
 0x2c3   :  { %v4891_v14 = vld [vmem:[#allocation21] ss:$0 sm:$0xff]  ;;  %v1740_v22 = vld [vmem:[%s7725_s25 + $0x20] sm:$0xff]  ;;  %v2041_v61 = vld [vmem:[#allocation11 + $0x8] sm:$0xff] }
 0x2c4   :  { %5410 = vmatmul.mubr.msk.f32.vlgmr.msra.gmra.mrb[0].mxu0 %vm1557_vm1, %v1541_v27  ;;  %5689 = vmatpush3.bf16.msra.mxu1 %v5688_v35  ;;  %v1742_v31 = vld [vmem:[%s7725_s25 + $0x30] sm:$0xff]  ;;  %v1744_v39 = vld [vmem:[%s7725_s25 + $0x40] sm:$0xff] }
 0x2c5   :  { %5693 = vmatpush3.bf16.msra.mxu0 %v5690_v21  ;;  %5439 = vmatprep.mubr.msk.f32.mxu0 %vm1752_vm2, %v1716_v29  ;;  %v1741_v29 = vld [vmem:[%s7725_s25 + $0x28] sm:$0xff]  ;;  %v2042_v60 = vld [vmem:[#allocation11 + $0x10] sm:$0xff] }
 0x2c6   :  { %5695 = vmatprep.subr.bf16.mxu0 %v5694_v28  ;;  %5699 = vmatprep.subr.bf16.mxu1 %v5698_v36 }
 0x2c7   :  { %5429 = vmatmul.mubr.msk.f32.vlgmr.msra.gmra.mrb[0].mxu1 %vm1557_vm1, %v1541_v27 }
 0x2c8   :  { %5701 = vmatpush3.bf16.msra.mxu1 %v5698_v36  ;;  %5471 = vmatprep.mubr.msk.f32.mxu1 %vm1752_vm2, %v1946_v42 }
 0x2c9   :  { %5697 = vmatpush3.bf16.msra.mxu0 %v5694_v28  ;;  %5703 = vmatprep.subr.bf16.mxu1 %v5702_v41 }
 0x2cc   :  { %5440 = vmatmul.mubr.msk.f32.vlgmr.msra.gmra.mrb[2].mxu0 %vm1752_vm2, %v1717_v37  ;;  %5705 = vmatpush3.bf16.msra.mxu1 %v5702_v41  ;;  %v1743_v37 = vld [vmem:[%s7725_s25 + $0x38] sm:$0xff] }
 0x2cd   :  { %5442 = vmatprep.mubr.msk.f32.mxu0 %vm1752_vm2, %v1718_v40  ;;  %5707 = vmatprep.subr.bf16.mxu1 %v5706_v59  ;;  %v2040_v59 = vld [vmem:[#allocation11] sm:$0xff] }
 0x2cf   :  { %5472 = vmatmul.mubr.msk.f32.vlgmr.msra.gmra.mrb[2].mxu1 %vm1752_vm2, %v1947_v47  ;;  %v1747_v47 = vld [vmem:[%s7725_s25 + $0x58] sm:$0xff] }
 0x2d0   :  { %5443 = vmatmul.mubr.msk.f32.gmra.mrb[4].mxu0 %vm1752_vm2, %v1719_v43  ;;  %2189 = vmatprep.mubr.f32.mxu1 %v6639_v1  ;;  %v1745_v43 = vld [vmem:[%s7725_s25 + $0x48] sm:$0xff] }
 0x2d1   :  { %5445 = vmatprep.mubr.msk.f32.mxu0 %vm1752_vm2, %v1720_v44  ;;  %5709 = vmatpush1.bf16.msra.mxu1 %v5708_v62  ;;  %v1746_v44 = vld [vmem:[%s7725_s25 + $0x50] sm:$0xff]  ;;  %v2043_v62 = vld [vmem:[#allocation11 + $0x18] sm:$0xff] }
 0x2d4   :  { %5446 = vmatmul.mubr.msk.f32.gmra.mrb[6].mxu0 %vm1752_vm2, %v1721_v45 }
 0x2d5   :  { %5448 = vmatprep.mubr.msk.f32.mxu0 %vm1752_vm2, %v1722_v46 }
 0x2d8   :  { %5449 = vmatmul.mubr.msk.f32.gmra.mrb[8].mxu0 %vm1752_vm2, %v1723_v48  ;;  %v1748_v48 = vld [vmem:[%s7725_s25 + $0x60] sm:$0xff] }
 0x2d9   :  { %5451 = vmatprep.mubr.msk.f32.mxu0 %vm1752_vm2, %v1724_v49 }
 0x2dc   :  { %5452 = vmatmul.mubr.msk.f32.gmra.mrb[10].mxu0 %vm1752_vm2, %v1725_v50 }
 0x2dd   :  { %5454 = vmatprep.mubr.msk.f32.mxu0 %vm1752_vm2, %v1726_v51  ;;  %v1749_v51 = vld [vmem:[%s7725_s25 + $0x68] sm:$0xff] }
 0x2e0   :  { %5455 = vmatmul.mubr.msk.f32.gmra.mrb[12].mxu0 %vm1752_vm2, %v1727_v52  ;;  %v1750_v52 = vld [vmem:[%s7725_s25 + $0x70] sm:$0xff] }
 0x2e1   :  { %5457 = vmatprep.mubr.msk.f32.mxu0 %vm1752_vm2, %v1728_v53 }
 0x2e4   :  { %5458 = vmatmul.mubr.msk.f32.gmra.mrb[14].mxu0 %vm1752_vm2, %v1729_v54 }
 0x2e5   :  { %5460 = vmatprep.mubr.msk.f32.mxu0 %vm1752_vm2, %v1730_v55  ;;  %v1751_v55 = vld [vmem:[%s7725_s25 + $0x78] sm:$0xff] }
 0x2e8   :  { %5461 = vmatmul.mubr.msk.f32.gmra.mrb[16].mxu0 %vm1752_vm2, %v1731_v56 }
 0x2e9   :  { %2382 = vmatprep.mubr.f32.mxu0 %v6639_v1 }
 0x39a   :  { %v7275_v5 = vpop.f32.mrb[0].mxu1 }
 0x39b   :  { %v5430_v7 = vpop.f32.mrb[1].mxu1 }
 0x39f   :  { %v5441_v2 = vpop.f32.mrb[2].mxu0 }
 0x3a0   :  { %v1867_v3 = vpop.f32.mrb[3].mxu0  ;;  %v1873_v11 = vadd.f32 %v5441_v2, %v1737_v6 }
 0x3a1   :  { %v1868_v4 = vadd.f32 %v1867_v3, %v1736_v63 }
 0x3a2   :  { %v5473_v16 = vpop.f32.mrb[2].mxu1 }
 0x3a3   :  { %4894 = vmatmul.mubr.msk.f32.vlgmr.msra.gmra.mrb[4].mxu1 %vm2076_vm3, %v1868_v4  ;;  %v5444_v8 = vpop.f32.mrb[4].mxu0  ;;  %v2037_v18 = vadd.f32 %v5473_v16, %v4891_v14  ;;  %v2031_v19 = vpop.f32.mrb[3].mxu1 }
 0x3a4   :  { %2195 = vmatprep.mubr.f32.mxu1 %v6639_v1  ;;  %v1877_v9 = vpop.f32.mrb[5].mxu0  ;;  %v2032_v21 = vadd.f32 %v4891_v14, %v2031_v19  ;;  %v1883_v24 = vadd.f32 %v5444_v8, %v1739_v17  ;;  %v2045_v14 = vld [vmem:[#allocation11 + $0x28] sm:$0xff] }
 0x3a5   :  { %v1878_v12 = vadd.f32 %v1877_v9, %v1738_v10 }
 0x3a6   :  { %v5778_v25 = vpack.c.bf16 %v2037_v18, %v2032_v21 }
 0x3a7   :  { %4895 = vmatmul.mubr.msk.f32.gmra.mrb[6].mxu1 %vm2076_vm3, %v1873_v11  ;;  %v5447_v13 = vpop.f32.mrb[6].mxu0 }
 0x3a8   :  { %2201 = vmatprep.mubr.f32.mxu1 %v6639_v1  ;;  %v1887_v15 = vpop.f32.mrb[7].mxu0  ;;  %5779 = vmatprep.subr.bf16.mxu1 %v5778_v25  ;;  %v1893_v33 = vadd.f32 %v5447_v13, %v1741_v29  ;;  %v2046_v13 = vld [vmem:[#allocation11 + $0x30] sm:$0xff]  ;;  %v2051_v29 = vld [vmem:[#allocation11 + $0x58] sm:$0xff] }
 0x3a9   :  { %v1888_v26 = vadd.f32 %v1887_v15, %v1740_v22  ;;  %5781 = vmatpush3.bf16.msra.mxu1 %v5778_v25  ;;  %v2047_v15 = vld [vmem:[#allocation11 + $0x38] sm:$0xff] }
 0x3ab   :  { %4896 = vmatmul.mubr.msk.f32.gmra.mrb[8].mxu1 %vm2076_vm3, %v1878_v12  ;;  %v5450_v20 = vpop.f32.mrb[8].mxu0  ;;  %v2044_v12 = vld [vmem:[#allocation11 + $0x20] sm:$0xff] }
 0x3ac   :  { %2207 = vmatprep.mubr.f32.mxu1 %v6639_v1  ;;  %v1897_v23 = vpop.f32.mrb[9].mxu0  ;;  %v1903_v41 = vadd.f32 %v5450_v20, %v1743_v37 }
 0x3ad   :  { %v1898_v34 = vadd.f32 %v1897_v23, %v1742_v31 }
 0x3af   :  { %4897 = vmatmul.mubr.msk.f32.gmra.mrb[10].mxu1 %vm2076_vm3, %v1883_v24  ;;  %v5453_v27 = vpop.f32.mrb[10].mxu0 }
 0x3b0   :  { %2213 = vmatprep.mubr.f32.mxu1 %v6639_v1  ;;  %v1907_v28 = vpop.f32.mrb[11].mxu0  ;;  %v1913_v45 = vadd.f32 %v5453_v27, %v1745_v43  ;;  %v2050_v27 = vld [vmem:[#allocation11 + $0x50] sm:$0xff]  ;;  %v2055_v43 = vld [vmem:[#allocation11 + $0x78] sm:$0xff] }
 0x3b1   :  { %v1908_v42 = vadd.f32 %v1907_v28, %v1744_v39  ;;  %v2049_v28 = vld [vmem:[#allocation11 + $0x48] sm:$0xff] }
 0x3b3   :  { %4898 = vmatmul.mubr.msk.f32.gmra.mrb[12].mxu1 %vm2076_vm3, %v1888_v26  ;;  %v5456_v30 = vpop.f32.mrb[12].mxu0  ;;  %v2048_v26 = vld [vmem:[#allocation11 + $0x40] sm:$0xff] }
 0x3b4   :  { %2219 = vmatprep.mubr.f32.mxu1 %v6639_v1  ;;  %v1917_v32 = vpop.f32.mrb[13].mxu0  ;;  %v1923_v49 = vadd.f32 %v5456_v30, %v1747_v47 }
 0x3b5   :  { %v1918_v46 = vadd.f32 %v1917_v32, %v1746_v44 }
 0x3b7   :  { %4899 = vmatmul.mubr.msk.f32.gmra.mrb[14].mxu1 %vm2076_vm3, %v1893_v33  ;;  %v5459_v35 = vpop.f32.mrb[14].mxu0 }
 0x3b8   :  { %2225 = vmatprep.mubr.f32.mxu1 %v6639_v1  ;;  %v1927_v36 = vpop.f32.mrb[15].mxu0  ;;  %v1933_v53 = vadd.f32 %v5459_v35, %v1749_v51 }
 0x3b9   :  { %v1928_v50 = vadd.f32 %v1927_v36, %v1748_v48 }
 0x3bb   :  { %4900 = vmatmul.mubr.msk.f32.gmra.mrb[16].mxu1 %vm2076_vm3, %v1898_v34  ;;  %v5462_v38 = vpop.f32.mrb[16].mxu0 }
 0x3bc   :  { %2231 = vmatprep.mubr.f32.mxu1 %v6639_v1  ;;  %v1937_v40 = vpop.f32.mrb[17].mxu0  ;;  %v1943_v56 = vadd.f32 %v5462_v38, %v1751_v55  ;;  %v2058_v55 = vld [vmem:[#allocation11 + $0x90] sm:$0xff] }
 0x3bd   :  { %v1938_v54 = vadd.f32 %v1937_v40, %v1750_v52  ;;  %v2052_v40 = vld [vmem:[#allocation11 + $0x60] sm:$0xff] }
 0x3bf   :  { %4901 = vmatmul.mubr.msk.f32.gmra.mrb[18].mxu1 %vm2076_vm3, %v1903_v41  ;;  %v2054_v41 = vld [vmem:[#allocation11 + $0x70] sm:$0xff] }
 0x3c0   :  { %2237 = vmatprep.mubr.f32.mxu1 %v6639_v1 }
 0x3c3   :  { %4902 = vmatmul.mubr.msk.f32.gmra.mrb[20].mxu1 %vm2076_vm3, %v1908_v42  ;;  %v2053_v42 = vld [vmem:[#allocation11 + $0x68] sm:$0xff] }
 0x3c4   :  { %2243 = vmatprep.mubr.f32.mxu1 %v6639_v1 }
 0x3c7   :  { %4903 = vmatmul.mubr.msk.f32.gmra.mrb[22].mxu1 %vm2076_vm3, %v1913_v45 }
 0x3c8   :  { %2249 = vmatprep.mubr.f32.mxu1 %v6639_v1 }
 0x3cb   :  { %4904 = vmatmul.mubr.msk.f32.gmra.mrb[24].mxu1 %vm2076_vm3, %v1918_v46 }
 0x3cc   :  { %2255 = vmatprep.mubr.f32.mxu1 %v6639_v1 }
 0x3cf   :  { %4905 = vmatmul.mubr.msk.f32.gmra.mrb[26].mxu1 %vm2076_vm3, %v1923_v49 }
 0x3d0   :  { %2261 = vmatprep.mubr.f32.mxu1 %v6639_v1 }
 0x3d3   :  { %4906 = vmatmul.mubr.msk.f32.gmra.mrb[28].mxu1 %vm2076_vm3, %v1928_v50 }
 0x3d4   :  { %2267 = vmatprep.mubr.f32.mxu1 %v6639_v1 }
 0x3d7   :  { %4907 = vmatmul.mubr.msk.f32.gmra.mrb[30].mxu1 %vm2076_vm3, %v1933_v53 }
 0x3d8   :  { %2273 = vmatprep.mubr.f32.mxu1 %v6639_v1 }
 0x3db   :  { %4908 = vmatmul.mubr.msk.f32.gmra.mrb[32].mxu1 %vm2076_vm3, %v1938_v54  ;;  %v2056_v54 = vld [vmem:[#allocation11 + $0x80] sm:$0xff] }
 0x3dc   :  { %2279 = vmatprep.mubr.f32.mxu1 %v6639_v1 }
 0x3df   :  { %4909 = vmatmul.mubr.msk.f32.gmra.mrb[34].mxu1 %vm2076_vm3, %v1943_v56  ;;  %v2057_v56 = vld [vmem:[#allocation11 + $0x88] sm:$0xff] }
 0x476   :  { %v2191_v57 = vpop.f32.mrb[4].mxu1 }
 0x477   :  { %v2193_v58 = vpop.f32.mrb[5].mxu1  ;;  %v2286_v2 = vmul.f32 %v2191_v57, %v2040_v59  ;;  %v2059_v57 = vld [vmem:[#allocation11 + $0x98] sm:$0xff] }
 0x478   :  { %v2287_v6 = vmul.f32 %v2193_v58, %v2041_v61 }
 0x47a   :  { %v2197_v63 = vpop.f32.mrb[6].mxu1 }
 0x47b   :  { %v2288_v3 = vmul.f32 %v2197_v63, %v2042_v60  ;;  %v2199_v4 = vpop.f32.mrb[7].mxu1 }
 0x47c   :  { %v2289_v7 = vmul.f32 %v2199_v4, %v2043_v62 }
 0x47d   :  { %v5712_v8 = vpack.c.bf16 %v2288_v3, %v2286_v2 }
 0x47e   :  { %v5710_v9 = vpack.c.bf16 %v2289_v7, %v2287_v6  ;;  %v2203_v10 = vpop.f32.mrb[8].mxu1  ;;  %v2060_v7 = vld [vmem:[#allocation11 + $0xa0] sm:$0xff] }
 0x47f   :  { %v2205_v11 = vpop.f32.mrb[9].mxu1  ;;  %v2290_v17 = vmul.f32 %v2203_v10, %v2044_v12  ;;  %v2063_v10 = vld [vmem:[#allocation11 + $0xb8] sm:$0xff] }
 0x480   :  { %5711 = vmatprep.subr.bf16.mxu0 %v5710_v9  ;;  %v2291_v20 = vmul.f32 %v2205_v11, %v2045_v14  ;;  %v2061_v9 = vld [vmem:[#allocation11 + $0xa8] sm:$0xff] }
 0x481   :  { %5713 = vmatpush1.bf16.msra.mxu0 %v5712_v8  ;;  %v2062_v8 = vld [vmem:[#allocation11 + $0xb0] sm:$0xff] }
 0x482   :  { %v2209_v16 = vpop.f32.mrb[10].mxu1 }
 0x483   :  { %v2292_v18 = vmul.f32 %v2209_v16, %v2046_v13  ;;  %v2211_v19 = vpop.f32.mrb[11].mxu1 }
 0x484   :  { %v2293_v21 = vmul.f32 %v2211_v19, %v2047_v15 }
 0x485   :  { %v5716_v22 = vpack.c.bf16 %v2292_v18, %v2290_v17 }
 0x486   :  { %v5714_v23 = vpack.c.bf16 %v2293_v21, %v2291_v20  ;;  %v2215_v24 = vpop.f32.mrb[12].mxu1  ;;  %v2064_v21 = vld [vmem:[#allocation11 + $0xc0] sm:$0xff] }
 0x487   :  { %v2217_v25 = vpop.f32.mrb[13].mxu1  ;;  %v2294_v31 = vmul.f32 %v2215_v24, %v2048_v26  ;;  %v2067_v24 = vld [vmem:[#allocation11 + $0xd8] sm:$0xff] }
 0x488   :  { %5715 = vmatprep.subr.bf16.mxu0 %v5714_v23  ;;  %v2295_v34 = vmul.f32 %v2217_v25, %v2049_v28  ;;  %v2065_v23 = vld [vmem:[#allocation11 + $0xc8] sm:$0xff] }
 0x489   :  { %5717 = vmatpush1.bf16.msra.mxu0 %v5716_v22  ;;  %v2066_v22 = vld [vmem:[#allocation11 + $0xd0] sm:$0xff] }
 0x48a   :  { %v2221_v30 = vpop.f32.mrb[14].mxu1 }
 0x48b   :  { %v2296_v32 = vmul.f32 %v2221_v30, %v2050_v27  ;;  %v2223_v33 = vpop.f32.mrb[15].mxu1 }
 0x48c   :  { %v2297_v35 = vmul.f32 %v2223_v33, %v2051_v29 }
 0x48d   :  { %v5720_v36 = vpack.c.bf16 %v2296_v32, %v2294_v31 }
 0x48e   :  { %v5718_v37 = vpack.c.bf16 %v2297_v35, %v2295_v34  ;;  %v2227_v38 = vpop.f32.mrb[16].mxu1  ;;  %v2068_v35 = vld [vmem:[#allocation11 + $0xe0] sm:$0xff] }
 0x48f   :  { %v2229_v39 = vpop.f32.mrb[17].mxu1  ;;  %v2298_v45 = vmul.f32 %v2227_v38, %v2052_v40  ;;  %v2071_v38 = vld [vmem:[#allocation11 + $0xf8] sm:$0xff] }
 0x490   :  { %5719 = vmatprep.subr.bf16.mxu0 %v5718_v37  ;;  %v2299_v48 = vmul.f32 %v2229_v39, %v2053_v42  ;;  %v2069_v37 = vld [vmem:[#allocation11 + $0xe8] sm:$0xff] }
 0x491   :  { %5721 = vmatpush1.bf16.msra.mxu0 %v5720_v36  ;;  %v2070_v36 = vld [vmem:[#allocation11 + $0xf0] sm:$0xff] }
 0x492   :  { %v2233_v44 = vpop.f32.mrb[18].mxu1 }
 0x493   :  { %v2300_v46 = vmul.f32 %v2233_v44, %v2054_v41  ;;  %v2235_v47 = vpop.f32.mrb[19].mxu1 }
 0x494   :  { %v2301_v49 = vmul.f32 %v2235_v47, %v2055_v43  ;;  %v4873_v47 = vld [vmem:[#allocation20] ss:$0 sm:$0xff] }
 0x495   :  { %v5724_v50 = vpack.c.bf16 %v2300_v46, %v2298_v45 }
 0x496   :  { %v5722_v51 = vpack.c.bf16 %v2301_v49, %v2299_v48  ;;  %v2239_v52 = vpop.f32.mrb[20].mxu1  ;;  %v1713_v48 = vadd.f32 %v4873_v47, %v7275_v5  ;;  %v2414_v49 = vld [vmem:[%s7726_s3 + $0x80] sm:$0xff]  ;;  %v2419_v5 = vld [vmem:[%s7726_s3 + $0xa8] sm:$0xff] }
 0x497   :  { %v2241_v53 = vpop.f32.mrb[21].mxu1  ;;  %v2302_v59 = vmul.f32 %v2239_v52, %v2056_v54  ;;  %v2416_v54 = vld [vmem:[%s7726_s3 + $0x90] sm:$0xff]  ;;  %v2623_v47 = vld [vmem:[%s7727_s1 + $0x48] sm:$0xff] }
 0x498   :  { %5723 = vmatprep.subr.bf16.mxu0 %v5722_v51  ;;  %v2303_v62 = vmul.f32 %v2241_v53, %v2057_v56  ;;  %v2398_v51 = vld [vmem:[%s7726_s3] sm:$0xff]  ;;  %v2399_v53 = vld [vmem:[%s7726_s3 + $0x8] sm:$0xff] }
 0x499   :  { %5725 = vmatpush1.bf16.msra.mxu0 %v5724_v50  ;;  %v2415_v50 = vld [vmem:[%s7726_s3 + $0x88] sm:$0xff]  ;;  %v5744_v56 = vpack.c.bf16 %v2399_v53, %v2398_v51  ;;  %v2629_v53 = vld [vmem:[%s7727_s1 + $0x78] sm:$0xff] }
 0x49a   :  { %v2245_v58 = vpop.f32.mrb[22].mxu1  ;;  %v5742_v52 = vpack.c.bf16 %v2415_v50, %v2414_v49  ;;  %v2625_v49 = vld [vmem:[%s7727_s1 + $0x58] sm:$0xff]  ;;  %v2626_v50 = vld [vmem:[%s7727_s1 + $0x60] sm:$0xff]  ;;  %v2627_v51 = vld [vmem:[%s7727_s1 + $0x68] sm:$0xff] }
 0x49b   :  { %v2304_v60 = vmul.f32 %v2245_v58, %v2058_v55  ;;  %v2247_v61 = vpop.f32.mrb[23].mxu1  ;;  %v2417_v55 = vld [vmem:[%s7726_s3 + $0x98] sm:$0xff]  ;;  %v2400_v58 = vld [vmem:[%s7726_s3 + $0x10] sm:$0xff] }
 0x49c   :  { %v2305_v63 = vmul.f32 %v2247_v61, %v2059_v57  ;;  %v5746_v57 = vpack.c.bf16 %v2417_v55, %v2416_v54  ;;  %v2630_v54 = vld [vmem:[%s7727_s1 + $0x80] sm:$0xff]  ;;  %v2631_v55 = vld [vmem:[%s7727_s1 + $0x88] sm:$0xff] }
 0x49d   :  { %v5728_v2 = vpack.c.bf16 %v2304_v60, %v2302_v59  ;;  %v2401_v59 = vld [vmem:[%s7726_s3 + $0x18] sm:$0xff]  ;;  %v2418_v60 = vld [vmem:[%s7726_s3 + $0xa0] sm:$0xff] }
 0x49e   :  { %v5726_v3 = vpack.c.bf16 %v2305_v63, %v2303_v62  ;;  %v2251_v4 = vpop.f32.mrb[24].mxu1  ;;  %v5748_v61 = vpack.c.bf16 %v2401_v59, %v2400_v58  ;;  %v5750_v62 = vpack.c.bf16 %v2419_v5, %v2418_v60  ;;  %v2402_v63 = vld [vmem:[%s7726_s3 + $0x20] sm:$0xff]  ;;  %v2635_v59 = vld [vmem:[%s7727_s1 + $0xa8] sm:$0xff]  ;;  %v2636_v60 = vld [vmem:[%s7727_s1 + $0xb0] sm:$0xff] }
 0x49f   :  { %v2253_v6 = vpop.f32.mrb[25].mxu1  ;;  %v2306_v12 = vmul.f32 %v2251_v4, %v2060_v7  ;;  %v2421_v4 = vld [vmem:[%s7726_s3 + $0xb8] sm:$0xff]  ;;  %v2634_v58 = vld [vmem:[%s7727_s1 + $0xa0] sm:$0xff] }
 0x4a0   :  { %5727 = vmatprep.subr.bf16.mxu0 %v5726_v3  ;;  %v2307_v15 = vmul.f32 %v2253_v6, %v2061_v9  ;;  %v2420_v3 = vld [vmem:[%s7726_s3 + $0xb0] sm:$0xff]  ;;  %v2405_v9 = vld [vmem:[%s7726_s3 + $0x38] sm:$0xff] }
 0x4a1   :  { %5729 = vmatpush1.bf16.msra.mxu0 %v5728_v2  ;;  %v2403_v2 = vld [vmem:[%s7726_s3 + $0x28] sm:$0xff]  ;;  %v5754_v7 = vpack.c.bf16 %v2421_v4, %v2420_v3  ;;  %v2637_v5 = vld [vmem:[%s7727_s1 + $0xb8] sm:$0xff]  ;;  %v2642_v3 = vld [vmem:[%s7727_s1 + $0xe0] sm:$0xff] }
 0x4a2   :  { %v2257_v11 = vpop.f32.mrb[26].mxu1  ;;  %v5752_v6 = vpack.c.bf16 %v2403_v2, %v2402_v63  ;;  %v2640_v63 = vld [vmem:[%s7727_s1 + $0xd0] sm:$0xff]  ;;  %v2641_v2 = vld [vmem:[%s7727_s1 + $0xd8] sm:$0xff]  ;;  %v2643_v4 = vld [vmem:[%s7727_s1 + $0xe8] sm:$0xff] }
 0x4a3   :  { %v2308_v13 = vmul.f32 %v2257_v11, %v2062_v8  ;;  %v2259_v14 = vpop.f32.mrb[27].mxu1  ;;  %v2404_v8 = vld [vmem:[%s7726_s3 + $0x30] sm:$0xff] }
 0x4a4   :  { %v2309_v16 = vmul.f32 %v2259_v14, %v2063_v10  ;;  %v5756_v10 = vpack.c.bf16 %v2405_v9, %v2404_v8  ;;  %v2422_v14 = vld [vmem:[%s7726_s3 + $0xc0] sm:$0xff] }
 0x4a5   :  { %v5732_v17 = vpack.c.bf16 %v2308_v13, %v2306_v12 }
 0x4a6   :  { %v5730_v18 = vpack.c.bf16 %v2309_v16, %v2307_v15  ;;  %v2263_v19 = vpop.f32.mrb[28].mxu1  ;;  %v2423_v15 = vld [vmem:[%s7726_s3 + $0xc8] sm:$0xff] }
 0x4a7   :  { %v2265_v20 = vpop.f32.mrb[29].mxu1  ;;  %v2310_v26 = vmul.f32 %v2263_v19, %v2064_v21  ;;  %v5758_v16 = vpack.c.bf16 %v2423_v15, %v2422_v14  ;;  %v2425_v21 = vld [vmem:[%s7726_s3 + $0xd8] sm:$0xff] }
 0x4a8   :  { %5731 = vmatprep.subr.bf16.mxu0 %v5730_v18  ;;  %v2311_v29 = vmul.f32 %v2265_v20, %v2065_v23  ;;  %v2407_v18 = vld [vmem:[%s7726_s3 + $0x48] sm:$0xff]  ;;  %v2424_v20 = vld [vmem:[%s7726_s3 + $0xd0] sm:$0xff] }
 0x4a9   :  { %5733 = vmatpush1.bf16.msra.mxu0 %v5732_v17  ;;  %v2406_v17 = vld [vmem:[%s7726_s3 + $0x40] sm:$0xff]  ;;  %v2408_v23 = vld [vmem:[%s7726_s3 + $0x50] sm:$0xff] }
 0x4aa   :  { %v2269_v25 = vpop.f32.mrb[30].mxu1  ;;  %v5760_v19 = vpack.c.bf16 %v2407_v18, %v2406_v17  ;;  %v2501_v17 = vld [vmem:[#allocation14 + $0x8] sm:$0xff]  ;;  %v2503_v18 = vld [vmem:[#allocation14 + $0x18] sm:$0xff] }
 0x4ab   :  { %v2312_v27 = vmul.f32 %v2269_v25, %v2066_v22  ;;  %v2271_v28 = vpop.f32.mrb[31].mxu1  ;;  %v5762_v22 = vpack.c.bf16 %v2425_v21, %v2424_v20  ;;  %v2502_v20 = vld [vmem:[#allocation14 + $0x10] sm:$0xff]  ;;  %v2583_v21 = vld [vmem:[#allocation12 + $0x8] sm:$0xff] }
 0x4ac   :  { %v2313_v30 = vmul.f32 %v2271_v28, %v2067_v24  ;;  %v2409_v24 = vld [vmem:[%s7726_s3 + $0x58] sm:$0xff]  ;;  %v2410_v28 = vld [vmem:[%s7726_s3 + $0x60] sm:$0xff] }
 0x4ad   :  { %v5736_v31 = vpack.c.bf16 %v2312_v27, %v2310_v26  ;;  %v5764_v25 = vpack.c.bf16 %v2409_v24, %v2408_v23  ;;  %v2426_v26 = vld [vmem:[%s7726_s3 + $0xe0] sm:$0xff]  ;;  %v2427_v27 = vld [vmem:[%s7726_s3 + $0xe8] sm:$0xff]  ;;  %v2582_v23 = vld [vmem:[#allocation12] sm:$0xff] }
 0x4ae   :  { %v5734_v32 = vpack.c.bf16 %v2313_v30, %v2311_v29  ;;  %v2275_v33 = vpop.f32.mrb[32].mxu1  ;;  %v5766_v29 = vpack.c.bf16 %v2427_v27, %v2426_v26  ;;  %v2411_v30 = vld [vmem:[%s7726_s3 + $0x68] sm:$0xff]  ;;  %v2584_v27 = vld [vmem:[#allocation12 + $0x10] sm:$0xff] }
 0x4af   :  { %v2277_v34 = vpop.f32.mrb[33].mxu1  ;;  %v2314_v40 = vmul.f32 %v2275_v33, %v2068_v35  ;;  %v5768_v33 = vpack.c.bf16 %v2411_v30, %v2410_v28  ;;  %v2412_v35 = vld [vmem:[%s7726_s3 + $0x70] sm:$0xff]  ;;  %v2585_v24 = vld [vmem:[#allocation12 + $0x18] sm:$0xff] }
 0x4b0   :  { %5735 = vmatprep.subr.bf16.mxu0 %v5734_v32  ;;  %v2315_v43 = vmul.f32 %v2277_v34, %v2069_v37  ;;  %v2429_v32 = vld [vmem:[%s7726_s3 + $0xf8] sm:$0xff] }
 0x4b1   :  { %5737 = vmatpush1.bf16.msra.mxu0 %v5736_v31  ;;  %v2428_v31 = vld [vmem:[%s7726_s3 + $0xf0] sm:$0xff] }
 0x4b2   :  { %v2281_v39 = vpop.f32.mrb[34].mxu1  ;;  %v5770_v34 = vpack.c.bf16 %v2429_v32, %v2428_v31 }
 0x4b3   :  { %v2316_v41 = vmul.f32 %v2281_v39, %v2070_v36  ;;  %v2283_v42 = vpop.f32.mrb[35].mxu1  ;;  %v2413_v36 = vld [vmem:[%s7726_s3 + $0x78] sm:$0xff]  ;;  %v2615_v39 = vld [vmem:[%s7727_s1 + $0x8] sm:$0xff] }
 0x4b4   :  { %v2317_v44 = vmul.f32 %v2283_v42, %v2071_v38  ;;  %v5772_v37 = vpack.c.bf16 %v2413_v36, %v2412_v35  ;;  %v2614_v38 = vld [vmem:[%s7727_s1] sm:$0xff]  ;;  %v2586_v35 = vld [vmem:[#allocation12 + $0x20] sm:$0xff] }
 0x4b5   :  { %v5740_v45 = vpack.c.bf16 %v2316_v41, %v2314_v40  ;;  %v2616_v40 = vld [vmem:[%s7727_s1 + $0x10] sm:$0xff]  ;;  %5478 = vmatprep.mubr.msk.f32.mxu1 %vm2076_vm3, %v2614_v38  ;;  %v2617_v41 = vld [vmem:[%s7727_s1 + $0x18] sm:$0xff]  ;;  %v2618_v42 = vld [vmem:[%s7727_s1 + $0x20] sm:$0xff] }
 0x4b6   :  { %v5738_v46 = vpack.c.bf16 %v2317_v44, %v2315_v43  ;;  %5479 = vmatmul.mubr.msk.f32.vlgmr.msra.gmra.mrb[36].mxu1 %vm2076_vm3, %v2615_v39  ;;  %v2619_v43 = vld [vmem:[%s7727_s1 + $0x28] sm:$0xff]  ;;  %v2620_v44 = vld [vmem:[%s7727_s1 + $0x30] sm:$0xff] }
 0x4b7   :  { %5481 = vmatprep.mubr.msk.f32.mxu1 %vm2076_vm3, %v2616_v40 }
 0x4b8   :  { %5739 = vmatprep.subr.bf16.mxu0 %v5738_v46  ;;  %v2622_v46 = vld [vmem:[%s7727_s1 + $0x40] sm:$0xff] }
 0x4b9   :  { %5741 = vmatpush1.bf16.msra.mxu0 %v5740_v45  ;;  %v2621_v45 = vld [vmem:[%s7727_s1 + $0x38] sm:$0xff] }
 0x4ba   :  { %5743 = vmatprep.subr.bf16.mxu0 %v5742_v52  ;;  %5482 = vmatmul.mubr.msk.f32.gmra.mrb[38].mxu1 %vm2076_vm3, %v2617_v41  ;;  %v2628_v52 = vld [vmem:[%s7727_s1 + $0x70] sm:$0xff]  ;;  %v2589_v41 = vld [vmem:[#allocation12 + $0x38] sm:$0xff] }
 0x4bb   :  { %5484 = vmatprep.mubr.msk.f32.mxu1 %vm2076_vm3, %v2618_v42  ;;  %v2588_v42 = vld [vmem:[#allocation12 + $0x30] sm:$0xff] }
 0x4bc   :  { %2383 = vmatmul.mubr.f32.vlgmr.msra.gmra.mrb[18].mxu0 %v1713_v48  ;;  %v2624_v48 = vld [vmem:[%s7727_s1 + $0x50] sm:$0xff] }
 0x4bd   :  { %5745 = vmatpush3.bf16.msra.mxu0 %v5744_v56  ;;  %v2632_v56 = vld [vmem:[%s7727_s1 + $0x90] sm:$0xff] }
 0x4be   :  { %5747 = vmatprep.subr.bf16.mxu0 %v5746_v57  ;;  %5485 = vmatmul.mubr.msk.f32.gmra.mrb[40].mxu1 %vm2076_vm3, %v2619_v43  ;;  %v2633_v57 = vld [vmem:[%s7727_s1 + $0x98] sm:$0xff] }
 0x4bf   :  { %5487 = vmatprep.mubr.msk.f32.mxu1 %vm2076_vm3, %v2620_v44 }
 0x4c1   :  { %5749 = vmatpush3.bf16.msra.mxu0 %v5748_v61  ;;  %v2638_v61 = vld [vmem:[%s7727_s1 + $0xc0] sm:$0xff] }
 0x4c2   :  { %5751 = vmatprep.subr.bf16.mxu0 %v5750_v62  ;;  %5488 = vmatmul.mubr.msk.f32.gmra.mrb[42].mxu1 %vm2076_vm3, %v2621_v45  ;;  %v2639_v62 = vld [vmem:[%s7727_s1 + $0xc8] sm:$0xff] }
 0x4c3   :  { %5490 = vmatprep.mubr.msk.f32.mxu1 %vm2076_vm3, %v2622_v46 }
 0x4c5   :  { %5753 = vmatpush3.bf16.msra.mxu0 %v5752_v6  ;;  %v2644_v6 = vld [vmem:[%s7727_s1 + $0xf0] sm:$0xff] }
 0x4c6   :  { %5755 = vmatprep.subr.bf16.mxu0 %v5754_v7  ;;  %5491 = vmatmul.mubr.msk.f32.gmra.mrb[44].mxu1 %vm2076_vm3, %v2623_v47  ;;  %v2645_v7 = vld [vmem:[%s7727_s1 + $0xf8] sm:$0xff] }
 0x4c7   :  { %5493 = vmatprep.mubr.msk.f32.mxu1 %vm2076_vm3, %v2624_v48  ;;  %v2591_v48 = vld [vmem:[#allocation12 + $0x48] sm:$0xff] }
 0x4c9   :  { %5757 = vmatpush3.bf16.msra.mxu0 %v5756_v10 }
 0x4ca   :  { %5759 = vmatprep.subr.bf16.mxu0 %v5758_v16  ;;  %5494 = vmatmul.mubr.msk.f32.gmra.mrb[46].mxu1 %vm2076_vm3, %v2625_v49  ;;  %v2590_v49 = vld [vmem:[#allocation12 + $0x40] sm:$0xff] }
 0x4cb   :  { %5496 = vmatprep.mubr.msk.f32.mxu1 %vm2076_vm3, %v2626_v50 }
 0x4cd   :  { %5761 = vmatpush3.bf16.msra.mxu0 %v5760_v19  ;;  %v5774_v19 = vpack.c.bf16 %v2503_v18, %v2501_v17  ;;  %v2599_v18 = vld [vmem:[#allocation12 + $0x88] sm:$0xff] }
 0x4ce   :  { %5763 = vmatprep.subr.bf16.mxu0 %v5762_v22  ;;  %5497 = vmatmul.mubr.msk.f32.gmra.mrb[48].mxu1 %vm2076_vm3, %v2627_v51 }
 0x4cf   :  { %5499 = vmatprep.mubr.msk.f32.mxu1 %vm2076_vm3, %v2628_v52 }
 0x4d1   :  { %5765 = vmatpush3.bf16.msra.mxu0 %v5764_v25 }
 0x4d2   :  { %5767 = vmatprep.subr.bf16.mxu0 %v5766_v29  ;;  %5500 = vmatmul.mubr.msk.f32.gmra.mrb[50].mxu1 %vm2076_vm3, %v2629_v53 }
 0x4d3   :  { %5502 = vmatprep.mubr.msk.f32.mxu1 %vm2076_vm3, %v2630_v54 }
 0x4d5   :  { %5769 = vmatpush3.bf16.msra.mxu0 %v5768_v33 }
 0x4d6   :  { %5771 = vmatprep.subr.bf16.mxu0 %v5770_v34  ;;  %5503 = vmatmul.mubr.msk.f32.gmra.mrb[52].mxu1 %vm2076_vm3, %v2631_v55  ;;  %v2587_v34 = vld [vmem:[#allocation12 + $0x28] sm:$0xff]  ;;  %v2593_v55 = vld [vmem:[#allocation12 + $0x58] sm:$0xff] }
 0x4d7   :  { %5505 = vmatprep.mubr.msk.f32.mxu1 %vm2076_vm3, %v2632_v56  ;;  %v2592_v56 = vld [vmem:[#allocation12 + $0x50] sm:$0xff] }
 0x4d9   :  { %5773 = vmatpush3.bf16.msra.mxu0 %v5772_v37 }
 0x4da   :  { %5506 = vmatmul.mubr.msk.f32.gmra.mrb[54].mxu1 %vm2076_vm3, %v2633_v57  ;;  %5775 = vmatprep.subr.bf16.mxu0 %v5774_v19  ;;  %v2598_v19 = vld [vmem:[#allocation12 + $0x80] sm:$0xff] }
 0x4db   :  { %5508 = vmatprep.mubr.msk.f32.mxu1 %vm2076_vm3, %v2634_v58 }
 0x4de   :  { %5509 = vmatmul.mubr.msk.f32.gmra.mrb[56].mxu1 %vm2076_vm3, %v2635_v59 }
 0x4df   :  { %5511 = vmatprep.mubr.msk.f32.mxu1 %vm2076_vm3, %v2636_v60 }
 0x4e2   :  { %5512 = vmatmul.mubr.msk.f32.gmra.mrb[58].mxu1 %vm2076_vm3, %v2637_v5 }
 0x4e3   :  { %5514 = vmatprep.mubr.msk.f32.mxu1 %vm2076_vm3, %v2638_v61  ;;  %v2595_v61 = vld [vmem:[#allocation12 + $0x68] sm:$0xff] }
 0x4e6   :  { %5515 = vmatmul.mubr.msk.f32.gmra.mrb[60].mxu1 %vm2076_vm3, %v2639_v62  ;;  %v2594_v62 = vld [vmem:[#allocation12 + $0x60] sm:$0xff] }
 0x4e7   :  { %5517 = vmatprep.mubr.msk.f32.mxu1 %vm2076_vm3, %v2640_v63 }
 0x4ea   :  { %5518 = vmatmul.mubr.msk.f32.gmra.mrb[62].mxu1 %vm2076_vm3, %v2641_v2 }
 0x4eb   :  { %5520 = vmatprep.mubr.msk.f32.mxu1 %vm2076_vm3, %v2642_v3 }
 0x4ee   :  { %5521 = vmatmul.mubr.msk.f32.gmra.mrb[64].mxu1 %vm2076_vm3, %v2643_v4 }
 0x4ef   :  { %5523 = vmatprep.mubr.msk.f32.mxu1 %vm2076_vm3, %v2644_v6 }
 0x4f2   :  { %5524 = vmatmul.mubr.msk.f32.gmra.mrb[66].mxu1 %vm2076_vm3, %v2645_v7  ;;  %v2597_v7 = vld [vmem:[#allocation12 + $0x78] sm:$0xff] }
 0x589   :  { %v5480_v22 = vpop.f32.mrb[36].mxu1 }
 0x58a   :  { %v7435_v25 = vmul.f32 %v5480_v22, %v2583_v21  ;;  %v2808_v26 = vpop.f32.mrb[37].mxu1 }
 0x58b   :  { %v7437_v28 = vmul.f32 %v2808_v26, %v2582_v23  ;;  %v2601_v23 = vld [vmem:[#allocation12 + $0x98] sm:$0xff] }
 0x58d   :  { %v5483_v29 = vpop.f32.mrb[38].mxu1  ;;  %v5784_v32 = vpack.c.bf16 %v7435_v25, %v7437_v28 }
 0x58e   :  { %v7439_v30 = vmul.f32 %v5483_v29, %v2585_v24  ;;  %v2818_v31 = vpop.f32.mrb[39].mxu1  ;;  %v2600_v24 = vld [vmem:[#allocation12 + $0x90] sm:$0xff] }
 0x58f   :  { %v7340_v11 = vpop.f32.mrb[18].mxu0  ;;  %v7443_v33 = vmul.f32 %v2818_v31, %v2584_v27 }
 0x590   :  { %v7342_v12 = vpop.f32.mrb[19].mxu0 }
 0x591   :  { %v2389_v13 = vmax.f32 %v7340_v11, %v7342_v12  ;;  %v5788_v36 = vpack.c.bf16 %v7439_v30, %v7443_v33  ;;  %v5486_v37 = vpop.f32.mrb[40].mxu1  ;;  %v3069_v30 = vld [vmem:[#allocation23] sm:$0xff] }
 0x592   :  { %v7447_v38 = vmul.f32 %v5486_v37, %v2587_v34  ;;  %v2828_v39 = vpop.f32.mrb[41].mxu1  ;;  %v2602_v37 = vld [vmem:[#allocation12 + $0xa0] sm:$0xff] }
 0x593   :  { %2390 = vmax.xlane.f32.xlu0 %v2389_v13  ;;  %v7449_v40 = vmul.f32 %v2828_v39, %v2586_v35  ;;  %v2603_v35 = vld [vmem:[#allocation12 + $0xa8] sm:$0xff] }
 0x595   :  { %v5792_v43 = vpack.c.bf16 %v7447_v38, %v7449_v40  ;;  %v5489_v44 = vpop.f32.mrb[42].mxu1 }
 0x596   :  { %v7453_v45 = vmul.f32 %v5489_v44, %v2589_v41  ;;  %v2838_v46 = vpop.f32.mrb[43].mxu1 }
 0x597   :  { %v7455_v47 = vmul.f32 %v2838_v46, %v2588_v42 }
 0x599   :  { %v5796_v50 = vpack.c.bf16 %v7453_v45, %v7455_v47  ;;  %v5492_v51 = vpop.f32.mrb[44].mxu1  ;;  %v3071_v45 = vld [vmem:[#allocation23 + $0x10] sm:$0xff]  ;;  %v3072_v47 = vld [vmem:[#allocation23 + $0x18] sm:$0xff] }
 0x59a   :  { %v7459_v52 = vmul.f32 %v5492_v51, %v2591_v48  ;;  %v2848_v53 = vpop.f32.mrb[45].mxu1  ;;  %v2605_v48 = vld [vmem:[#allocation12 + $0xb8] sm:$0xff] }
 0x59b   :  { %v7461_v54 = vmul.f32 %v2848_v53, %v2590_v49  ;;  %v2604_v49 = vld [vmem:[#allocation12 + $0xb0] sm:$0xff] }
 0x59d   :  { %v5800_v57 = vpack.c.bf16 %v7459_v52, %v7461_v54  ;;  %v5495_v58 = vpop.f32.mrb[46].mxu1  ;;  %v3073_v52 = vld [vmem:[#allocation23 + $0x20] sm:$0xff]  ;;  %v3074_v54 = vld [vmem:[#allocation23 + $0x28] sm:$0xff] }
 0x59e   :  { %v7465_v59 = vmul.f32 %v5495_v58, %v2593_v55  ;;  %v2858_v60 = vpop.f32.mrb[47].mxu1 }
 0x59f   :  { %v7467_v5 = vmul.f32 %v2858_v60, %v2592_v56  ;;  %v2607_v60 = vld [vmem:[#allocation12 + $0xc8] sm:$0xff] }
 0x5a1   :  { %v5804_v63 = vpack.c.bf16 %v7465_v59, %v7467_v5  ;;  %v5498_v2 = vpop.f32.mrb[48].mxu1  ;;  %v3076_v59 = vld [vmem:[#allocation23 + $0x38] sm:$0xff]  ;;  %v3077_v5 = vld [vmem:[#allocation23 + $0x40] sm:$0xff] }
 0x5a2   :  { %v7471_v3 = vmul.f32 %v5498_v2, %v2595_v61  ;;  %v2868_v4 = vpop.f32.mrb[49].mxu1  ;;  %v2606_v61 = vld [vmem:[#allocation12 + $0xc0] sm:$0xff] }
 0x5a3   :  { %v7473_v6 = vmul.f32 %v2868_v4, %v2594_v62 }
 0x620   :  { %v2391_v8 = vpop.xlane.xlu0 %2390 }
 0x621   :  { %v2392_v9 = vsub.f32 %v7340_v11, %v2391_v8  ;;  %v2393_v10 = vsub.f32 %v7342_v12, %v2391_v8  ;;  %v2500_v11 = vld [vmem:[#allocation14] sm:$0xff]  ;;  %v2596_v8 = vld [vmem:[#allocation12 + $0x70] sm:$0xff] }
 0x622   :  { %v5776_v12 = vpack.c.bf16 %v2502_v20, %v2500_v11 }
 0x623   :  { %v2394_v13 = vmul.f32 1.442695, %v2392_v9  ;;  %v2396_v14 = vmul.f32 1.442695, %v2393_v10  ;;  %v5808_v9 = vpack.c.bf16 %v7471_v3, %v7473_v6  ;;  %v5501_v10 = vpop.f32.mrb[50].mxu1  ;;  %v3079_v6 = vld [vmem:[#allocation23 + $0x50] sm:$0xff] }
 0x625   :  { %6003 = vpow2.f32 %v2394_v13  ;;  %v7477_v13 = vmul.f32 %v5501_v10, %v2597_v7  ;;  %v2609_v10 = vld [vmem:[#allocation12 + $0xd8] sm:$0xff] }
 0x626   :  { %6005 = vpow2.f32 %v2396_v14  ;;  %v2878_v14 = vpop.f32.mrb[51].mxu1 }
 0x627   :  { %v7479_v17 = vmul.f32 %v2878_v14, %v2596_v8  ;;  %v5504_v20 = vpop.f32.mrb[52].mxu1  ;;  %v2608_v14 = vld [vmem:[#allocation12 + $0xd0] sm:$0xff] }
 0x628   :  { %v2888_v21 = vpop.f32.mrb[53].mxu1 }
 0x629   :  { %v5812_v11 = vpack.c.bf16 %v7477_v13, %v7479_v17  ;;  %v2983_v22 = vmul.f32 %v2888_v21, %v2598_v19  ;;  %v5507_v27 = vpop.f32.mrb[54].mxu1  ;;  %v3081_v17 = vld [vmem:[#allocation23 + $0x60] sm:$0xff] }
 0x62a   :  { %v2986_v29 = vmul.f32 %v5507_v27, %v2601_v23  ;;  %v2898_v31 = vpop.f32.mrb[55].mxu1  ;;  %v2610_v23 = vld [vmem:[#allocation12 + $0xe0] sm:$0xff] }
 0x62b   :  { %v2985_v34 = vmul.f32 %v2898_v31, %v2600_v24  ;;  %v5510_v41 = vpop.f32.mrb[56].mxu1 }
 0x62c   :  { %v2988_v42 = vmul.f32 %v5510_v41, %v2603_v35  ;;  %v2908_v44 = vpop.f32.mrb[57].mxu1  ;;  %v2612_v35 = vld [vmem:[#allocation12 + $0xf0] sm:$0xff] }
 0x62d   :  { %v5786_v39 = vpack.c.bf16 %v2986_v29, %v2985_v34  ;;  %v2987_v46 = vmul.f32 %v2908_v44, %v2602_v37  ;;  %v5513_v53 = vpop.f32.mrb[58].mxu1  ;;  %v2613_v34 = vld [vmem:[#allocation12 + $0xf8] sm:$0xff] }
 0x62e   :  { %v2990_v55 = vmul.f32 %v5513_v53, %v2605_v48  ;;  %v2918_v56 = vpop.f32.mrb[59].mxu1 }
 0x62f   :  { %v7428_v15 = vpop.eup %6003  ;;  %v5790_v51 = vpack.c.bf16 %v2988_v42, %v2987_v46  ;;  %v2989_v58 = vmul.f32 %v2918_v56, %v2604_v49  ;;  %v5516_v2 = vpop.f32.mrb[60].mxu1  ;;  %v3084_v56 = vld [vmem:[#allocation23 + $0x78] sm:$0xff] }
 0x630   :  { %v7430_v16 = vpop.eup %6005  ;;  %v2992_v4 = vmul.f32 %v5516_v2, %v2607_v60  ;;  %v2928_v7 = vpop.f32.mrb[61].mxu1  ;;  %v3162_v60 = vld [vmem:[#allocation15] sm:$0xff] }
 0x631   :  { %2494 = vmatprep.mubr.f32.mxu0 %v7430_v16  ;;  %v5794_v62 = vpack.c.bf16 %v2990_v55, %v2989_v58  ;;  %v2991_v8 = vmul.f32 %v2928_v7, %v2606_v61  ;;  %v5519_v19 = vpop.f32.mrb[62].mxu1  ;;  %v3163_v61 = vld [vmem:[#allocation15 + $0x8] sm:$0xff] }
 0x632   :  { %2495 = vmatmul.mubr.f32.vlgmr.msra.gmra.mrb[20].mxu0 %v7428_v15  ;;  %v7520_v2 = vpack.c.bf16 %v3163_v61, %v3162_v60 }
 0x633   :  { %2571 = vmatprep.mubr.f32.mxu0 %v6639_v1  ;;  %5777 = vmatpush1.bf16.msra.mxu0 %v5776_v12  ;;  %v2984_v12 = vmul.f32 %v5504_v20, %v2599_v18  ;;  %v5798_v18 = vpack.c.bf16 %v2992_v4, %v2991_v8  ;;  %v2994_v20 = vmul.f32 %v5519_v19, %v2609_v10  ;;  %v3165_v4 = vld [vmem:[#allocation15 + $0x18] sm:$0xff]  ;;  %v3166_v8 = vld [vmem:[#allocation15 + $0x20] sm:$0xff]  ;;  %v3167_v10 = vld [vmem:[#allocation15 + $0x28] sm:$0xff] }
 0x634   :  { %5839 = vmatprep.subr.bf16.mxu1 %v7520_v2  ;;  %v3169_v19 = vld [vmem:[#allocation15 + $0x38] sm:$0xff] }
 0x635   :  { %v5782_v26 = vpack.c.bf16 %v2984_v12, %v2983_v22  ;;  %v2938_v12 = vpop.f32.mrb[63].mxu1  ;;  %v2611_v22 = vld [vmem:[#allocation12 + $0xe8] sm:$0xff]  ;;  %5841 = vmatpush3.bf16.msra.mxu1 %v7520_v2 }
 0x636   :  { %v2993_v21 = vmul.f32 %v2938_v12, %v2608_v14  ;;  %v7527_v14 = vpack.c.bf16 %v3167_v10, %v3166_v8  ;;  %v3170_v12 = vld [vmem:[#allocation15 + $0x40] sm:$0xff] }
 0x637   :  { %5783 = vmatprep.subr.bf16.mxu0 %v5782_v26  ;;  %v5522_v26 = vpop.f32.mrb[64].mxu1 }
 0x638   :  { %v5802_v24 = vpack.c.bf16 %v2994_v20, %v2993_v21  ;;  %v2996_v27 = vmul.f32 %v5522_v26, %v2611_v22  ;;  %v2948_v29 = vpop.f32.mrb[65].mxu1  ;;  %v3171_v21 = vld [vmem:[#allocation15 + $0x48] sm:$0xff] }
 0x639   :  { %v2995_v31 = vmul.f32 %v2948_v29, %v2610_v23  ;;  %v5525_v41 = vpop.f32.mrb[66].mxu1  ;;  %v7535_v22 = vpack.c.bf16 %v3171_v21, %v3170_v12  ;;  %v3172_v23 = vld [vmem:[#allocation15 + $0x50] sm:$0xff]  ;;  %v3175_v29 = vld [vmem:[#allocation15 + $0x68] sm:$0xff] }
 0x63a   :  { %v2998_v42 = vmul.f32 %v5525_v41, %v2613_v34  ;;  %v2958_v44 = vpop.f32.mrb[67].mxu1  ;;  %v3176_v34 = vld [vmem:[#allocation15 + $0x70] sm:$0xff] }
 0x63b   :  { %v5806_v37 = vpack.c.bf16 %v2996_v27, %v2995_v31  ;;  %v2997_v46 = vmul.f32 %v2958_v44, %v2612_v35  ;;  %v3174_v27 = vld [vmem:[#allocation15 + $0x60] sm:$0xff]  ;;  %v3177_v35 = vld [vmem:[#allocation15 + $0x78] sm:$0xff] }
 0x63c   :  { %v7543_v31 = vpack.c.bf16 %v3175_v29, %v3174_v27 }
 0x63d   :  { %v5810_v48 = vpack.c.bf16 %v2998_v42, %v2997_v46  ;;  %v4871_v46 = vld [vmem:[%s7728_s14] ss:$0 sm:$0xff] }
 0x705   :  { %v5031_v49 = vpop.f32.mrb[20].mxu0 }
 0x706   :  { %v5032_v53 = vpop.f32.mrb[21].mxu0 }
 0x707   :  { %v5033_v55 = vadd.f32 %v5032_v53, %v5031_v49 }
 0x709   :  { %4910 = vmatmul.mubr.msk.f32.vlgmr.msra.gmra.mrb[22].mxu0 %vm2076_vm3, %v5033_v55 }
 0x70a   :  { %5785 = vmatpush3.bf16.msra.mxu0 %v5784_v32  ;;  %v3070_v32 = vld [vmem:[#allocation23 + $0x8] sm:$0xff] }
 0x70b   :  { %5787 = vmatprep.subr.bf16.mxu0 %v5786_v39  ;;  %v5815_v40 = vpack.c.bf16 %v3070_v32, %v3069_v30 }
 0x70e   :  { %5789 = vmatpush3.bf16.msra.mxu0 %v5788_v36 }
 0x70f   :  { %5791 = vmatprep.subr.bf16.mxu0 %v5790_v51  ;;  %v3083_v51 = vld [vmem:[#allocation23 + $0x70] sm:$0xff] }
 0x710   :  { %v5836_v58 = vpack.c.bf16 %v3084_v56, %v3083_v51 }
 0x712   :  { %5793 = vmatpush3.bf16.msra.mxu0 %v5792_v43 }
 0x713   :  { %5795 = vmatprep.subr.bf16.mxu0 %v5794_v62  ;;  %v3164_v62 = vld [vmem:[#allocation15 + $0x10] sm:$0xff] }
 0x714   :  { %v7522_v7 = vpack.c.bf16 %v3165_v4, %v3164_v62 }
 0x716   :  { %5797 = vmatpush3.bf16.msra.mxu0 %v5796_v50  ;;  %v5818_v50 = vpack.c.bf16 %v3072_v47, %v3071_v45  ;;  %5843 = vmatprep.subr.bf16.mxu1 %v7522_v7 }
 0x717   :  { %5799 = vmatprep.subr.bf16.mxu0 %v5798_v18  ;;  %v3168_v18 = vld [vmem:[#allocation15 + $0x30] sm:$0xff]  ;;  %5845 = vmatpush3.bf16.msra.mxu1 %v7522_v7 }
 0x718   :  { %5847 = vmatprep.subr.bf16.mxu1 %v7527_v14  ;;  %v7531_v20 = vpack.c.bf16 %v3169_v19, %v3168_v18 }
 0x71a   :  { %5801 = vmatpush3.bf16.msra.mxu0 %v5800_v57  ;;  %v5821_v57 = vpack.c.bf16 %v3074_v54, %v3073_v52 }
 0x71b   :  { %5803 = vmatprep.subr.bf16.mxu0 %v5802_v24  ;;  %5849 = vmatpush3.bf16.msra.mxu1 %v7527_v14  ;;  %v3173_v24 = vld [vmem:[#allocation15 + $0x58] sm:$0xff] }
 0x71c   :  { %5851 = vmatprep.subr.bf16.mxu1 %v7531_v20  ;;  %v7539_v26 = vpack.c.bf16 %v3173_v24, %v3172_v23 }
 0x71e   :  { %5805 = vmatpush3.bf16.msra.mxu0 %v5804_v63  ;;  %v3078_v63 = vld [vmem:[#allocation23 + $0x48] sm:$0xff] }
 0x71f   :  { %5807 = vmatprep.subr.bf16.mxu0 %v5806_v37  ;;  %v5827_v3 = vpack.c.bf16 %v3078_v63, %v3077_v5  ;;  %5853 = vmatpush3.bf16.msra.mxu1 %v7531_v20  ;;  %v7547_v37 = vpack.c.bf16 %v3177_v35, %v3176_v34 }
 0x720   :  { %5855 = vmatprep.subr.bf16.mxu1 %v7535_v22 }
 0x722   :  { %5809 = vmatpush3.bf16.msra.mxu0 %v5808_v9  ;;  %v3080_v9 = vld [vmem:[#allocation23 + $0x58] sm:$0xff] }
 0x723   :  { %5811 = vmatprep.subr.bf16.mxu0 %v5810_v48  ;;  %v5830_v13 = vpack.c.bf16 %v3080_v9, %v3079_v6  ;;  %5857 = vmatpush3.bf16.msra.mxu1 %v7535_v22  ;;  %v4943_v48 = vld [vmem:[#allocation24] ss:$0 sm:$0xff] }
 0x724   :  { %5859 = vmatprep.subr.bf16.mxu1 %v7539_v26  ;;  %v5926_v49 = vadd.f32 %v4943_v48, %v4871_v46 }
 0x726   :  { %5813 = vmatpush3.bf16.msra.mxu0 %v5812_v11  ;;  %v3082_v11 = vld [vmem:[#allocation23 + $0x68] sm:$0xff] }
 0x727   :  { %5814 = vmatprep.subr.bf16.mxu0 %v6636_v0  ;;  %v5833_v39 = vpack.c.bf16 %v3082_v11, %v3081_v17  ;;  %5861 = vmatpush3.bf16.msra.mxu1 %v7539_v26 }
 0x728   :  { %5863 = vmatprep.subr.bf16.mxu1 %v7543_v31 }
 0x72b   :  { %5865 = vmatpush3.bf16.msra.mxu1 %v7543_v31 }
 0x72c   :  { %5867 = vmatprep.subr.bf16.mxu1 %v7547_v37 }
 0x72f   :  { %5869 = vmatpush3.bf16.msra.mxu1 %v7547_v37 }
 0x7dc   :  { %v2573_v25 = vpop.f32.mrb[22].mxu0 }
 0x7dd   :  { %6007 = vrcp.f32 %v2573_v25  ;;  %v2575_v28 = vpop.f32.mrb[23].mxu0 }
 0x7de   :  { %6009 = vrcp.f32 %v2575_v28 }
 0x7e7   :  { %v6008_v33 = vpop.eup %6007 }
 0x7e8   :  { %v6010_v36 = vpop.eup %6009  ;;  %v2580_v43 = vmul.f32 %v6008_v33, %v7428_v15 }
 0x7e9   :  { %v2581_v38 = vmul.f32 %v6010_v36, %v7430_v16  ;;  %v3075_v16 = vld [vmem:[#allocation23 + $0x30] sm:$0xff] }
 0x7ea   :  { %v5824_v15 = vpack.c.bf16 %v3076_v59, %v3075_v16 }
 0x7eb   :  { %3063 = vmatprep.mubr.f32.mxu0 %v2581_v38 }
 0x7ec   :  { %3064 = vmatmul.mubr.f32.vlgmr.msra.gmra.mrb[24].mxu0 %v2580_v43 }
 0x7ed   :  { %5816 = vmatpush3.bf16.msra.mxu0 %v5815_v40  ;;  %5558 = vmatprep.mubr.msk.f32.mxu0 %vm6638_vm0, %v6639_v1 }
 0x7ee   :  { %5817 = vmatprep.subr.bf16.mxu0 %v6636_v0 }
 0x7f1   :  { %5819 = vmatpush3.bf16.msra.mxu0 %v5818_v50 }
 0x7f2   :  { %5820 = vmatprep.subr.bf16.mxu0 %v6636_v0 }
 0x7f5   :  { %5822 = vmatpush3.bf16.msra.mxu0 %v5821_v57 }
 0x7f6   :  { %5823 = vmatprep.subr.bf16.mxu0 %v6636_v0 }
 0x7f9   :  { %5825 = vmatpush3.bf16.msra.mxu0 %v5824_v15 }
 0x7fa   :  { %5826 = vmatprep.subr.bf16.mxu0 %v6636_v0 }
 0x7fd   :  { %5828 = vmatpush3.bf16.msra.mxu0 %v5827_v3 }
 0x7fe   :  { %5829 = vmatprep.subr.bf16.mxu0 %v6636_v0 }
 0x801   :  { %5831 = vmatpush3.bf16.msra.mxu0 %v5830_v13 }
 0x802   :  { %5832 = vmatprep.subr.bf16.mxu0 %v6636_v0 }
 0x805   :  { %5834 = vmatpush3.bf16.msra.mxu0 %v5833_v39 }
 0x806   :  { %5835 = vmatprep.subr.bf16.mxu0 %v6636_v0 }
 0x809   :  { %5837 = vmatpush3.bf16.msra.mxu0 %v5836_v58 }
 0x8bf   :  { %v5100_v41 = vpop.f32.mrb[24].mxu0 }
 0x8c0   :  { %v5101_v42 = vpop.f32.mrb[25].mxu0 }
 0x8c1   :  { %v5102_v44 = vadd.f32 %v5101_v42, %v5100_v41 }
 0x8c3   :  { %5559 = vmatmul.mubr.f32.vlgmr.msra.gmra.mrb[0].mxu0 %v5102_v44 }
 0x996   :  { %v3158_v53 = vpop.f32.mrb[0].mxu0 }
 0x997   :  { %v5927_v55 = vadd.f32 %v5926_v49, %v3158_v53  ;;  %v5560_v25 = vpop.f32.mrb[1].mxu0 }
 0x999   :  { %v3181_v28 = vmul.f32 %v5927_v55, %v5927_v55  ;;  %5593 = vmatprep.mubr.f32.mxu1 %v5927_v55 }
 0x99b   :  { %5594 = vmatmul.mubr.f32.vlgmr.msra.gmra.mrb[68].mxu1 %v3181_v28 }
 0x99c   :  { %6530 = shalt.err (!%p6527_p4)  }
 0x99d   :  { %s6531_s13 = scalar_lea.vmem %s1538_s7, 4096  ;;  %p6536_p6 = scmp.lt.s32.totalorder %s1538_s7, %s1538_s7 }
 0x99e   :  { %p6532_p5 = scmp.ne.s32.totalorder %s1538_s7, %s6531_s13  ;;  %p6537_p7 = scmp.lt.s32.totalorder %s6531_s13, %s6531_s13 }
 0x9a0   :  { %p6538_p8 = por %p6537_p7, %p6536_p6 }
 0x9a2   :  { %p6539_p9 = pnand %p6538_p8, %p6532_p5 }
 0x9a4   :  { %6542 = shalt.err (!%p6539_p9)  }
 0x9a5   :  { %1540 = dma.hbm_to_vmem [thread:$0]  %s6821_s24, 4096, %s1538_s7, [#allocation6 + $0x3]  ;;  %v4944_v45 = vld [vmem:[#allocation26] ss:$0 sm:$0xff]  ;;  %v4945_v50 = vld [vmem:[#allocation27] ss:$0 sm:$0xff] }
 0xa6e   :  { %v5595_v30 = vpop.f32.mrb[68].mxu1 }
 0xa6f   :  { %v3248_v32 = vpop.f32.mrb[69].mxu1 }
 0xa70   :  { %v3257_v33 = vmul.f32 %v3248_v32, %v3248_v32  ;;  %v3259_v40 = vsub.f32 %v5927_v55, %v3248_v32 }
 0xa72   :  { %v3258_v36 = vsub.f32 %v5595_v30, %v3257_v33 }
 0xa74   :  { %v3260_v38 = vadd.f32 1e-05, %v3258_v36 }
 0xa76   :  { %6011 = vrsqrt.f32 %v3260_v38 }
 0xa80   :  { %v6012_v43 = vpop.eup %6011 }
 0xa81   :  { %v3262_v47 = vmul.f32 %v6012_v43, %v3259_v40 }
 0xa83   :  { %v3269_v52 = vmul.f32 %v4944_v45, %v3262_v47 }
 0xa85   :  { %v7557_v54 = vadd.f32 %v4945_v50, %v3269_v52 }
 0xa86   :  { %6567 = dma.done.wait [#allocation6], 16384 }
 0xa87   :  { %6568 = vsyncadd [#allocation6], 4294950912 }
 0xa88   :  { %6569 = dma.done.wait [#allocation6 + $0x1], 16384 }
 0xa89   :  { %6570 = vsyncadd [#allocation6 + $0x1], 4294950912  ;;  %v6647_v57 = vmov 0   ;;  %v3287_v16 = vld [vmem:[#allocation2 + $0x8] sm:$0xff]  ;;  %v3289_v59 = vld [vmem:[#allocation2 + $0x18] sm:$0xff]  ;;  %v7563_v46 = vpack.c.bf16 %v7557_v54, %v7557_v54 }
 0xa8a   :  { %3530 = vmatprep.mubr.bf16.mxu0 %v6647_v57  ;;  %3571 = vmatprep.mubr.bf16.mxu1 %v6647_v57  ;;  %v3286_v15 = vld [vmem:[#allocation2] sm:$0xff]  ;;  %v3288_v5 = vld [vmem:[#allocation2 + $0x10] sm:$0xff]  ;;  %v3303_v63 = vld [vmem:[#allocation2 + $0x88] sm:$0xff] }
 0xa8b   :  { %3498 = vmatprep.subr.bf16.mxu0 %v3287_v16  ;;  %3539 = vmatprep.subr.bf16.mxu1 %v3289_v59  ;;  %v3305_v3 = vld [vmem:[#allocation2 + $0x98] sm:$0xff]  ;;  %v3302_v6 = vld [vmem:[#allocation2 + $0x80] sm:$0xff]  ;;  %v3304_v9 = vld [vmem:[#allocation2 + $0x90] sm:$0xff] }
 0xa8c   :  { %3499 = vmatpush1.bf16.msra.mxu0 %v3286_v15  ;;  %3540 = vmatpush1.bf16.msra.mxu1 %v3288_v5  ;;  %v3319_v13 = vld [vmem:[#allocation2 + $0x108] sm:$0xff]  ;;  %v3321_v17 = vld [vmem:[#allocation2 + $0x118] sm:$0xff]  ;;  %v3318_v11 = vld [vmem:[#allocation2 + $0x100] sm:$0xff] }
 0xa8d   :  { %3500 = vmatprep.subr.bf16.mxu0 %v3303_v63  ;;  %3541 = vmatprep.subr.bf16.mxu1 %v3305_v3  ;;  %v3320_v39 = vld [vmem:[#allocation2 + $0x110] sm:$0xff]  ;;  %v3335_v51 = vld [vmem:[#allocation2 + $0x188] sm:$0xff]  ;;  %v3337_v56 = vld [vmem:[#allocation2 + $0x198] sm:$0xff] }
 0xa8e   :  { %v3334_v58 = vld [vmem:[#allocation2 + $0x180] sm:$0xff]  ;;  %v3336_v60 = vld [vmem:[#allocation2 + $0x190] sm:$0xff]  ;;  %v3351_v61 = vld [vmem:[#allocation2 + $0x208] sm:$0xff] }
 0xa8f   :  { %v3353_v62 = vld [vmem:[#allocation2 + $0x218] sm:$0xff]  ;;  %v3350_v4 = vld [vmem:[#allocation2 + $0x200] sm:$0xff]  ;;  %v3352_v8 = vld [vmem:[#allocation2 + $0x210] sm:$0xff] }
 0xa90   :  { %3501 = vmatpush1.bf16.msra.mxu0 %v3302_v6  ;;  %3542 = vmatpush1.bf16.msra.mxu1 %v3304_v9  ;;  %v3367_v10 = vld [vmem:[#allocation2 + $0x288] sm:$0xff]  ;;  %v3369_v18 = vld [vmem:[#allocation2 + $0x298] sm:$0xff]  ;;  %v3366_v19 = vld [vmem:[#allocation2 + $0x280] sm:$0xff] }
 0xa91   :  { %3502 = vmatprep.subr.bf16.mxu0 %v3319_v13  ;;  %3543 = vmatprep.subr.bf16.mxu1 %v3321_v17  ;;  %v3368_v12 = vld [vmem:[#allocation2 + $0x290] sm:$0xff]  ;;  %v3383_v21 = vld [vmem:[#allocation2 + $0x308] sm:$0xff]  ;;  %v3385_v23 = vld [vmem:[#allocation2 + $0x318] sm:$0xff] }
 0xa92   :  { %v3382_v24 = vld [vmem:[#allocation2 + $0x300] sm:$0xff]  ;;  %v3384_v27 = vld [vmem:[#allocation2 + $0x310] sm:$0xff]  ;;  %v3399_v29 = vld [vmem:[#allocation2 + $0x388] sm:$0xff] }
 0xa93   :  { %v3401_v34 = vld [vmem:[#allocation2 + $0x398] sm:$0xff]  ;;  %v3398_v35 = vld [vmem:[#allocation2 + $0x380] sm:$0xff]  ;;  %v3400_v41 = vld [vmem:[#allocation2 + $0x390] sm:$0xff] }
 0xa94   :  { %3503 = vmatpush1.bf16.msra.mxu0 %v3318_v11  ;;  %3544 = vmatpush1.bf16.msra.mxu1 %v3320_v39  ;;  %v3291_v42 = vld [vmem:[#allocation2 + $0x28] sm:$0xff]  ;;  %v3293_v44 = vld [vmem:[#allocation2 + $0x38] sm:$0xff]  ;;  %v3290_v48 = vld [vmem:[#allocation2 + $0x20] sm:$0xff] }
 0xa95   :  { %3504 = vmatprep.subr.bf16.mxu0 %v3335_v51  ;;  %3545 = vmatprep.subr.bf16.mxu1 %v3337_v56  ;;  %v3292_v49 = vld [vmem:[#allocation2 + $0x30] sm:$0xff]  ;;  %v3307_v53 = vld [vmem:[#allocation2 + $0xa8] sm:$0xff]  ;;  %v3309_v55 = vld [vmem:[#allocation2 + $0xb8] sm:$0xff] }
 0xa96   :  { %v3306_v25 = vld [vmem:[#allocation2 + $0xa0] sm:$0xff]  ;;  %v3308_v28 = vld [vmem:[#allocation2 + $0xb0] sm:$0xff]  ;;  %v3323_v30 = vld [vmem:[#allocation2 + $0x128] sm:$0xff] }
 0xa97   :  { %v3325_v32 = vld [vmem:[#allocation2 + $0x138] sm:$0xff]  ;;  %v3322_v33 = vld [vmem:[#allocation2 + $0x120] sm:$0xff]  ;;  %v3324_v36 = vld [vmem:[#allocation2 + $0x130] sm:$0xff] }
 0xa98   :  { %3505 = vmatpush1.bf16.msra.mxu0 %v3334_v58  ;;  %3546 = vmatpush1.bf16.msra.mxu1 %v3336_v60  ;;  %v3339_v38 = vld [vmem:[#allocation2 + $0x1a8] sm:$0xff]  ;;  %v3341_v40 = vld [vmem:[#allocation2 + $0x1b8] sm:$0xff]  ;;  %v3338_v43 = vld [vmem:[#allocation2 + $0x1a0] sm:$0xff] }
 0xa99   :  { %3506 = vmatprep.subr.bf16.mxu0 %v3351_v61  ;;  %3547 = vmatprep.subr.bf16.mxu1 %v3353_v62  ;;  %v3340_v45 = vld [vmem:[#allocation2 + $0x1b0] sm:$0xff]  ;;  %v3355_v47 = vld [vmem:[#allocation2 + $0x228] sm:$0xff]  ;;  %v3357_v50 = vld [vmem:[#allocation2 + $0x238] sm:$0xff] }
 0xa9a   :  { %v3354_v52 = vld [vmem:[#allocation2 + $0x220] sm:$0xff]  ;;  %v3356_v16 = vld [vmem:[#allocation2 + $0x230] sm:$0xff]  ;;  %v3371_v59 = vld [vmem:[#allocation2 + $0x2a8] sm:$0xff] }
 0xa9b   :  { %v3373_v15 = vld [vmem:[#allocation2 + $0x2b8] sm:$0xff]  ;;  %v3370_v5 = vld [vmem:[#allocation2 + $0x2a0] sm:$0xff]  ;;  %v3372_v63 = vld [vmem:[#allocation2 + $0x2b0] sm:$0xff] }
 0xa9c   :  { %3507 = vmatpush1.bf16.msra.mxu0 %v3350_v4  ;;  %3548 = vmatpush1.bf16.msra.mxu1 %v3352_v8  ;;  %v3387_v3 = vld [vmem:[#allocation2 + $0x328] sm:$0xff]  ;;  %v3389_v6 = vld [vmem:[#allocation2 + $0x338] sm:$0xff]  ;;  %v3386_v9 = vld [vmem:[#allocation2 + $0x320] sm:$0xff] }
 0xa9d   :  { %3508 = vmatprep.subr.bf16.mxu0 %v3367_v10  ;;  %3549 = vmatprep.subr.bf16.mxu1 %v3369_v18  ;;  %v3388_v13 = vld [vmem:[#allocation2 + $0x330] sm:$0xff]  ;;  %v3403_v17 = vld [vmem:[#allocation2 + $0x3a8] sm:$0xff]  ;;  %v3405_v11 = vld [vmem:[#allocation2 + $0x3b8] sm:$0xff] }
 0xa9e   :  { %v3402_v39 = vld [vmem:[#allocation2 + $0x3a0] sm:$0xff]  ;;  %v3404_v51 = vld [vmem:[#allocation2 + $0x3b0] sm:$0xff]  ;;  %v3295_v56 = vld [vmem:[#allocation2 + $0x48] sm:$0xff] }
 0xa9f   :  { %v3297_v58 = vld [vmem:[#allocation2 + $0x58] sm:$0xff]  ;;  %v3294_v60 = vld [vmem:[#allocation2 + $0x40] sm:$0xff]  ;;  %v3296_v61 = vld [vmem:[#allocation2 + $0x50] sm:$0xff] }
 0xaa0   :  { %3509 = vmatpush1.bf16.msra.mxu0 %v3366_v19  ;;  %3550 = vmatpush1.bf16.msra.mxu1 %v3368_v12  ;;  %v3311_v62 = vld [vmem:[#allocation2 + $0xc8] sm:$0xff]  ;;  %v3313_v4 = vld [vmem:[#allocation2 + $0xd8] sm:$0xff]  ;;  %v3310_v8 = vld [vmem:[#allocation2 + $0xc0] sm:$0xff] }
 0xaa1   :  { %3510 = vmatprep.subr.bf16.mxu0 %v3383_v21  ;;  %3551 = vmatprep.subr.bf16.mxu1 %v3385_v23  ;;  %v3312_v10 = vld [vmem:[#allocation2 + $0xd0] sm:$0xff]  ;;  %v3327_v18 = vld [vmem:[#allocation2 + $0x148] sm:$0xff]  ;;  %v3329_v19 = vld [vmem:[#allocation2 + $0x158] sm:$0xff] }
 0xaa2   :  { %v3326_v12 = vld [vmem:[#allocation2 + $0x140] sm:$0xff]  ;;  %v3328_v21 = vld [vmem:[#allocation2 + $0x150] sm:$0xff]  ;;  %v3343_v23 = vld [vmem:[#allocation2 + $0x1c8] sm:$0xff] }
 0xaa4   :  { %3511 = vmatpush1.bf16.msra.mxu0 %v3382_v24  ;;  %3552 = vmatpush1.bf16.msra.mxu1 %v3384_v27  ;;  %v3345_v24 = vld [vmem:[#allocation2 + $0x1d8] sm:$0xff]  ;;  %v3342_v27 = vld [vmem:[#allocation2 + $0x1c0] sm:$0xff] }
 0xaa5   :  { %3512 = vmatprep.subr.bf16.mxu0 %v3399_v29  ;;  %3553 = vmatprep.subr.bf16.mxu1 %v3401_v34  ;;  %v3344_v29 = vld [vmem:[#allocation2 + $0x1d0] sm:$0xff]  ;;  %v3359_v34 = vld [vmem:[#allocation2 + $0x248] sm:$0xff] }
 0xaa8   :  { %3513 = vmatpush1.bf16.msra.mxu0 %v3398_v35  ;;  %3554 = vmatpush1.bf16.msra.mxu1 %v3400_v41  ;;  %v3361_v35 = vld [vmem:[#allocation2 + $0x258] sm:$0xff]  ;;  %v3358_v41 = vld [vmem:[#allocation2 + $0x240] sm:$0xff] }
 0xaa9   :  { %3580 = vmatprep.subr.bf16.mxu0 %v3291_v42  ;;  %3621 = vmatprep.subr.bf16.mxu1 %v3293_v44  ;;  %v3360_v42 = vld [vmem:[#allocation2 + $0x250] sm:$0xff]  ;;  %v3375_v44 = vld [vmem:[#allocation2 + $0x2c8] sm:$0xff] }
 0xaab   :  { %3531 = vmatmul.mubr.bf16.vlgmr.msra.gmra.mrb[28].mxu0 %v7563_v46  ;;  %3572 = vmatmul.mubr.bf16.vlgmr.msra.gmra.mrb[72].mxu1 %v7563_v46 }
 0xaac   :  { %3581 = vmatpush1.bf16.msra.mxu0 %v3290_v48  ;;  %3622 = vmatpush1.bf16.msra.mxu1 %v3292_v49  ;;  %v3377_v48 = vld [vmem:[#allocation2 + $0x2d8] sm:$0xff]  ;;  %v3374_v49 = vld [vmem:[#allocation2 + $0x2c0] sm:$0xff] }
 0xaad   :  { %3582 = vmatprep.subr.bf16.mxu0 %v3307_v53  ;;  %3623 = vmatprep.subr.bf16.mxu1 %v3309_v55  ;;  %v3376_v53 = vld [vmem:[#allocation2 + $0x2d0] sm:$0xff]  ;;  %v3391_v55 = vld [vmem:[#allocation2 + $0x348] sm:$0xff] }
 0xaae   :  { %3612 = vmatprep.mubr.bf16.mxu0 %v6647_v57  ;;  %3653 = vmatprep.mubr.bf16.mxu1 %v6647_v57 }
 0xab0   :  { %3583 = vmatpush1.bf16.msra.mxu0 %v3306_v25  ;;  %3624 = vmatpush1.bf16.msra.mxu1 %v3308_v28  ;;  %v3393_v25 = vld [vmem:[#allocation2 + $0x358] sm:$0xff]  ;;  %v3390_v28 = vld [vmem:[#allocation2 + $0x340] sm:$0xff] }
 0xab1   :  { %3584 = vmatprep.subr.bf16.mxu0 %v3323_v30  ;;  %3625 = vmatprep.subr.bf16.mxu1 %v3325_v32  ;;  %v3392_v30 = vld [vmem:[#allocation2 + $0x350] sm:$0xff]  ;;  %v3407_v32 = vld [vmem:[#allocation2 + $0x3c8] sm:$0xff] }
 0xab4   :  { %3585 = vmatpush1.bf16.msra.mxu0 %v3322_v33  ;;  %3626 = vmatpush1.bf16.msra.mxu1 %v3324_v36  ;;  %v3409_v33 = vld [vmem:[#allocation2 + $0x3d8] sm:$0xff]  ;;  %v3406_v36 = vld [vmem:[#allocation2 + $0x3c0] sm:$0xff] }
 0xab5   :  { %3586 = vmatprep.subr.bf16.mxu0 %v3339_v38  ;;  %3627 = vmatprep.subr.bf16.mxu1 %v3341_v40  ;;  %v3408_v38 = vld [vmem:[#allocation2 + $0x3d0] sm:$0xff]  ;;  %v3299_v40 = vld [vmem:[#allocation2 + $0x68] sm:$0xff] }
 0xab8   :  { %3587 = vmatpush1.bf16.msra.mxu0 %v3338_v43  ;;  %3628 = vmatpush1.bf16.msra.mxu1 %v3340_v45  ;;  %v3301_v43 = vld [vmem:[#allocation2 + $0x78] sm:$0xff]  ;;  %v3298_v45 = vld [vmem:[#allocation2 + $0x60] sm:$0xff] }
 0xab9   :  { %3588 = vmatprep.subr.bf16.mxu0 %v3355_v47  ;;  %3629 = vmatprep.subr.bf16.mxu1 %v3357_v50  ;;  %v3300_v47 = vld [vmem:[#allocation2 + $0x70] sm:$0xff]  ;;  %v3315_v50 = vld [vmem:[#allocation2 + $0xe8] sm:$0xff] }
 0xabc   :  { %3589 = vmatpush1.bf16.msra.mxu0 %v3354_v52  ;;  %3630 = vmatpush1.bf16.msra.mxu1 %v3356_v16  ;;  %v3317_v52 = vld [vmem:[#allocation2 + $0xf8] sm:$0xff]  ;;  %v3314_v16 = vld [vmem:[#allocation2 + $0xe0] sm:$0xff] }
 0xabd   :  { %3590 = vmatprep.subr.bf16.mxu0 %v3371_v59  ;;  %3631 = vmatprep.subr.bf16.mxu1 %v3373_v15  ;;  %v3316_v59 = vld [vmem:[#allocation2 + $0xf0] sm:$0xff]  ;;  %v3331_v15 = vld [vmem:[#allocation2 + $0x168] sm:$0xff] }
 0xac0   :  { %3591 = vmatpush1.bf16.msra.mxu0 %v3370_v5  ;;  %3632 = vmatpush1.bf16.msra.mxu1 %v3372_v63  ;;  %v3333_v5 = vld [vmem:[#allocation2 + $0x178] sm:$0xff]  ;;  %v3330_v63 = vld [vmem:[#allocation2 + $0x160] sm:$0xff] }
 0xac1   :  { %3592 = vmatprep.subr.bf16.mxu0 %v3387_v3  ;;  %3633 = vmatprep.subr.bf16.mxu1 %v3389_v6  ;;  %v3332_v3 = vld [vmem:[#allocation2 + $0x170] sm:$0xff]  ;;  %v3347_v6 = vld [vmem:[#allocation2 + $0x1e8] sm:$0xff] }
 0xac4   :  { %3593 = vmatpush1.bf16.msra.mxu0 %v3386_v9  ;;  %3634 = vmatpush1.bf16.msra.mxu1 %v3388_v13  ;;  %v3349_v9 = vld [vmem:[#allocation2 + $0x1f8] sm:$0xff]  ;;  %v3346_v13 = vld [vmem:[#allocation2 + $0x1e0] sm:$0xff] }
 0xac5   :  { %3594 = vmatprep.subr.bf16.mxu0 %v3403_v17  ;;  %3635 = vmatprep.subr.bf16.mxu1 %v3405_v11  ;;  %v3348_v17 = vld [vmem:[#allocation2 + $0x1f0] sm:$0xff]  ;;  %v3363_v11 = vld [vmem:[#allocation2 + $0x268] sm:$0xff] }
 0xac8   :  { %3595 = vmatpush1.bf16.msra.mxu0 %v3402_v39  ;;  %3636 = vmatpush1.bf16.msra.mxu1 %v3404_v51  ;;  %v3365_v39 = vld [vmem:[#allocation2 + $0x278] sm:$0xff]  ;;  %v3362_v51 = vld [vmem:[#allocation2 + $0x260] sm:$0xff] }
 0xac9   :  { %3662 = vmatprep.subr.bf16.mxu0 %v3295_v56  ;;  %3703 = vmatprep.subr.bf16.mxu1 %v3297_v58  ;;  %v3364_v56 = vld [vmem:[#allocation2 + $0x270] sm:$0xff]  ;;  %v3379_v58 = vld [vmem:[#allocation2 + $0x2e8] sm:$0xff] }
 0xacb   :  { %3613 = vmatmul.mubr.bf16.vlgmr.msra.gmra.mrb[32].mxu0 %v7563_v46  ;;  %3654 = vmatmul.mubr.bf16.vlgmr.msra.gmra.mrb[76].mxu1 %v7563_v46 }
 0xacc   :  { %3663 = vmatpush1.bf16.msra.mxu0 %v3294_v60  ;;  %3704 = vmatpush1.bf16.msra.mxu1 %v3296_v61  ;;  %v3381_v60 = vld [vmem:[#allocation2 + $0x2f8] sm:$0xff]  ;;  %v3378_v61 = vld [vmem:[#allocation2 + $0x2e0] sm:$0xff] }
 0xacd   :  { %3664 = vmatprep.subr.bf16.mxu0 %v3311_v62  ;;  %3705 = vmatprep.subr.bf16.mxu1 %v3313_v4  ;;  %v3380_v62 = vld [vmem:[#allocation2 + $0x2f0] sm:$0xff]  ;;  %v3395_v4 = vld [vmem:[#allocation2 + $0x368] sm:$0xff] }
 0xace   :  { %3694 = vmatprep.mubr.bf16.mxu0 %v6647_v57  ;;  %3735 = vmatprep.mubr.bf16.mxu1 %v6647_v57 }
 0xad0   :  { %3665 = vmatpush1.bf16.msra.mxu0 %v3310_v8  ;;  %3706 = vmatpush1.bf16.msra.mxu1 %v3312_v10  ;;  %v3397_v8 = vld [vmem:[#allocation2 + $0x378] sm:$0xff]  ;;  %v3394_v10 = vld [vmem:[#allocation2 + $0x360] sm:$0xff] }
 0xad1   :  { %3666 = vmatprep.subr.bf16.mxu0 %v3327_v18  ;;  %3707 = vmatprep.subr.bf16.mxu1 %v3329_v19  ;;  %v3396_v18 = vld [vmem:[#allocation2 + $0x370] sm:$0xff]  ;;  %v3411_v19 = vld [vmem:[#allocation2 + $0x3e8] sm:$0xff] }
 0xad4   :  { %3667 = vmatpush1.bf16.msra.mxu0 %v3326_v12  ;;  %3708 = vmatpush1.bf16.msra.mxu1 %v3328_v21  ;;  %v3413_v12 = vld [vmem:[#allocation2 + $0x3f8] sm:$0xff]  ;;  %v3410_v21 = vld [vmem:[#allocation2 + $0x3e0] sm:$0xff] }
 0xad5   :  { %3668 = vmatprep.subr.bf16.mxu0 %v3343_v23  ;;  %3709 = vmatprep.subr.bf16.mxu1 %v3345_v24  ;;  %v3412_v23 = vld [vmem:[#allocation2 + $0x3f0] sm:$0xff]  ;;  %v3866_v24 = vld [vmem:[#allocation3 + $0x40] sm:$0xff] }
 0xad8   :  { %3669 = vmatpush1.bf16.msra.mxu0 %v3342_v27  ;;  %3710 = vmatpush1.bf16.msra.mxu1 %v3344_v29  ;;  %v3882_v27 = vld [vmem:[#allocation3 + $0xc0] sm:$0xff] }
 0xad9   :  { %3670 = vmatprep.subr.bf16.mxu0 %v3359_v34  ;;  %3711 = vmatprep.subr.bf16.mxu1 %v3361_v35  ;;  %v3858_v29 = vld [vmem:[#allocation3] sm:$0xff]  ;;  %v3867_v35 = vld [vmem:[#allocation3 + $0x48] sm:$0xff] }
 0xada   :  { %v3874_v34 = vld [vmem:[#allocation3 + $0x80] sm:$0xff] }
 0xadc   :  { %3671 = vmatpush1.bf16.msra.mxu0 %v3358_v41  ;;  %3712 = vmatpush1.bf16.msra.mxu1 %v3360_v42  ;;  %v3883_v41 = vld [vmem:[#allocation3 + $0xc8] sm:$0xff] }
 0xadd   :  { %3672 = vmatprep.subr.bf16.mxu0 %v3375_v44  ;;  %3713 = vmatprep.subr.bf16.mxu1 %v3377_v48  ;;  %v3859_v42 = vld [vmem:[#allocation3 + $0x8] sm:$0xff]  ;;  %v3868_v48 = vld [vmem:[#allocation3 + $0x50] sm:$0xff] }
 0xade   :  { %v3875_v44 = vld [vmem:[#allocation3 + $0x88] sm:$0xff] }
 0xae0   :  { %3673 = vmatpush1.bf16.msra.mxu0 %v3374_v49  ;;  %3714 = vmatpush1.bf16.msra.mxu1 %v3376_v53  ;;  %v3884_v49 = vld [vmem:[#allocation3 + $0xd0] sm:$0xff] }
 0xae1   :  { %3674 = vmatprep.subr.bf16.mxu0 %v3391_v55  ;;  %3715 = vmatprep.subr.bf16.mxu1 %v3393_v25  ;;  %v3860_v53 = vld [vmem:[#allocation3 + $0x10] sm:$0xff]  ;;  %v3869_v25 = vld [vmem:[#allocation3 + $0x58] sm:$0xff] }
 0xae2   :  { %v3876_v55 = vld [vmem:[#allocation3 + $0x90] sm:$0xff] }
 0xae4   :  { %3675 = vmatpush1.bf16.msra.mxu0 %v3390_v28  ;;  %3716 = vmatpush1.bf16.msra.mxu1 %v3392_v30  ;;  %v3885_v28 = vld [vmem:[#allocation3 + $0xd8] sm:$0xff] }
 0xae5   :  { %3676 = vmatprep.subr.bf16.mxu0 %v3407_v32  ;;  %3717 = vmatprep.subr.bf16.mxu1 %v3409_v33  ;;  %v3877_v30 = vld [vmem:[#allocation3 + $0x98] sm:$0xff]  ;;  %v3870_v32 = vld [vmem:[#allocation3 + $0x60] sm:$0xff] }
 0xae6   :  { %v3886_v33 = vld [vmem:[#allocation3 + $0xe0] sm:$0xff] }
 0xae8   :  { %3677 = vmatpush1.bf16.msra.mxu0 %v3406_v36  ;;  %3718 = vmatpush1.bf16.msra.mxu1 %v3408_v38  ;;  %v3862_v36 = vld [vmem:[#allocation3 + $0x20] sm:$0xff] }
 0xae9   :  { %3744 = vmatprep.subr.bf16.mxu0 %v3299_v40  ;;  %3785 = vmatprep.subr.bf16.mxu1 %v3301_v43  ;;  %v3878_v38 = vld [vmem:[#allocation3 + $0xa0] sm:$0xff]  ;;  %v3871_v40 = vld [vmem:[#allocation3 + $0x68] sm:$0xff] }
 0xaea   :  { %v3887_v43 = vld [vmem:[#allocation3 + $0xe8] sm:$0xff] }
 0xaeb   :  { %3695 = vmatmul.mubr.bf16.vlgmr.msra.gmra.mrb[36].mxu0 %v7563_v46  ;;  %3736 = vmatmul.mubr.bf16.vlgmr.msra.gmra.mrb[80].mxu1 %v7563_v46 }
 0xaec   :  { %3745 = vmatpush1.bf16.msra.mxu0 %v3298_v45  ;;  %3786 = vmatpush1.bf16.msra.mxu1 %v3300_v47  ;;  %v3863_v45 = vld [vmem:[#allocation3 + $0x28] sm:$0xff] }
 0xaed   :  { %3746 = vmatprep.subr.bf16.mxu0 %v3315_v50  ;;  %3787 = vmatprep.subr.bf16.mxu1 %v3317_v52  ;;  %v3879_v47 = vld [vmem:[#allocation3 + $0xa8] sm:$0xff]  ;;  %v3872_v50 = vld [vmem:[#allocation3 + $0x70] sm:$0xff] }
 0xaee   :  { %3776 = vmatprep.mubr.bf16.mxu0 %v6647_v57  ;;  %3817 = vmatprep.mubr.bf16.mxu1 %v6647_v57  ;;  %v3888_v52 = vld [vmem:[#allocation3 + $0xf0] sm:$0xff] }
 0xaf0   :  { %3747 = vmatpush1.bf16.msra.mxu0 %v3314_v16  ;;  %3788 = vmatpush1.bf16.msra.mxu1 %v3316_v59  ;;  %v3864_v16 = vld [vmem:[#allocation3 + $0x30] sm:$0xff] }
 0xaf1   :  { %3748 = vmatprep.subr.bf16.mxu0 %v3331_v15  ;;  %3789 = vmatprep.subr.bf16.mxu1 %v3333_v5  ;;  %v3880_v59 = vld [vmem:[#allocation3 + $0xb0] sm:$0xff]  ;;  %v3873_v15 = vld [vmem:[#allocation3 + $0x78] sm:$0xff] }
 0xaf2   :  { %v3889_v5 = vld [vmem:[#allocation3 + $0xf8] sm:$0xff] }
 0xaf4   :  { %3749 = vmatpush1.bf16.msra.mxu0 %v3330_v63  ;;  %3790 = vmatpush1.bf16.msra.mxu1 %v3332_v3  ;;  %v3865_v63 = vld [vmem:[#allocation3 + $0x38] sm:$0xff] }
 0xaf5   :  { %3750 = vmatprep.subr.bf16.mxu0 %v3347_v6  ;;  %3791 = vmatprep.subr.bf16.mxu1 %v3349_v9  ;;  %v3881_v3 = vld [vmem:[#allocation3 + $0xb8] sm:$0xff]  ;;  %v3898_v6 = vld [vmem:[#allocation3 + $0x140] sm:$0xff] }
 0xaf6   :  { %v3914_v9 = vld [vmem:[#allocation3 + $0x1c0] sm:$0xff] }
 0xaf8   :  { %3751 = vmatpush1.bf16.msra.mxu0 %v3346_v13  ;;  %3792 = vmatpush1.bf16.msra.mxu1 %v3348_v17  ;;  %v3418_v13 = vlaneseq }
 0xaf9   :  { %3752 = vmatprep.subr.bf16.mxu0 %v3363_v11  ;;  %3793 = vmatprep.subr.bf16.mxu1 %v3365_v39 }
 0xafa   :  { %v7579_v17 = vshrl.u32 %v3418_v13, 7 }
 0xafc   :  { %3753 = vmatpush1.bf16.msra.mxu0 %v3362_v51  ;;  %3794 = vmatpush1.bf16.msra.mxu1 %v3364_v56  ;;  %v7582_v11 = vsub.s32 0, %v7579_v17  ;;  %v7585_v39 = vsub.s32 2, %v7579_v17  ;;  %v7587_v51 = vld [vmem:[#allocation29] sm:$0xff]  ;;  %v7590_v56 = vsub.s32 1, %v7579_v17  ;;  %v3444_v13 = vsub.s32 6, %v7579_v17 }
 0xafd   :  { %3754 = vmatprep.subr.bf16.mxu0 %v3379_v58  ;;  %3795 = vmatprep.subr.bf16.mxu1 %v3381_v60  ;;  %v7593_v58 = vsub.s32 3, %v7579_v17 }
 0xafe   :  { %v3421_v60 = vrot.slane %v7587_v51, %v7582_v11 }
 0xb00   :  { %3755 = vmatpush1.bf16.msra.mxu0 %v3378_v61  ;;  %3796 = vmatpush1.bf16.msra.mxu1 %v3380_v62  ;;  %v3429_v61 = vrot.slane %v7587_v51, %v7585_v39  ;;  %v3425_v62 = vrot.slane %v7587_v51, %v7590_v56 }
 0xb01   :  { %3756 = vmatprep.subr.bf16.mxu0 %v3395_v4  ;;  %3797 = vmatprep.subr.bf16.mxu1 %v3397_v8  ;;  %v3433_v4 = vrot.slane %v7587_v51, %v7593_v58 }
 0xb04   :  { %3757 = vmatpush1.bf16.msra.mxu0 %v3394_v10  ;;  %3798 = vmatpush1.bf16.msra.mxu1 %v3396_v18 }
 0xb05   :  { %3758 = vmatprep.subr.bf16.mxu0 %v3411_v19  ;;  %3799 = vmatprep.subr.bf16.mxu1 %v3413_v12 }
 0xb08   :  { %3759 = vmatpush1.bf16.msra.mxu0 %v3410_v21  ;;  %3800 = vmatpush1.bf16.msra.mxu1 %v3412_v23 }
 0xb09   :  { %5138 = vmatprep.subr.bf16.mxu0 %v3866_v24  ;;  %5160 = vmatprep.subr.bf16.mxu1 %v3882_v27 }
 0xb0b   :  { %3777 = vmatmul.mubr.bf16.vlgmr.msra.gmra.mrb[40].mxu0 %v7563_v46  ;;  %3818 = vmatmul.mubr.bf16.vlgmr.msra.gmra.mrb[84].mxu1 %v7563_v46  ;;  %v3861_v46 = vld [vmem:[#allocation3 + $0x18] sm:$0xff] }
 0xb0c   :  { %5139 = vmatpush3.bf16.msra.mxu0 %v3858_v29  ;;  %5161 = vmatpush3.bf16.msra.mxu1 %v3874_v34 }
 0xb0d   :  { %5140 = vmatprep.subr.bf16.mxu0 %v3867_v35  ;;  %5162 = vmatprep.subr.bf16.mxu1 %v3883_v41 }
 0xb10   :  { %5141 = vmatpush3.bf16.msra.mxu0 %v3859_v42  ;;  %5163 = vmatpush3.bf16.msra.mxu1 %v3875_v44 }
 0xb11   :  { %5142 = vmatprep.subr.bf16.mxu0 %v3868_v48  ;;  %5164 = vmatprep.subr.bf16.mxu1 %v3884_v49 }
 0xb14   :  { %5143 = vmatpush3.bf16.msra.mxu0 %v3860_v53  ;;  %5165 = vmatpush3.bf16.msra.mxu1 %v3876_v55 }
 0xb15   :  { %5144 = vmatprep.subr.bf16.mxu0 %v3869_v25  ;;  %5166 = vmatprep.subr.bf16.mxu1 %v3885_v28  ;;  %v3890_v28 = vld [vmem:[#allocation3 + $0x100] sm:$0xff] }
 0xb18   :  { %5145 = vmatpush3.bf16.msra.mxu0 %v3861_v46  ;;  %5167 = vmatpush3.bf16.msra.mxu1 %v3877_v30  ;;  %v3906_v46 = vld [vmem:[#allocation3 + $0x180] sm:$0xff]  ;;  %v3899_v30 = vld [vmem:[#allocation3 + $0x148] sm:$0xff] }
 0xb19   :  { %5146 = vmatprep.subr.bf16.mxu0 %v3870_v32  ;;  %5168 = vmatprep.subr.bf16.mxu1 %v3886_v33  ;;  %v3915_v32 = vld [vmem:[#allocation3 + $0x1c8] sm:$0xff] }
 0xb1a   :  { %v3891_v33 = vld [vmem:[#allocation3 + $0x108] sm:$0xff] }
 0xb1c   :  { %5147 = vmatpush3.bf16.msra.mxu0 %v3862_v36  ;;  %5169 = vmatpush3.bf16.msra.mxu1 %v3878_v38  ;;  %v3907_v36 = vld [vmem:[#allocation3 + $0x188] sm:$0xff]  ;;  %v3900_v38 = vld [vmem:[#allocation3 + $0x150] sm:$0xff] }
 0xb1d   :  { %5148 = vmatprep.subr.bf16.mxu0 %v3871_v40  ;;  %5170 = vmatprep.subr.bf16.mxu1 %v3887_v43  ;;  %v3916_v40 = vld [vmem:[#allocation3 + $0x1d0] sm:$0xff] }
 0xb1e   :  { %v3892_v43 = vld [vmem:[#allocation3 + $0x110] sm:$0xff] }
 0xb20   :  { %5149 = vmatpush3.bf16.msra.mxu0 %v3863_v45  ;;  %5171 = vmatpush3.bf16.msra.mxu1 %v3879_v47  ;;  %v3908_v45 = vld [vmem:[#allocation3 + $0x190] sm:$0xff]  ;;  %v3901_v47 = vld [vmem:[#allocation3 + $0x158] sm:$0xff] }
 0xb21   :  { %5150 = vmatprep.subr.bf16.mxu0 %v3872_v50  ;;  %5172 = vmatprep.subr.bf16.mxu1 %v3888_v52  ;;  %v3917_v50 = vld [vmem:[#allocation3 + $0x1d8] sm:$0xff] }
 0xb22   :  { %v3893_v52 = vld [vmem:[#allocation3 + $0x118] sm:$0xff] }
 0xb24   :  { %5151 = vmatpush3.bf16.msra.mxu0 %v3864_v16  ;;  %5173 = vmatpush3.bf16.msra.mxu1 %v3880_v59  ;;  %v3909_v16 = vld [vmem:[#allocation3 + $0x198] sm:$0xff]  ;;  %v3902_v59 = vld [vmem:[#allocation3 + $0x160] sm:$0xff] }
 0xb25   :  { %5152 = vmatprep.subr.bf16.mxu0 %v3873_v15  ;;  %5174 = vmatprep.subr.bf16.mxu1 %v3889_v5  ;;  %v3918_v15 = vld [vmem:[#allocation3 + $0x1e0] sm:$0xff] }
 0xb26   :  { %v3894_v5 = vld [vmem:[#allocation3 + $0x120] sm:$0xff] }
 0xb28   :  { %5153 = vmatpush3.bf16.msra.mxu0 %v3865_v63  ;;  %5175 = vmatpush3.bf16.msra.mxu1 %v3881_v3  ;;  %v3910_v63 = vld [vmem:[#allocation3 + $0x1a0] sm:$0xff]  ;;  %v3903_v3 = vld [vmem:[#allocation3 + $0x168] sm:$0xff] }
 0xb29   :  { %5182 = vmatprep.subr.bf16.mxu0 %v3898_v6  ;;  %5204 = vmatprep.subr.bf16.mxu1 %v3914_v9  ;;  %v3919_v6 = vld [vmem:[#allocation3 + $0x1e8] sm:$0xff]  ;;  %v3436_v9 = vsub.s32 4, %v7579_v17 }
 0xb7e   :  { %v3532_v8 = vpop.f32.mrb[28].mxu0  ;;  %v3573_v10 = vpop.f32.mrb[72].mxu1 }
 0xb7f   :  { %v3533_v18 = vadd.f32 %v3532_v8, %v3421_v60  ;;  %v3574_v19 = vadd.f32 %v3573_v10, %v3429_v61  ;;  %v3534_v12 = vpop.f32.mrb[29].mxu0  ;;  %v3575_v21 = vpop.f32.mrb[73].mxu1  ;;  %v3440_v60 = vsub.s32 5, %v7579_v17  ;;  %v3448_v61 = vsub.s32 7, %v7579_v17  ;;  %v3904_v8 = vld [vmem:[#allocation3 + $0x170] sm:$0xff] }
 0xb80   :  { %v3535_v23 = vadd.f32 %v3534_v12, %v3425_v62  ;;  %v3576_v24 = vadd.f32 %v3575_v21, %v3433_v4  ;;  %v3536_v27 = vpop.f32.mrb[30].mxu0  ;;  %v3577_v29 = vpop.f32.mrb[74].mxu1  ;;  %v3895_v62 = vld [vmem:[#allocation3 + $0x128] sm:$0xff]  ;;  %v3920_v10 = vld [vmem:[#allocation3 + $0x1f0] sm:$0xff] }
 0xb81   :  { %v3826_v34 = vmax.f32 %v3533_v18, 0.0  ;;  %v3828_v35 = vmax.f32 %v3574_v19, 0.0  ;;  %v3537_v41 = vpop.f32.mrb[31].mxu0  ;;  %v3578_v42 = vpop.f32.mrb[75].mxu1  ;;  %v3911_v4 = vld [vmem:[#allocation3 + $0x1a8] sm:$0xff]  ;;  %v3437_v18 = vrot.slane %v7587_v51, %v3436_v9  ;;  %v3445_v19 = vrot.slane %v7587_v51, %v3444_v13 }
 0xb82   :  { %v3827_v44 = vmax.f32 %v3535_v23, 0.0  ;;  %v3829_v48 = vmax.f32 %v3576_v24, 0.0  ;;  %v3441_v12 = vrot.slane %v7587_v51, %v3440_v60  ;;  %v3449_v21 = vrot.slane %v7587_v51, %v3448_v61  ;;  %v3896_v23 = vld [vmem:[#allocation3 + $0x130] sm:$0xff] }
 0xb83   :  { %v3842_v49 = vpack.c.bf16 %v3826_v34, %v3826_v34  ;;  %v3844_v53 = vpack.c.bf16 %v3828_v35, %v3828_v35  ;;  %v3912_v24 = vld [vmem:[#allocation3 + $0x1b0] sm:$0xff]  ;;  %v3905_v34 = vld [vmem:[#allocation3 + $0x178] sm:$0xff] }
 0xb84   :  { %v3843_v55 = vpack.c.bf16 %v3827_v44, %v3827_v44  ;;  %v3845_v25 = vpack.c.bf16 %v3829_v48, %v3829_v48  ;;  %v3921_v35 = vld [vmem:[#allocation3 + $0x1f8] sm:$0xff] }
 0xb86   :  { %4025 = vmatprep.mubr.bf16.mxu0 %v3843_v55  ;;  %4065 = vmatprep.mubr.bf16.mxu1 %v3845_v25 }
 0xb87   :  { %4026 = vmatmul.mubr.bf16.vlgmr.msra.gmra.mrb[44].mxu0 %v3842_v49  ;;  %4066 = vmatmul.mubr.bf16.vlgmr.msra.gmra.mrb[88].mxu1 %v3844_v53 }
 0xb88   :  { %5183 = vmatpush3.bf16.msra.mxu0 %v3890_v28  ;;  %5205 = vmatpush3.bf16.msra.mxu1 %v3906_v46 }
 0xb89   :  { %5184 = vmatprep.subr.bf16.mxu0 %v3899_v30  ;;  %5206 = vmatprep.subr.bf16.mxu1 %v3915_v32  ;;  %v3897_v32 = vld [vmem:[#allocation3 + $0x138] sm:$0xff] }
 0xb8c   :  { %5185 = vmatpush3.bf16.msra.mxu0 %v3891_v33  ;;  %5207 = vmatpush3.bf16.msra.mxu1 %v3907_v36  ;;  %v3913_v33 = vld [vmem:[#allocation3 + $0x1b8] sm:$0xff] }
 0xb8d   :  { %5186 = vmatprep.subr.bf16.mxu0 %v3900_v38  ;;  %5208 = vmatprep.subr.bf16.mxu1 %v3916_v40  ;;  %v3930_v40 = vld [vmem:[#allocation3 + $0x240] sm:$0xff] }
 0xb90   :  { %5187 = vmatpush3.bf16.msra.mxu0 %v3892_v43  ;;  %5209 = vmatpush3.bf16.msra.mxu1 %v3908_v45  ;;  %v3946_v43 = vld [vmem:[#allocation3 + $0x2c0] sm:$0xff] }
 0xb91   :  { %5188 = vmatprep.subr.bf16.mxu0 %v3901_v47  ;;  %5210 = vmatprep.subr.bf16.mxu1 %v3917_v50 }
 0xb94   :  { %5189 = vmatpush3.bf16.msra.mxu0 %v3893_v52  ;;  %5211 = vmatpush3.bf16.msra.mxu1 %v3909_v16  ;;  %v3922_v16 = vld [vmem:[#allocation3 + $0x200] sm:$0xff] }
 0xb95   :  { %5190 = vmatprep.subr.bf16.mxu0 %v3902_v59  ;;  %5212 = vmatprep.subr.bf16.mxu1 %v3918_v15  ;;  %v3938_v59 = vld [vmem:[#allocation3 + $0x280] sm:$0xff]  ;;  %v3931_v15 = vld [vmem:[#allocation3 + $0x248] sm:$0xff] }
 0xb98   :  { %5191 = vmatpush3.bf16.msra.mxu0 %v3894_v5  ;;  %5213 = vmatpush3.bf16.msra.mxu1 %v3910_v63  ;;  %v3947_v5 = vld [vmem:[#allocation3 + $0x2c8] sm:$0xff] }
 0xb99   :  { %5192 = vmatprep.subr.bf16.mxu0 %v3903_v3  ;;  %5214 = vmatprep.subr.bf16.mxu1 %v3919_v6  ;;  %v3923_v63 = vld [vmem:[#allocation3 + $0x208] sm:$0xff]  ;;  %v3932_v6 = vld [vmem:[#allocation3 + $0x250] sm:$0xff] }
 0xb9a   :  { %v3939_v3 = vld [vmem:[#allocation3 + $0x288] sm:$0xff] }
 0xb9c   :  { %5193 = vmatpush3.bf16.msra.mxu0 %v3895_v62  ;;  %5215 = vmatpush3.bf16.msra.mxu1 %v3911_v4  ;;  %v3948_v62 = vld [vmem:[#allocation3 + $0x2d0] sm:$0xff] }
 0xb9d   :  { %5194 = vmatprep.subr.bf16.mxu0 %v3904_v8  ;;  %5216 = vmatprep.subr.bf16.mxu1 %v3920_v10  ;;  %v3924_v4 = vld [vmem:[#allocation3 + $0x210] sm:$0xff]  ;;  %v3933_v10 = vld [vmem:[#allocation3 + $0x258] sm:$0xff] }
 0xb9e   :  { %v3614_v27 = vpop.f32.mrb[32].mxu0  ;;  %v3655_v29 = vpop.f32.mrb[76].mxu1  ;;  %v3940_v8 = vld [vmem:[#allocation3 + $0x290] sm:$0xff] }
 0xb9f   :  { %v3615_v41 = vadd.f32 %v3614_v27, %v3437_v18  ;;  %v3656_v42 = vadd.f32 %v3655_v29, %v3445_v19  ;;  %v3616_v44 = vpop.f32.mrb[33].mxu0  ;;  %v3657_v48 = vpop.f32.mrb[77].mxu1  ;;  %v3949_v18 = vld [vmem:[#allocation3 + $0x2d8] sm:$0xff]  ;;  %v3942_v27 = vld [vmem:[#allocation3 + $0x2a0] sm:$0xff]  ;;  %v3935_v29 = vld [vmem:[#allocation3 + $0x268] sm:$0xff] }
 0xba0   :  { %v3617_v49 = vadd.f32 %v3616_v44, %v3441_v12  ;;  %v3658_v53 = vadd.f32 %v3657_v48, %v3449_v21  ;;  %v3618_v55 = vpop.f32.mrb[34].mxu0  ;;  %v3659_v25 = vpop.f32.mrb[78].mxu1  ;;  %5195 = vmatpush3.bf16.msra.mxu0 %v3896_v23  ;;  %5217 = vmatpush3.bf16.msra.mxu1 %v3912_v24  ;;  %v3925_v19 = vld [vmem:[#allocation3 + $0x218] sm:$0xff]  ;;  %v3934_v21 = vld [vmem:[#allocation3 + $0x260] sm:$0xff]  ;;  %v3936_v44 = vld [vmem:[#allocation3 + $0x270] sm:$0xff] }
 0xba1   :  { %v3830_v28 = vmax.f32 %v3615_v41, 0.0  ;;  %v3832_v51 = vmax.f32 %v3656_v42, 0.0  ;;  %v3619_v46 = vpop.f32.mrb[35].mxu0  ;;  %v3660_v30 = vpop.f32.mrb[79].mxu1  ;;  %5196 = vmatprep.subr.bf16.mxu0 %v3905_v34  ;;  %5218 = vmatprep.subr.bf16.mxu1 %v3921_v35  ;;  %v3941_v12 = vld [vmem:[#allocation3 + $0x298] sm:$0xff]  ;;  %v3950_v23 = vld [vmem:[#allocation3 + $0x2e0] sm:$0xff] }
 0xba2   :  { %v3831_v36 = vmax.f32 %v3617_v49, 0.0  ;;  %v3833_v38 = vmax.f32 %v3658_v53, 0.0  ;;  %v3926_v24 = vld [vmem:[#allocation3 + $0x220] sm:$0xff]  ;;  %v3951_v34 = vld [vmem:[#allocation3 + $0x2e8] sm:$0xff]  ;;  %v3952_v48 = vld [vmem:[#allocation3 + $0x2f0] sm:$0xff] }
 0xba3   :  { %v3846_v45 = vpack.c.bf16 %v3830_v28, %v3830_v28  ;;  %v3848_v47 = vpack.c.bf16 %v3832_v51, %v3832_v51  ;;  %v7619_v35 = vld [vmem:[#allocation29 + $0x8] sm:$0xff]  ;;  %v3928_v28 = vld [vmem:[#allocation3 + $0x230] sm:$0xff] }
 0xba4   :  { %v3847_v50 = vpack.c.bf16 %v3831_v36, %v3831_v36  ;;  %v3849_v52 = vpack.c.bf16 %v3833_v38, %v3833_v38  ;;  %5197 = vmatpush3.bf16.msra.mxu0 %v3897_v32  ;;  %5219 = vmatpush3.bf16.msra.mxu1 %v3913_v33  ;;  %v3927_v41 = vld [vmem:[#allocation3 + $0x228] sm:$0xff]  ;;  %v3453_v49 = vrot.slane %v7619_v35, %v7582_v11  ;;  %v3944_v51 = vld [vmem:[#allocation3 + $0x2b0] sm:$0xff]  ;;  %v3937_v32 = vld [vmem:[#allocation3 + $0x278] sm:$0xff] }
 0xba5   :  { %5226 = vmatprep.subr.bf16.mxu0 %v3930_v40  ;;  %5248 = vmatprep.subr.bf16.mxu1 %v3946_v43  ;;  %v3943_v42 = vld [vmem:[#allocation3 + $0x2a8] sm:$0xff]  ;;  %v3461_v53 = vrot.slane %v7619_v35, %v7585_v39  ;;  %v3457_v55 = vrot.slane %v7619_v35, %v7590_v56  ;;  %v3465_v25 = vrot.slane %v7619_v35, %v7593_v58  ;;  %v3953_v33 = vld [vmem:[#allocation3 + $0x2f8] sm:$0xff] }
 0xba6   :  { %4105 = vmatprep.mubr.bf16.mxu0 %v3847_v50  ;;  %4145 = vmatprep.mubr.bf16.mxu1 %v3849_v52 }
 0xba7   :  { %4106 = vmatmul.mubr.bf16.vlgmr.msra.gmra.mrb[48].mxu0 %v3846_v45  ;;  %4146 = vmatmul.mubr.bf16.vlgmr.msra.gmra.mrb[92].mxu1 %v3848_v47 }
 0xba8   :  { %5227 = vmatpush3.bf16.msra.mxu0 %v3922_v16  ;;  %5249 = vmatpush3.bf16.msra.mxu1 %v3938_v59 }
 0xba9   :  { %5228 = vmatprep.subr.bf16.mxu0 %v3931_v15  ;;  %5250 = vmatprep.subr.bf16.mxu1 %v3947_v5 }
 0xbac   :  { %5229 = vmatpush3.bf16.msra.mxu0 %v3923_v63  ;;  %5251 = vmatpush3.bf16.msra.mxu1 %v3939_v3  ;;  %v3929_v63 = vld [vmem:[#allocation3 + $0x238] sm:$0xff] }
 0xbad   :  { %5230 = vmatprep.subr.bf16.mxu0 %v3932_v6  ;;  %5252 = vmatprep.subr.bf16.mxu1 %v3948_v62  ;;  %v3945_v3 = vld [vmem:[#allocation3 + $0x2b8] sm:$0xff] }
 0xbb0   :  { %5231 = vmatpush3.bf16.msra.mxu0 %v3924_v4  ;;  %5253 = vmatpush3.bf16.msra.mxu1 %v3940_v8  ;;  %v3962_v4 = vld [vmem:[#allocation3 + $0x340] sm:$0xff] }
 0xbb1   :  { %5232 = vmatprep.subr.bf16.mxu0 %v3933_v10  ;;  %5254 = vmatprep.subr.bf16.mxu1 %v3949_v18  ;;  %v3978_v8 = vld [vmem:[#allocation3 + $0x3c0] sm:$0xff] }
 0xbb4   :  { %5233 = vmatpush3.bf16.msra.mxu0 %v3925_v19  ;;  %5255 = vmatpush3.bf16.msra.mxu1 %v3941_v12 }
 0xbb5   :  { %5234 = vmatprep.subr.bf16.mxu0 %v3934_v21  ;;  %5256 = vmatprep.subr.bf16.mxu1 %v3950_v23  ;;  %v3954_v21 = vld [vmem:[#allocation3 + $0x300] sm:$0xff] }
 0xbb6   :  { %v3970_v23 = vld [vmem:[#allocation3 + $0x380] sm:$0xff] }
 0xbb8   :  { %5235 = vmatpush3.bf16.msra.mxu0 %v3926_v24  ;;  %5257 = vmatpush3.bf16.msra.mxu1 %v3942_v27  ;;  %v3963_v24 = vld [vmem:[#allocation3 + $0x348] sm:$0xff] }
 0xbb9   :  { %5236 = vmatprep.subr.bf16.mxu0 %v3935_v29  ;;  %5258 = vmatprep.subr.bf16.mxu1 %v3951_v34  ;;  %v3979_v27 = vld [vmem:[#allocation3 + $0x3c8] sm:$0xff] }
 0xbba   :  { %v3955_v29 = vld [vmem:[#allocation3 + $0x308] sm:$0xff] }
 0xbbb   :  { %v3971_v34 = vld [vmem:[#allocation3 + $0x388] sm:$0xff] }
 0xbbc   :  { %5237 = vmatpush3.bf16.msra.mxu0 %v3927_v41  ;;  %5259 = vmatpush3.bf16.msra.mxu1 %v3943_v42  ;;  %v3964_v41 = vld [vmem:[#allocation3 + $0x350] sm:$0xff] }
 0xbbd   :  { %5238 = vmatprep.subr.bf16.mxu0 %v3936_v44  ;;  %5260 = vmatprep.subr.bf16.mxu1 %v3952_v48  ;;  %v3980_v42 = vld [vmem:[#allocation3 + $0x3d0] sm:$0xff] }
 0xbbe   :  { %v3696_v46 = vpop.f32.mrb[36].mxu0  ;;  %v3737_v30 = vpop.f32.mrb[80].mxu1  ;;  %v3956_v44 = vld [vmem:[#allocation3 + $0x310] sm:$0xff] }
 0xbbf   :  { %v3697_v36 = vadd.f32 %v3696_v46, %v3453_v49  ;;  %v3738_v38 = vadd.f32 %v3737_v30, %v3461_v53  ;;  %v3698_v40 = vpop.f32.mrb[37].mxu0  ;;  %v3739_v43 = vpop.f32.mrb[81].mxu1  ;;  %v3972_v48 = vld [vmem:[#allocation3 + $0x390] sm:$0xff]  ;;  %v3965_v49 = vld [vmem:[#allocation3 + $0x358] sm:$0xff]  ;;  %v3958_v46 = vld [vmem:[#allocation3 + $0x320] sm:$0xff] }
 0xbc0   :  { %v3699_v45 = vadd.f32 %v3698_v40, %v3457_v55  ;;  %v3740_v47 = vadd.f32 %v3739_v43, %v3465_v25  ;;  %v3700_v50 = vpop.f32.mrb[38].mxu0  ;;  %v3741_v52 = vpop.f32.mrb[82].mxu1  ;;  %5239 = vmatpush3.bf16.msra.mxu0 %v3928_v28  ;;  %5261 = vmatpush3.bf16.msra.mxu1 %v3944_v51  ;;  %v3981_v53 = vld [vmem:[#allocation3 + $0x3d8] sm:$0xff]  ;;  %v3966_v28 = vld [vmem:[#allocation3 + $0x360] sm:$0xff]  ;;  %v3968_v40 = vld [vmem:[#allocation3 + $0x370] sm:$0xff] }
 0xbc1   :  { %v3834_v16 = vmax.f32 %v3697_v36, 0.0  ;;  %v3836_v59 = vmax.f32 %v3738_v38, 0.0  ;;  %v3701_v15 = vpop.f32.mrb[39].mxu0  ;;  %v3742_v5 = vpop.f32.mrb[83].mxu1  ;;  %5240 = vmatprep.subr.bf16.mxu0 %v3937_v32  ;;  %5262 = vmatprep.subr.bf16.mxu1 %v3953_v33  ;;  %v3957_v55 = vld [vmem:[#allocation3 + $0x318] sm:$0xff]  ;;  %v3982_v51 = vld [vmem:[#allocation3 + $0x3e0] sm:$0xff]  ;;  %v3473_v50 = vrot.slane %v7619_v35, %v3440_v60  ;;  %v3481_v52 = vrot.slane %v7619_v35, %v3448_v61 }
 0xbc2   :  { %v3835_v6 = vmax.f32 %v3699_v45, 0.0  ;;  %v3837_v62 = vmax.f32 %v3740_v47, 0.0  ;;  %v3973_v25 = vld [vmem:[#allocation3 + $0x398] sm:$0xff]  ;;  %v3974_v30 = vld [vmem:[#allocation3 + $0x3a0] sm:$0xff]  ;;  %v3967_v32 = vld [vmem:[#allocation3 + $0x368] sm:$0xff]  ;;  %v3469_v45 = vrot.slane %v7619_v35, %v3436_v9  ;;  %v3477_v47 = vrot.slane %v7619_v35, %v3444_v13 }
 0xbc3   :  { %v3850_v10 = vpack.c.bf16 %v3834_v16, %v3834_v16  ;;  %v3852_v18 = vpack.c.bf16 %v3836_v59, %v3836_v59  ;;  %v3983_v33 = vld [vmem:[#allocation3 + $0x3e8] sm:$0xff]  ;;  %v3984_v43 = vld [vmem:[#allocation3 + $0x3f0] sm:$0xff]  ;;  %v3969_v5 = vld [vmem:[#allocation3 + $0x378] sm:$0xff] }
 0xbc4   :  { %v3851_v19 = vpack.c.bf16 %v3835_v6, %v3835_v6  ;;  %v3853_v12 = vpack.c.bf16 %v3837_v62, %v3837_v62  ;;  %5241 = vmatpush3.bf16.msra.mxu0 %v3929_v63  ;;  %5263 = vmatpush3.bf16.msra.mxu1 %v3945_v3  ;;  %v3959_v36 = vld [vmem:[#allocation3 + $0x328] sm:$0xff]  ;;  %v3960_v16 = vld [vmem:[#allocation3 + $0x330] sm:$0xff]  ;;  %v3985_v63 = vld [vmem:[#allocation3 + $0x3f8] sm:$0xff] }
 0xbc5   :  { %5270 = vmatprep.subr.bf16.mxu0 %v3962_v4  ;;  %5292 = vmatprep.subr.bf16.mxu1 %v3978_v8  ;;  %v3975_v38 = vld [vmem:[#allocation3 + $0x3a8] sm:$0xff]  ;;  %v3976_v59 = vld [vmem:[#allocation3 + $0x3b0] sm:$0xff] }
 0xbc6   :  { %4185 = vmatprep.mubr.bf16.mxu0 %v3851_v19  ;;  %4225 = vmatprep.mubr.bf16.mxu1 %v3853_v12  ;;  %v3961_v19 = vld [vmem:[#allocation3 + $0x338] sm:$0xff] }
 0xbc7   :  { %4186 = vmatmul.mubr.bf16.vlgmr.msra.gmra.mrb[52].mxu0 %v3850_v10  ;;  %4226 = vmatmul.mubr.bf16.vlgmr.msra.gmra.mrb[96].mxu1 %v3852_v18  ;;  %v3977_v12 = vld [vmem:[#allocation3 + $0x3b8] sm:$0xff] }
 0xbc8   :  { %5271 = vmatpush3.bf16.msra.mxu0 %v3954_v21  ;;  %5293 = vmatpush3.bf16.msra.mxu1 %v3970_v23 }
 0xbc9   :  { %5272 = vmatprep.subr.bf16.mxu0 %v3963_v24  ;;  %5294 = vmatprep.subr.bf16.mxu1 %v3979_v27 }
 0xbcc   :  { %5273 = vmatpush3.bf16.msra.mxu0 %v3955_v29  ;;  %5295 = vmatpush3.bf16.msra.mxu1 %v3971_v34 }
 0xbcd   :  { %5274 = vmatprep.subr.bf16.mxu0 %v3964_v41  ;;  %5296 = vmatprep.subr.bf16.mxu1 %v3980_v42 }
 0xbd0   :  { %5275 = vmatpush3.bf16.msra.mxu0 %v3956_v44  ;;  %5297 = vmatpush3.bf16.msra.mxu1 %v3972_v48 }
 0xbd1   :  { %5276 = vmatprep.subr.bf16.mxu0 %v3965_v49  ;;  %5298 = vmatprep.subr.bf16.mxu1 %v3981_v53 }
 0xbd4   :  { %5277 = vmatpush3.bf16.msra.mxu0 %v3957_v55  ;;  %5299 = vmatpush3.bf16.msra.mxu1 %v3973_v25 }
 0xbd5   :  { %5278 = vmatprep.subr.bf16.mxu0 %v3966_v28  ;;  %5300 = vmatprep.subr.bf16.mxu1 %v3982_v51 }
 0xbd8   :  { %5279 = vmatpush3.bf16.msra.mxu0 %v3958_v46  ;;  %5301 = vmatpush3.bf16.msra.mxu1 %v3974_v30 }
 0xbd9   :  { %5280 = vmatprep.subr.bf16.mxu0 %v3967_v32  ;;  %5302 = vmatprep.subr.bf16.mxu1 %v3983_v33 }
 0xbdc   :  { %5281 = vmatpush3.bf16.msra.mxu0 %v3959_v36  ;;  %5303 = vmatpush3.bf16.msra.mxu1 %v3975_v38 }
 0xbdd   :  { %5282 = vmatprep.subr.bf16.mxu0 %v3968_v40  ;;  %5304 = vmatprep.subr.bf16.mxu1 %v3984_v43 }
 0xbde   :  { %v3778_v15 = vpop.f32.mrb[40].mxu0  ;;  %v3819_v9 = vpop.f32.mrb[84].mxu1 }
 0xbdf   :  { %v3779_v3 = vadd.f32 %v3778_v15, %v3469_v45  ;;  %v3820_v13 = vadd.f32 %v3819_v9, %v3477_v47  ;;  %v3780_v6 = vpop.f32.mrb[41].mxu0  ;;  %v3821_v62 = vpop.f32.mrb[85].mxu1 }
 0xbe0   :  { %v3781_v4 = vadd.f32 %v3780_v6, %v3473_v50  ;;  %v3822_v8 = vadd.f32 %v3821_v62, %v3481_v52  ;;  %v3782_v10 = vpop.f32.mrb[42].mxu0  ;;  %v3823_v60 = vpop.f32.mrb[86].mxu1  ;;  %5283 = vmatpush3.bf16.msra.mxu0 %v3960_v16  ;;  %5305 = vmatpush3.bf16.msra.mxu1 %v3976_v59 }
 0xbe1   :  { %v3838_v17 = vmax.f32 %v3779_v3, 0.0  ;;  %v3840_v61 = vmax.f32 %v3820_v13, 0.0  ;;  %v3783_v35 = vpop.f32.mrb[43].mxu0  ;;  %v3824_v18 = vpop.f32.mrb[87].mxu1  ;;  %5284 = vmatprep.subr.bf16.mxu0 %v3969_v5  ;;  %5306 = vmatprep.subr.bf16.mxu1 %v3985_v63 }
 0xbe2   :  { %v3839_v21 = vmax.f32 %v3781_v4, 0.0  ;;  %v3841_v23 = vmax.f32 %v3822_v8, 0.0 }
 0xbe3   :  { %v3856_v24 = vpack.c.bf16 %v3840_v61, %v3840_v61  ;;  %v3854_v34 = vpack.c.bf16 %v3838_v17, %v3838_v17 }
 0xbe4   :  { %v3855_v27 = vpack.c.bf16 %v3839_v21, %v3839_v21  ;;  %v3857_v29 = vpack.c.bf16 %v3841_v23, %v3841_v23  ;;  %5285 = vmatpush3.bf16.msra.mxu0 %v3961_v19  ;;  %5307 = vmatpush3.bf16.msra.mxu1 %v3977_v12 }
 0xbe5   :  { %5871 = vmatprep.subr.bf16.mxu0 %v7520_v2 }
 0xbe6   :  { %4265 = vmatprep.mubr.bf16.mxu0 %v3855_v27  ;;  %4305 = vmatprep.mubr.bf16.mxu1 %v3857_v29 }
 0xbe7   :  { %4266 = vmatmul.mubr.bf16.vlgmr.msra.gmra.mrb[56].mxu0 %v3854_v34  ;;  %4306 = vmatmul.mubr.bf16.vlgmr.msra.gmra.mrb[100].mxu1 %v3856_v24 }
 0xbe8   :  { %5873 = vmatpush3.bf16.msra.mxu0 %v7520_v2 }
 0xbe9   :  { %5875 = vmatprep.subr.bf16.mxu0 %v7522_v7 }
 0xbec   :  { %5877 = vmatpush3.bf16.msra.mxu0 %v7522_v7 }
 0xbed   :  { %5879 = vmatprep.subr.bf16.mxu0 %v7527_v14 }
 0xbf0   :  { %5881 = vmatpush3.bf16.msra.mxu0 %v7527_v14  ;;  %v4946_v14 = vld [vmem:[#allocation30] ss:$0 sm:$0xff] }
 0xbf1   :  { %5883 = vmatprep.subr.bf16.mxu0 %v7531_v20 }
 0xbf4   :  { %5885 = vmatpush3.bf16.msra.mxu0 %v7531_v20 }
 0xbf5   :  { %5887 = vmatprep.subr.bf16.mxu0 %v7535_v22 }
 0xbf8   :  { %5889 = vmatpush3.bf16.msra.mxu0 %v7535_v22 }
 0xbf9   :  { %5891 = vmatprep.subr.bf16.mxu0 %v7539_v26 }
 0xbfc   :  { %5893 = vmatpush3.bf16.msra.mxu0 %v7539_v26 }
 0xbfd   :  { %5895 = vmatprep.subr.bf16.mxu0 %v7543_v31 }
 0xc00   :  { %5897 = vmatpush3.bf16.msra.mxu0 %v7543_v31 }
 0xc01   :  { %5899 = vmatprep.subr.bf16.mxu0 %v7547_v37 }
 0xc04   :  { %5901 = vmatpush3.bf16.msra.mxu0 %v7547_v37 }
 0xc5a   :  { %v5154_v2 = vpop.f32.mrb[44].mxu0  ;;  %v5176_v7 = vpop.f32.mrb[88].mxu1 }
 0xc5b   :  { %v5155_v20 = vpop.f32.mrb[45].mxu0  ;;  %v5177_v41 = vpop.f32.mrb[89].mxu1 }
 0xc5c   :  { %v5156_v42 = vadd.f32 %v5155_v20, %v5154_v2  ;;  %v5178_v44 = vadd.f32 %v5177_v41, %v5176_v7  ;;  %v5157_v22 = vpop.f32.mrb[46].mxu0  ;;  %v5179_v48 = vpop.f32.mrb[90].mxu1  ;;  %v4948_v41 = vld [vmem:[#allocation33] ss:$0 sm:$0xff] }
 0xc5d   :  { %v5158_v49 = vpop.f32.mrb[47].mxu0  ;;  %v5180_v53 = vpop.f32.mrb[91].mxu1 }
 0xc5e   :  { %v4028_v26 = vadd.f32 %v5156_v42, %v4946_v14  ;;  %v4947_v14 = vld [vmem:[#allocation32] ss:$0 sm:$0xff] }
 0xc60   :  { %v4068_v55 = vadd.f32 %v5178_v44, %v4028_v26 }
 0xc7a   :  { %v5198_v25 = vpop.f32.mrb[48].mxu0  ;;  %v5220_v28 = vpop.f32.mrb[92].mxu1 }
 0xc7b   :  { %v5199_v31 = vpop.f32.mrb[49].mxu0  ;;  %v5221_v51 = vpop.f32.mrb[93].mxu1 }
 0xc7c   :  { %v5200_v46 = vadd.f32 %v5199_v31, %v5198_v25  ;;  %v5222_v30 = vadd.f32 %v5221_v51, %v5220_v28  ;;  %v5201_v37 = vpop.f32.mrb[50].mxu0  ;;  %v5223_v32 = vpop.f32.mrb[94].mxu1 }
 0xc7d   :  { %v5202_v33 = vpop.f32.mrb[51].mxu0  ;;  %v5224_v36 = vpop.f32.mrb[95].mxu1 }
 0xc7e   :  { %v4108_v38 = vadd.f32 %v5200_v46, %v4068_v55 }
 0xc80   :  { %v4148_v40 = vadd.f32 %v5222_v30, %v4108_v38 }
 0xc9a   :  { %v5242_v43 = vpop.f32.mrb[52].mxu0  ;;  %v5264_v45 = vpop.f32.mrb[96].mxu1 }
 0xc9b   :  { %v5243_v47 = vpop.f32.mrb[53].mxu0  ;;  %v5265_v50 = vpop.f32.mrb[97].mxu1 }
 0xc9c   :  { %v5244_v52 = vadd.f32 %v5243_v47, %v5242_v43  ;;  %v5266_v16 = vadd.f32 %v5265_v50, %v5264_v45  ;;  %v5245_v59 = vpop.f32.mrb[54].mxu0  ;;  %v5267_v15 = vpop.f32.mrb[98].mxu1 }
 0xc9d   :  { %v5246_v9 = vpop.f32.mrb[55].mxu0  ;;  %v5268_v5 = vpop.f32.mrb[99].mxu1 }
 0xc9e   :  { %v4188_v63 = vadd.f32 %v5244_v52, %v4148_v40 }
 0xca0   :  { %v4228_v3 = vadd.f32 %v5266_v16, %v4188_v63 }
 0xcba   :  { %v5286_v13 = vpop.f32.mrb[56].mxu0  ;;  %v5308_v6 = vpop.f32.mrb[100].mxu1 }
 0xcbb   :  { %v5287_v62 = vpop.f32.mrb[57].mxu0  ;;  %v5309_v4 = vpop.f32.mrb[101].mxu1 }
 0xcbc   :  { %v5288_v8 = vadd.f32 %v5287_v62, %v5286_v13  ;;  %v5310_v10 = vadd.f32 %v5309_v4, %v5308_v6  ;;  %v5289_v60 = vpop.f32.mrb[58].mxu0  ;;  %v5311_v17 = vpop.f32.mrb[102].mxu1 }
 0xcbd   :  { %v5290_v61 = vpop.f32.mrb[59].mxu0  ;;  %v5312_v35 = vpop.f32.mrb[103].mxu1 }
 0xcbe   :  { %v4268_v18 = vadd.f32 %v5288_v8, %v4228_v3 }
 0xcc0   :  { %v4308_v19 = vadd.f32 %v5310_v10, %v4268_v18 }
 0xcc2   :  { %v4313_v12 = vadd.f32 %v4308_v19, %v7557_v54 }
 0xcc4   :  { %5628 = vmatprep.mubr.f32.mxu0 %v4313_v12  ;;  %v4316_v21 = vmul.f32 %v4313_v12, %v4313_v12 }
 0xcc6   :  { %5629 = vmatmul.mubr.f32.vlgmr.msra.gmra.mrb[26].mxu0 %v4316_v21 }
 0xd99   :  { %v5630_v23 = vpop.f32.mrb[26].mxu0 }
 0xd9a   :  { %v4383_v24 = vpop.f32.mrb[27].mxu0 }
 0xd9b   :  { %v4392_v27 = vmul.f32 %v4383_v24, %v4383_v24  ;;  %v4394_v2 = vsub.f32 %v4313_v12, %v4383_v24 }
 0xd9d   :  { %v4393_v29 = vsub.f32 %v5630_v23, %v4392_v27 }
 0xd9f   :  { %v4395_v34 = vadd.f32 1e-05, %v4393_v29 }
 0xda1   :  { %6013 = vrsqrt.f32 %v4395_v34 }
 0xdab   :  { %v6014_v7 = vpop.eup %6013 }
 0xdac   :  { %v4397_v20 = vmul.f32 %v6014_v7, %v4394_v2 }
 0xdae   :  { %v4404_v42 = vmul.f32 %v4947_v14, %v4397_v20 }
 0xdb0   :  { %v7658_v44 = vadd.f32 %v4948_v41, %v4404_v42 }
 0xdb1   :  { %6571 = dma.done.wait [#allocation6 + $0x2], 4096 }
 0xdb2   :  { %6572 = vsyncadd [#allocation6 + $0x2], 4294963200 }
 0xdb3   :  { %6573 = dma.done.wait [#allocation6 + $0x3], 4096 }
 0xdb4   :  { %6574 = vsyncadd [#allocation6 + $0x3], 4294963200  ;;  %4506 = vmatprep.mubr.bf16.mxu1 %v6647_v57  ;;  %4547 = vmatprep.mubr.bf16.mxu0 %v6647_v57  ;;  %v4421_v54 = vld [vmem:[#allocation4 + $0x8] sm:$0xff]  ;;  %v4423_v22 = vld [vmem:[#allocation4 + $0x18] sm:$0xff]  ;;  %v4419_v62 = vpack.c.bf16 %v7658_v44, %v7658_v44 }
 0xdb5   :  { %v4420_v48 = vld [vmem:[#allocation4] sm:$0xff]  ;;  %4474 = vmatprep.subr.bf16.mxu1 %v4421_v54  ;;  %4515 = vmatprep.subr.bf16.mxu0 %v4423_v22  ;;  %v4422_v49 = vld [vmem:[#allocation4 + $0x10] sm:$0xff]  ;;  %v4425_v53 = vld [vmem:[#allocation4 + $0x28] sm:$0xff] }
 0xdb6   :  { %v4427_v26 = vld [vmem:[#allocation4 + $0x38] sm:$0xff]  ;;  %4475 = vmatpush1.bf16.msra.mxu1 %v4420_v48  ;;  %4516 = vmatpush1.bf16.msra.mxu0 %v4422_v49  ;;  %v4424_v55 = vld [vmem:[#allocation4 + $0x20] sm:$0xff]  ;;  %v4426_v25 = vld [vmem:[#allocation4 + $0x30] sm:$0xff] }
 0xdb7   :  { %4476 = vmatprep.subr.bf16.mxu1 %v4425_v53  ;;  %4517 = vmatprep.subr.bf16.mxu0 %v4427_v26  ;;  %v4429_v28 = vld [vmem:[#allocation4 + $0x48] sm:$0xff]  ;;  %v4431_v31 = vld [vmem:[#allocation4 + $0x58] sm:$0xff]  ;;  %v4428_v57 = vld [vmem:[#allocation4 + $0x40] sm:$0xff] }
 0xdb8   :  { %v4430_v51 = vld [vmem:[#allocation4 + $0x50] sm:$0xff]  ;;  %v4433_v46 = vld [vmem:[#allocation4 + $0x68] sm:$0xff]  ;;  %v4435_v30 = vld [vmem:[#allocation4 + $0x78] sm:$0xff] }
 0xdb9   :  { %v4432_v37 = vld [vmem:[#allocation4 + $0x60] sm:$0xff]  ;;  %v4434_v32 = vld [vmem:[#allocation4 + $0x70] sm:$0xff]  ;;  %v4437_v33 = vld [vmem:[#allocation4 + $0x88] sm:$0xff] }
 0xdba   :  { %4477 = vmatpush1.bf16.msra.mxu1 %v4424_v55  ;;  %4518 = vmatpush1.bf16.msra.mxu0 %v4426_v25  ;;  %v4439_v36 = vld [vmem:[#allocation4 + $0x98] sm:$0xff]  ;;  %v4436_v38 = vld [vmem:[#allocation4 + $0x80] sm:$0xff]  ;;  %v4438_v40 = vld [vmem:[#allocation4 + $0x90] sm:$0xff] }
 0xdbb   :  { %4478 = vmatprep.subr.bf16.mxu1 %v4429_v28  ;;  %4519 = vmatprep.subr.bf16.mxu0 %v4431_v31  ;;  %v4441_v43 = vld [vmem:[#allocation4 + $0xa8] sm:$0xff]  ;;  %v4443_v45 = vld [vmem:[#allocation4 + $0xb8] sm:$0xff]  ;;  %v4440_v47 = vld [vmem:[#allocation4 + $0xa0] sm:$0xff] }
 0xdbc   :  { %v4442_v50 = vld [vmem:[#allocation4 + $0xb0] sm:$0xff]  ;;  %v4445_v52 = vld [vmem:[#allocation4 + $0xc8] sm:$0xff]  ;;  %v4447_v16 = vld [vmem:[#allocation4 + $0xd8] sm:$0xff] }
 0xdbd   :  { %v4444_v59 = vld [vmem:[#allocation4 + $0xc0] sm:$0xff]  ;;  %v4446_v15 = vld [vmem:[#allocation4 + $0xd0] sm:$0xff]  ;;  %v4449_v9 = vld [vmem:[#allocation4 + $0xe8] sm:$0xff] }
 0xdbe   :  { %4479 = vmatpush1.bf16.msra.mxu1 %v4428_v57  ;;  %4520 = vmatpush1.bf16.msra.mxu0 %v4430_v51  ;;  %v4451_v5 = vld [vmem:[#allocation4 + $0xf8] sm:$0xff]  ;;  %v4448_v63 = vld [vmem:[#allocation4 + $0xe0] sm:$0xff]  ;;  %v4450_v3 = vld [vmem:[#allocation4 + $0xf0] sm:$0xff] }
 0xdbf   :  { %4480 = vmatprep.subr.bf16.mxu1 %v4433_v46  ;;  %4521 = vmatprep.subr.bf16.mxu0 %v4435_v30  ;;  %v4572_v13 = vld [vmem:[#allocation5 + $0x40] sm:$0xff]  ;;  %v4573_v10 = vld [vmem:[#allocation5 + $0x48] sm:$0xff]  ;;  %v4574_v35 = vld [vmem:[#allocation5 + $0x50] sm:$0xff] }
 0xdc0   :  { %v4588_v6 = vld [vmem:[#allocation5 + $0xc0] sm:$0xff]  ;;  %v4589_v60 = vld [vmem:[#allocation5 + $0xc8] sm:$0xff]  ;;  %v4590_v18 = vld [vmem:[#allocation5 + $0xd0] sm:$0xff] }
 0xdc1   :  { %v4564_v4 = vld [vmem:[#allocation5] sm:$0xff]  ;;  %v4565_v17 = vld [vmem:[#allocation5 + $0x8] sm:$0xff]  ;;  %v4566_v19 = vld [vmem:[#allocation5 + $0x10] sm:$0xff] }
 0xdc2   :  { %4481 = vmatpush1.bf16.msra.mxu1 %v4432_v37  ;;  %4522 = vmatpush1.bf16.msra.mxu0 %v4434_v32  ;;  %v4580_v8 = vld [vmem:[#allocation5 + $0x80] sm:$0xff]  ;;  %v4581_v61 = vld [vmem:[#allocation5 + $0x88] sm:$0xff]  ;;  %v4582_v12 = vld [vmem:[#allocation5 + $0x90] sm:$0xff] }
 0xdc3   :  { %4482 = vmatprep.subr.bf16.mxu1 %v4437_v33  ;;  %4523 = vmatprep.subr.bf16.mxu0 %v4439_v36  ;;  %v4575_v21 = vld [vmem:[#allocation5 + $0x58] sm:$0xff]  ;;  %v4576_v29 = vld [vmem:[#allocation5 + $0x60] sm:$0xff]  ;;  %v4577_v14 = vld [vmem:[#allocation5 + $0x68] sm:$0xff] }
 0xdc4   :  { %v4591_v23 = vld [vmem:[#allocation5 + $0xd8] sm:$0xff]  ;;  %v4592_v34 = vld [vmem:[#allocation5 + $0xe0] sm:$0xff]  ;;  %v4593_v20 = vld [vmem:[#allocation5 + $0xe8] sm:$0xff] }
 0xdc5   :  { %v4567_v24 = vld [vmem:[#allocation5 + $0x18] sm:$0xff]  ;;  %v4568_v2 = vld [vmem:[#allocation5 + $0x20] sm:$0xff]  ;;  %v4569_v41 = vld [vmem:[#allocation5 + $0x28] sm:$0xff] }
 0xdc6   :  { %4483 = vmatpush1.bf16.msra.mxu1 %v4436_v38  ;;  %4524 = vmatpush1.bf16.msra.mxu0 %v4438_v40  ;;  %v4583_v27 = vld [vmem:[#allocation5 + $0x98] sm:$0xff]  ;;  %v4584_v7 = vld [vmem:[#allocation5 + $0xa0] sm:$0xff]  ;;  %v4585_v42 = vld [vmem:[#allocation5 + $0xa8] sm:$0xff] }
 0xdc7   :  { %4484 = vmatprep.subr.bf16.mxu1 %v4441_v43  ;;  %4525 = vmatprep.subr.bf16.mxu0 %v4443_v45  ;;  %v4578_v44 = vld [vmem:[#allocation5 + $0x70] sm:$0xff]  ;;  %v4579_v49 = vld [vmem:[#allocation5 + $0x78] sm:$0xff] }
 0xdc8   :  { %v4594_v54 = vld [vmem:[#allocation5 + $0xf0] sm:$0xff]  ;;  %v4595_v53 = vld [vmem:[#allocation5 + $0xf8] sm:$0xff] }
 0xdc9   :  { %v4570_v22 = vld [vmem:[#allocation5 + $0x30] sm:$0xff]  ;;  %v4571_v26 = vld [vmem:[#allocation5 + $0x38] sm:$0xff] }
 0xdca   :  { %4485 = vmatpush1.bf16.msra.mxu1 %v4440_v47  ;;  %4526 = vmatpush1.bf16.msra.mxu0 %v4442_v50  ;;  %v4586_v48 = vld [vmem:[#allocation5 + $0xb0] sm:$0xff]  ;;  %v4587_v55 = vld [vmem:[#allocation5 + $0xb8] sm:$0xff] }
 0xdcb   :  { %4486 = vmatprep.subr.bf16.mxu1 %v4445_v52  ;;  %4527 = vmatprep.subr.bf16.mxu0 %v4447_v16  ;;  %v4452_v25 = vld [vmem:[#allocation35] sm:$0xf]  ;;  %v4684_v16 = vld [vmem:[#allocation38] sm:$0xff] }
 0xdcc   :  { %v4457_v28 = vrot.slane %v4452_v25, %v7582_v11  ;;  %v4465_v31 = vrot.slane %v4452_v25, %v7585_v39  ;;  %v4461_v57 = vrot.slane %v4452_v25, %v7590_v56  ;;  %v4469_v51 = vrot.slane %v4452_v25, %v7593_v58  ;;  %v4685_v39 = vld [vmem:[#allocation38 + $0x8] sm:$0xff] }
 0xdce   :  { %4487 = vmatpush1.bf16.msra.mxu1 %v4444_v59  ;;  %4528 = vmatpush1.bf16.msra.mxu0 %v4446_v15 }
 0xdcf   :  { %4488 = vmatprep.subr.bf16.mxu1 %v4449_v9  ;;  %4529 = vmatprep.subr.bf16.mxu0 %v4451_v5  ;;  %v5903_v5 = vpack.c.bf16 %v4685_v39, %v4684_v16 }
 0xdd2   :  { %4489 = vmatpush1.bf16.msra.mxu1 %v4448_v63  ;;  %4530 = vmatpush1.bf16.msra.mxu0 %v4450_v3  ;;  %v4686_v3 = vld [vmem:[#allocation38 + $0x10] sm:$0xff] }
 0xdd3   :  { %5332 = vmatprep.subr.bf16.mxu1 %v4572_v13  ;;  %5354 = vmatprep.subr.bf16.mxu0 %v4588_v6  ;;  %v4687_v13 = vld [vmem:[#allocation38 + $0x18] sm:$0xff] }
 0xdd4   :  { %v5906_v6 = vpack.c.bf16 %v4687_v13, %v4686_v3 }
 0xdd5   :  { %4507 = vmatmul.mubr.bf16.vlgmr.msra.gmra.mrb[104].mxu1 %v4419_v62  ;;  %4548 = vmatmul.mubr.bf16.vlgmr.msra.gmra.mrb[60].mxu0 %v4419_v62  ;;  %v4688_v62 = vld [vmem:[#allocation38 + $0x20] sm:$0xff] }
 0xdd6   :  { %5333 = vmatpush3.bf16.msra.mxu1 %v4564_v4  ;;  %5355 = vmatpush3.bf16.msra.mxu0 %v4580_v8  ;;  %v4689_v4 = vld [vmem:[#allocation38 + $0x28] sm:$0xff] }
 0xdd7   :  { %5334 = vmatprep.subr.bf16.mxu1 %v4573_v10  ;;  %5356 = vmatprep.subr.bf16.mxu0 %v4589_v60  ;;  %v5909_v8 = vpack.c.bf16 %v4689_v4, %v4688_v62  ;;  %v4690_v10 = vld [vmem:[#allocation38 + $0x30] sm:$0xff]  ;;  %v4691_v60 = vld [vmem:[#allocation38 + $0x38] sm:$0xff] }
 0xdda   :  { %5335 = vmatpush3.bf16.msra.mxu1 %v4565_v17  ;;  %5357 = vmatpush3.bf16.msra.mxu0 %v4581_v61  ;;  %v5912_v17 = vpack.c.bf16 %v4691_v60, %v4690_v10  ;;  %v4692_v61 = vld [vmem:[#allocation38 + $0x40] sm:$0xff] }
 0xddb   :  { %5336 = vmatprep.subr.bf16.mxu1 %v4574_v35  ;;  %5358 = vmatprep.subr.bf16.mxu0 %v4590_v18  ;;  %v4693_v35 = vld [vmem:[#allocation38 + $0x48] sm:$0xff] }
 0xddc   :  { %v5915_v18 = vpack.c.bf16 %v4693_v35, %v4692_v61 }
 0xdde   :  { %5337 = vmatpush3.bf16.msra.mxu1 %v4566_v19  ;;  %5359 = vmatpush3.bf16.msra.mxu0 %v4582_v12  ;;  %v4695_v19 = vld [vmem:[#allocation38 + $0x58] sm:$0xff] }
 0xddf   :  { %5338 = vmatprep.subr.bf16.mxu1 %v4575_v21  ;;  %5360 = vmatprep.subr.bf16.mxu0 %v4591_v23  ;;  %v4696_v21 = vld [vmem:[#allocation38 + $0x60] sm:$0xff]  ;;  %v4697_v23 = vld [vmem:[#allocation38 + $0x68] sm:$0xff] }
 0xde2   :  { %5339 = vmatpush3.bf16.msra.mxu1 %v4567_v24  ;;  %5361 = vmatpush3.bf16.msra.mxu0 %v4583_v27  ;;  %v5921_v24 = vpack.c.bf16 %v4697_v23, %v4696_v21  ;;  %v4698_v27 = vld [vmem:[#allocation38 + $0x70] sm:$0xff] }
 0xde3   :  { %5340 = vmatprep.subr.bf16.mxu1 %v4576_v29  ;;  %5362 = vmatprep.subr.bf16.mxu0 %v4592_v34  ;;  %v4699_v29 = vld [vmem:[#allocation38 + $0x78] sm:$0xff] }
 0xde4   :  { %v5924_v34 = vpack.c.bf16 %v4699_v29, %v4698_v27 }
 0xde6   :  { %5341 = vmatpush3.bf16.msra.mxu1 %v4568_v2  ;;  %5363 = vmatpush3.bf16.msra.mxu0 %v4584_v7 }
 0xde7   :  { %5342 = vmatprep.subr.bf16.mxu1 %v4577_v14  ;;  %5364 = vmatprep.subr.bf16.mxu0 %v4593_v20  ;;  %v4949_v14 = vld [vmem:[#allocation36] ss:$0 sm:$0xff] }
 0xdea   :  { %5343 = vmatpush3.bf16.msra.mxu1 %v4569_v41  ;;  %5365 = vmatpush3.bf16.msra.mxu0 %v4585_v42 }
 0xdeb   :  { %5344 = vmatprep.subr.bf16.mxu1 %v4578_v44  ;;  %5366 = vmatprep.subr.bf16.mxu0 %v4594_v54 }
 0xdee   :  { %5345 = vmatpush3.bf16.msra.mxu1 %v4570_v22  ;;  %5367 = vmatpush3.bf16.msra.mxu0 %v4586_v48 }
 0xdef   :  { %5346 = vmatprep.subr.bf16.mxu1 %v4579_v49  ;;  %5368 = vmatprep.subr.bf16.mxu0 %v4595_v53 }
 0xdf2   :  { %5347 = vmatpush3.bf16.msra.mxu1 %v4571_v26  ;;  %5369 = vmatpush3.bf16.msra.mxu0 %v4587_v55 }
 0xdf3   :  { %5902 = vmatprep.subr.bf16.mxu1 %v6636_v0 }
 0xea8   :  { %v4508_v46 = vpop.f32.mrb[104].mxu1  ;;  %v4549_v30 = vpop.f32.mrb[60].mxu0 }
 0xea9   :  { %v4509_v37 = vadd.f32 %v4508_v46, %v4457_v28  ;;  %v4550_v32 = vadd.f32 %v4549_v30, %v4465_v31  ;;  %v4510_v33 = vpop.f32.mrb[105].mxu1  ;;  %v4551_v36 = vpop.f32.mrb[61].mxu0 }
 0xeaa   :  { %v4511_v38 = vadd.f32 %v4510_v33, %v4461_v57  ;;  %v4552_v40 = vadd.f32 %v4551_v36, %v4469_v51  ;;  %v4512_v43 = vpop.f32.mrb[106].mxu1  ;;  %v4553_v45 = vpop.f32.mrb[62].mxu0 }
 0xeab   :  { %v4556_v47 = vmax.f32 %v4509_v37, 0.0  ;;  %v4558_v50 = vmax.f32 %v4550_v32, 0.0  ;;  %v4513_v52 = vpop.f32.mrb[107].mxu1  ;;  %v4554_v11 = vpop.f32.mrb[63].mxu0 }
 0xeac   :  { %v4557_v59 = vmax.f32 %v4511_v38, 0.0  ;;  %v4559_v56 = vmax.f32 %v4552_v40, 0.0 }
 0xead   :  { %v4562_v15 = vpack.c.bf16 %v4558_v50, %v4558_v50  ;;  %v4560_v63 = vpack.c.bf16 %v4556_v47, %v4556_v47 }
 0xeae   :  { %v4561_v58 = vpack.c.bf16 %v4557_v59, %v4557_v59  ;;  %v4563_v9 = vpack.c.bf16 %v4559_v56, %v4559_v56 }
 0xeb0   :  { %4635 = vmatprep.mubr.bf16.mxu1 %v4561_v58  ;;  %4675 = vmatprep.mubr.bf16.mxu0 %v4563_v9 }
 0xeb1   :  { %4636 = vmatmul.mubr.bf16.vlgmr.msra.gmra.mrb[108].mxu1 %v4560_v63  ;;  %4676 = vmatmul.mubr.bf16.vlgmr.msra.gmra.mrb[64].mxu0 %v4562_v15 }
 0xeb2   :  { %5904 = vmatpush3.bf16.msra.mxu1 %v5903_v5  ;;  %5663 = vmatprep.mubr.msk.f32.mxu1 %vm6638_vm0, %v6639_v1  ;;  %v4694_v1 = vld [vmem:[#allocation38 + $0x50] sm:$0xff] }
 0xeb3   :  { %5905 = vmatprep.subr.bf16.mxu1 %v6636_v0  ;;  %v5918_v12 = vpack.c.bf16 %v4695_v19, %v4694_v1 }
 0xeb6   :  { %5907 = vmatpush3.bf16.msra.mxu1 %v5906_v6 }
 0xeb7   :  { %5908 = vmatprep.subr.bf16.mxu1 %v6636_v0 }
 0xeba   :  { %5910 = vmatpush3.bf16.msra.mxu1 %v5909_v8 }
 0xebb   :  { %5911 = vmatprep.subr.bf16.mxu1 %v6636_v0 }
 0xebe   :  { %5913 = vmatpush3.bf16.msra.mxu1 %v5912_v17 }
 0xebf   :  { %5914 = vmatprep.subr.bf16.mxu1 %v6636_v0 }
 0xec2   :  { %5916 = vmatpush3.bf16.msra.mxu1 %v5915_v18 }
 0xec3   :  { %5917 = vmatprep.subr.bf16.mxu1 %v6636_v0 }
 0xec6   :  { %5919 = vmatpush3.bf16.msra.mxu1 %v5918_v12 }
 0xec7   :  { %5920 = vmatprep.subr.bf16.mxu1 %v6636_v0 }
 0xeca   :  { %5922 = vmatpush3.bf16.msra.mxu1 %v5921_v24 }
 0xecb   :  { %5923 = vmatprep.subr.bf16.mxu1 %v6636_v0  ;;  %v4950_v0 = vld [vmem:[#allocation39] ss:$0 sm:$0xff] }
 0xece   :  { %5925 = vmatpush3.bf16.msra.mxu1 %v5924_v34 }
 0xf84   :  { %v5348_v2 = vpop.f32.mrb[108].mxu1  ;;  %v5370_v7 = vpop.f32.mrb[64].mxu0 }
 0xf85   :  { %v5349_v20 = vpop.f32.mrb[109].mxu1  ;;  %v5371_v41 = vpop.f32.mrb[65].mxu0 }
 0xf86   :  { %v5350_v42 = vadd.f32 %v5349_v20, %v5348_v2  ;;  %v5372_v44 = vadd.f32 %v5371_v41, %v5370_v7  ;;  %v5351_v54 = vpop.f32.mrb[110].mxu1  ;;  %v5373_v22 = vpop.f32.mrb[66].mxu0 }
 0xf87   :  { %v5352_v48 = vpop.f32.mrb[111].mxu1  ;;  %v5374_v49 = vpop.f32.mrb[67].mxu0 }
 0xf88   :  { %v4638_v53 = vadd.f32 %v5350_v42, %v4949_v14 }
 0xf8a   :  { %v4678_v26 = vadd.f32 %v5372_v44, %v4638_v53 }
 0xf8c   :  { %v4683_v55 = vmax.f32 %v4678_v26, 0.0 }
 0xf8e   :  { %5664 = vmatmul.mubr.f32.vlgmr.msra.gmra.mrb[70].mxu1 %v4683_v55 }
0x1061   :  { %v4773_v25 = vpop.f32.mrb[70].mxu1 }
0x1062   :  { %v4774_v28 = vadd.f32 %v4950_v0, %v4773_v25  ;;  %v5665_v31 = vpop.f32.mrb[71].mxu1 }
0x1064   :  { %4777 = vst [vmem:[%s6826_s27] sm:$0xff] %v4774_v28 }
0x1065   :  { %4782 = vsyncpa [#allocation8], 1 }
0x1066   :  { %4783 = vsyncpa [#allocation10], 1 }
0x1067   :  { %4784 = vsyncpa [#allocation13], 1 }
0x1068   :  { %4785 = vsyncpa [#allocation16], 1 }
0x1069   :  { %4786 = vsyncpa [#allocation19], 1 }
0x106a   :  { %4787 = vsyncpa [#allocation22], 1 }
0x106b   :  { %4788 = vsyncpa [#allocation25], 1 }
0x106c   :  { %4789 = vsyncpa [#allocation28], 1 }
0x106d   :  { %4790 = vsyncpa [#allocation31], 1 }
0x106e   :  { %4791 = vsyncpa [#allocation34], 1 }
0x106f   :  { %4792 = vsyncpa [#allocation37], 1 }
0x1070   :  { %4793 = vsyncpa [#allocation40], 1 }
0x1071   :  { %4794 = vsyncmov [#allocation6] }
0x1074   :  { %s4795_s24 = vpop.sfrf %4794 }
0x1075   :  { %p4951_p10 = scmp.ne.s32.totalorder %s4795_s24, 0 }
0x1077   :  { %4799 = shalt.err (%p4951_p10)  }
0x1078   :  { %4801 = vsyncmov [#allocation6 + $0x1] }
0x107b   :  { %s4802_s10 = vpop.sfrf %4801 }
0x107c   :  { %p4952_p11 = scmp.ne.s32.totalorder %s4802_s10, 0 }
0x107e   :  { %4806 = shalt.err (%p4952_p11)  }
0x107f   :  { %4808 = vsyncmov [#allocation6 + $0x2] }
0x1082   :  { %s4809_s27 = vpop.sfrf %4808 }
0x1083   :  { %p4953_p12 = scmp.ne.s32.totalorder %s4809_s27, 0 }
0x1085   :  { %4813 = shalt.err (%p4953_p12)  }
0x1086   :  { %4815 = vsyncmov [#allocation6 + $0x3] }
0x1089   :  { %s4816_s17 = vpop.sfrf %4815 }
0x108a   :  { %p4954_p13 = scmp.ne.s32.totalorder %s4816_s17, 0 }
0x108c   :  { %4820 = shalt.err (%p4954_p13)  }

</bundles_post_ra>
